<compile_context>
chip_gen: v5e
topology: v5e:2x2
jax: 0.10.0
libtpu: 0.0.40
codegen_flags: <defaults>
</compile_context>

<pallas_src>
import functools

import jax
import jax.numpy as jnp
from jax import lax
from jax.experimental import pallas as pl
from jax.experimental.pallas import tpu as pltpu

# Full-precision f32 matmuls (both in-kernel and in the JAX reference).
jax.config.update("jax_default_matmul_precision", "highest")

_LN_EPS = 1e-5


# -----------------------------------------------------------------------------
# Fused forward kernel: grid = (batch, num_layers)
#   l == 0            : embed  = concat(CLS, x) + pos   -> residual scratch
#   every l           : pre-LN MHA + residual, pre-LN FFN + residual
#   l == num_layers-1 : mlp_head(LN + Linear) on the CLS row -> output
# -----------------------------------------------------------------------------
def _fused_kernel(x_ref, cls_ref, pos_ref,
                  ln1g_ref, ln1b_ref, wqkv_ref, wo_ref, bo_ref,
                  ln2g_ref, ln2b_ref, w1_ref, b1_ref, w2_ref, b2_ref,
                  hg_ref, hb_ref, hw_ref, hbias_ref,
                  o_ref, h_res, *, num_heads):
    l = pl.program_id(1)
    S, E = h_res.shape
    H = num_heads
    Dh = E // H
    scale = float(Dh) ** -0.5

    # ---- Phase 0 (first layer only): build the embedded sequence in VMEM ----
    @pl.when(l == 0)
    def _():
        x_in = x_ref[0].astype(jnp.float32)                     # (F, E)
        cls = cls_ref[0].astype(jnp.float32)                    # (1, E)
        pos = pos_ref[0].astype(jnp.float32)                    # (S, E)
        h_res[...] = jnp.concatenate([cls, x_in], axis=0) + pos  # one full store

    def layer_norm(v, g, b):
        mu = jnp.mean(v, axis=-1, keepdims=True)
        var = jnp.mean(jnp.square(v - mu), axis=-1, keepdims=True)
        return (v - mu) * lax.rsqrt(var + _LN_EPS) * g + b

    x = h_res[...]                                              # (S, E) f32

    # ---- Multi-head self-attention (pre-LN) ---------------------------------
    hln = layer_norm(x, ln1g_ref[0], ln1b_ref[0])               # (S, E)
    qkv = jnp.dot(hln, wqkv_ref[0],
                  preferred_element_type=jnp.float32)           # (S, 3E)

    a_heads = []
    for hh in range(H):                                         # static unroll
        q_h = qkv[:, hh * Dh:(hh + 1) * Dh]                     # (S, Dh)
        k_h = qkv[:, E + hh * Dh:E + (hh + 1) * Dh]
        v_h = qkv[:, 2 * E + hh * Dh:2 * E + (hh + 1) * Dh]
        s = jnp.einsum("qd,kd->qk", q_h, k_h,
                       preferred_element_type=jnp.float32) * scale
        s = s - jnp.max(s, axis=-1, keepdims=True)
        p = jnp.exp(s)
        p = p * pl.reciprocal(jnp.sum(p, axis=-1, keepdims=True), approx=True)
        a_heads.append(jnp.dot(p, v_h,
                               preferred_element_type=jnp.float32))  # (S, Dh)

    a = jnp.concatenate(a_heads, axis=-1)                       # (S, E) head-major
    attn = jnp.dot(a, wo_ref[0],
                   preferred_element_type=jnp.float32) + bo_ref[0]
    x = x + attn                                                # residual 1

    # ---- Feed-forward --------------------------------------------------------
    hln = layer_norm(x, ln2g_ref[0], ln2b_ref[0])
    f = jnp.dot(hln, w1_ref[0], preferred_element_type=jnp.float32) + b1_ref[0]
    f = jnp.maximum(f, 0.0)
    f = jnp.dot(f, w2_ref[0], preferred_element_type=jnp.float32) + b2_ref[0]
    x = x + f                                                   # residual 2

    h_res[...] = x                                              # carry to next layer

    # ---- Head (last layer only): LayerNorm + Linear on the CLS row ----------
    @pl.when(l == pl.num_programs(1) - 1)
    def _():
        xc = x[0:1, :]                                          # (1, E)
        hc = layer_norm(xc, hg_ref[...], hb_ref[...])
        o_ref[0] = (jnp.dot(hc, hw_ref[...],
                            preferred_element_type=jnp.float32)
                    + hbias_ref[...]).astype(o_ref.dtype)


def forward(params, x, *, num_heads, num_layers):
    B, F, E = x.shape
    S = F + 1
    out_dim = params["head_w"].shape[1]
    L = num_layers

    # Per-layer params: block (1, ...) indexed by the layer grid axis.
    def lyr(shape):
        return pl.BlockSpec((1,) + shape, lambda b, l: (l,) + (0,) * len(shape))

    # Constant (layer-independent) params: full block, fetched once.
    def full(shape):
        return pl.BlockSpec(shape, lambda b, l: (0,) * len(shape))

    in_specs = [
        pl.BlockSpec((1, F, E), lambda b, l: (b, 0, 0)),        # x (per batch row)
        full((1, 1, E)),                                        # cls_token
        full((1, S, E)),                                        # pos_embedding
        lyr((1, E)),                                            # ln1_g
        lyr((1, E)),                                            # ln1_b
        lyr((E, 3 * E)),                                        # w_qkv
        lyr((E, E)),                                            # w_o
        lyr((1, E)),                                            # b_o
        lyr((1, E)),                                            # ln2_g
        lyr((1, E)),                                            # ln2_b
        lyr((E, 4 * E)),                                        # w1
        lyr((1, 4 * E)),                                        # b1
        lyr((4 * E, E)),                                        # w2
        lyr((1, E)),                                            # b2
        full((1, E)),                                           # head_ln_g
        full((1, E)),                                           # head_ln_b
        full((E, out_dim)),                                     # head_w
        full((1, out_dim)),                                     # head_b
    ]

    out = pl.pallas_call(
        functools.partial(_fused_kernel, num_heads=num_heads),
        out_shape=jax.ShapeDtypeStruct((B, 1, out_dim), x.dtype),
        grid_spec=pltpu.PrefetchScalarGridSpec(
            num_scalar_prefetch=0,
            grid=(B, L),
            in_specs=in_specs,
            out_specs=pl.BlockSpec((1, 1, out_dim), lambda b, l: (b, 0, 0)),
            scratch_shapes=[pltpu.VMEM((S, E), jnp.float32)],   # residual stream
        ),
        compiler_params=pltpu.CompilerParams(
            dimension_semantics=("parallel", "arbitrary")),
    )(x, params["cls_token"], params["pos_embedding"],
      params["ln1_g"], params["ln1_b"], params["w_qkv"], params["w_o"],
      params["b_o"], params["ln2_g"], params["ln2_b"], params["w1"],
      params["b1"], params["w2"], params["b2"],
      params["head_ln_g"], params["head_ln_b"], params["head_w"],
      params["head_b"])
    return out.reshape(B, out_dim)


# -----------------------------------------------------------------------------
# Parameter init (stacked per-layer weights) + module wrapper
# -----------------------------------------------------------------------------
def _init_params(key, embed_dim, num_layers, output_dim, num_frames):
    E, L = embed_dim, num_layers
    f32 = jnp.float32
    std = E ** -0.5
    ks = jax.random.split(key, 6)
    return {
        "cls_token": jnp.zeros((1, 1, E), f32),
        "pos_embedding": jax.random.normal(ks[0], (1, num_frames + 1, E), f32),
        "ln1_g": jnp.ones((L, 1, E), f32),
        "ln1_b": jnp.zeros((L, 1, E), f32),
        "w_qkv": std * jax.random.normal(ks[1], (L, E, 3 * E), f32),
        "w_o": std * jax.random.normal(ks[2], (L, E, E), f32),
        "b_o": jnp.zeros((L, 1, E), f32),
        "ln2_g": jnp.ones((L, 1, E), f32),
        "ln2_b": jnp.zeros((L, 1, E), f32),
        "w1": std * jax.random.normal(ks[3], (L, E, 4 * E), f32),
        "b1": jnp.zeros((L, 1, 4 * E), f32),
        "w2": (4 * E) ** -0.5 * jax.random.normal(ks[4], (L, 4 * E, E), f32),
        "b2": jnp.zeros((L, 1, E), f32),
        "head_ln_g": jnp.ones((1, E), f32),
        "head_ln_b": jnp.zeros((1, E), f32),
        "head_w": std * jax.random.normal(ks[5], (E, output_dim), f32),
        "head_b": jnp.zeros((1, output_dim), f32),
    }


class SeriseTransformer:
    """JAX/Pallas port of the PyTorch SeriseTransformer (eval-mode forward)."""

    def __init__(self, embed_dim, num_heads, num_layers, output_dim, num_frames,
                 dropout=0.1, *, key=None):
        del dropout  # identity in eval mode
        assert embed_dim % num_heads == 0
        if key is None:
            key = jax.random.PRNGKey(42)
        self.num_heads = num_heads
        self.num_layers = num_layers
        self.params = _init_params(key, embed_dim, num_layers, output_dim,
                                   num_frames)
        self._fwd = jax.jit(functools.partial(forward, num_heads=num_heads,
                                              num_layers=num_layers))

    def __call__(self, x):
        return self._fwd(self.params, x)


# -----------------------------------------------------------------------------
# Pure-JAX reference (mirrors the PyTorch forward) for the correctness check
# -----------------------------------------------------------------------------
def _reference_forward(params, x, num_heads, num_layers):
    B, F, E = x.shape
    H = num_heads
    Dh = E // H
    S = F + 1

    def ln(v, g, b):
        mu = v.mean(-1, keepdims=True)
        var = ((v - mu) ** 2).mean(-1, keepdims=True)
        return (v - mu) / jnp.sqrt(var + _LN_EPS) * g + b

    cls = jnp.broadcast_to(params["cls_token"], (B, 1, E))
    h = jnp.concatenate([cls, x], axis=1) + params["pos_embedding"]
    for i in range(num_layers):
        y = ln(h, params["ln1_g"][i], params["ln1_b"][i])
        qkv = y @ params["w_qkv"][i]
        q, k, v = jnp.split(qkv, 3, axis=-1)

        def heads(t):
            return t.reshape(B, S, H, Dh).transpose(0, 2, 1, 3)

        q, k, v = heads(q), heads(k), heads(v)
        att = jax.nn.softmax((q @ jnp.swapaxes(k, -1, -2)) * (Dh ** -0.5),
                             axis=-1)
        o = (att @ v).transpose(0, 2, 1, 3).reshape(B, S, E)
        h = h + (o @ params["w_o"][i] + params["b_o"][i])
        y = ln(h, params["ln2_g"][i], params["ln2_b"][i])
        f = jnp.maximum(y @ params["w1"][i] + params["b1"][i], 0.0)
        h = h + (f @ params["w2"][i] + params["b2"][i])
    hc = ln(h[:, 0, :], params["head_ln_g"], params["head_ln_b"])
    return hc @ params["head_w"] + params["head_b"]


if __name__ == "__main__":
    batch = 2
    num_frames = 8
    embed_dim = 32
    num_heads = 4
    num_layers = 2
    output_dim = 8

    key = jax.random.PRNGKey(0)
    kx, kp = jax.random.split(key)
    x = jax.random.normal(kx, (batch, num_frames, embed_dim), dtype=jnp.float32)

    model = SeriseTransformer(embed_dim, num_heads, num_layers, output_dim,
                              num_frames, dropout=0.1, key=kp)
    out = jax.block_until_ready(model(x))

    assert out.shape == (batch, output_dim)

    ref = _reference_forward(model.params, x, num_heads, num_layers)
    max_err = float(jnp.max(jnp.abs(out - ref)))
    assert jnp.allclose(out, ref, atol=1e-2, rtol=1e-2), max_err

    print("KERNEL_OK")
</pallas_src>

<mosaic_0001>
module attributes {stable_mosaic.version = 11 : i64} {
  func.func @_fused_kernel(%arg0: i32, %arg1: i32, %arg2: memref<1x8x32xf32, #tpu.memory_space<vmem>>, %arg3: memref<1x1x32xf32, #tpu.memory_space<vmem>>, %arg4: memref<1x9x32xf32, #tpu.memory_space<vmem>>, %arg5: memref<1x1x32xf32, #tpu.memory_space<vmem>>, %arg6: memref<1x1x32xf32, #tpu.memory_space<vmem>>, %arg7: memref<1x32x96xf32, #tpu.memory_space<vmem>>, %arg8: memref<1x32x32xf32, #tpu.memory_space<vmem>>, %arg9: memref<1x1x32xf32, #tpu.memory_space<vmem>>, %arg10: memref<1x1x32xf32, #tpu.memory_space<vmem>>, %arg11: memref<1x1x32xf32, #tpu.memory_space<vmem>>, %arg12: memref<1x32x128xf32, #tpu.memory_space<vmem>>, %arg13: memref<1x1x128xf32, #tpu.memory_space<vmem>>, %arg14: memref<1x128x32xf32, #tpu.memory_space<vmem>>, %arg15: memref<1x1x32xf32, #tpu.memory_space<vmem>>, %arg16: memref<1x32xf32, #tpu.memory_space<vmem>>, %arg17: memref<1x32xf32, #tpu.memory_space<vmem>>, %arg18: memref<32x8xf32, #tpu.memory_space<vmem>>, %arg19: memref<1x8xf32, #tpu.memory_space<vmem>>, %arg20: memref<1x1x8xf32, #tpu.memory_space<vmem>>, %arg21: memref<9x32xf32, #tpu.memory_space<vmem>>) attributes {dimension_semantics = [#tpu.dimension_semantics<parallel>, #tpu.dimension_semantics<arbitrary>], iteration_bounds = array<i64: 2, 2>, scalar_prefetch = 0 : i64, scratch_operands = 1 : i64, tpu.core_type = #tpu.core_type<tc>, window_params = [{transform_indices = @transform_0, window_bounds = array<i64: 1, 8, 32>}, {pipeline_mode = #tpu.pipeline_mode<synchronous>, transform_indices = @transform_1, window_bounds = array<i64: 1, 1, 32>}, {pipeline_mode = #tpu.pipeline_mode<synchronous>, transform_indices = @transform_2, window_bounds = array<i64: 1, 9, 32>}, {transform_indices = @transform_3, window_bounds = array<i64: 1, 1, 32>}, {transform_indices = @transform_4, window_bounds = array<i64: 1, 1, 32>}, {transform_indices = @transform_5, window_bounds = array<i64: 1, 32, 96>}, {transform_indices = @transform_6, window_bounds = array<i64: 1, 32, 32>}, {transform_indices = @transform_7, window_bounds = array<i64: 1, 1, 32>}, {transform_indices = @transform_8, window_bounds = array<i64: 1, 1, 32>}, {transform_indices = @transform_9, window_bounds = array<i64: 1, 1, 32>}, {transform_indices = @transform_10, window_bounds = array<i64: 1, 32, 128>}, {transform_indices = @transform_11, window_bounds = array<i64: 1, 1, 128>}, {transform_indices = @transform_12, window_bounds = array<i64: 1, 128, 32>}, {transform_indices = @transform_13, window_bounds = array<i64: 1, 1, 32>}, {pipeline_mode = #tpu.pipeline_mode<synchronous>, transform_indices = @transform_14, window_bounds = array<i64: 1, 32>}, {pipeline_mode = #tpu.pipeline_mode<synchronous>, transform_indices = @transform_15, window_bounds = array<i64: 1, 32>}, {pipeline_mode = #tpu.pipeline_mode<synchronous>, transform_indices = @transform_16, window_bounds = array<i64: 32, 8>}, {pipeline_mode = #tpu.pipeline_mode<synchronous>, transform_indices = @transform_17, window_bounds = array<i64: 1, 8>}, {transform_indices = @transform_18, window_bounds = array<i64: 1, 1, 8>}]} {
    %c0_i32 = arith.constant 0 : i32
    %0 = arith.cmpi eq, %arg1, %c0_i32 : i32
    %1 = arith.extui %0 : i1 to i32
    %c0_i32_0 = arith.constant 0 : i32
    %2 = arith.cmpi ne, %1, %c0_i32_0 : i32
    scf.if %2 {
      %c0_72 = arith.constant 0 : index
      %c0_73 = arith.constant 0 : index
      %c0_74 = arith.constant 0 : index
      %157 = vector.load %arg2[%c0_72, %c0_73, %c0_74] : memref<1x8x32xf32, #tpu.memory_space<vmem>>, vector<1x8x32xf32>
      %158 = vector.shape_cast %157 : vector<1x8x32xf32> to vector<8x32xf32>
      %c0_75 = arith.constant 0 : index
      %c0_76 = arith.constant 0 : index
      %c0_77 = arith.constant 0 : index
      %159 = vector.load %arg3[%c0_75, %c0_76, %c0_77] : memref<1x1x32xf32, #tpu.memory_space<vmem>>, vector<1x1x32xf32>
      %160 = vector.shape_cast %159 : vector<1x1x32xf32> to vector<1x32xf32>
      %c0_78 = arith.constant 0 : index
      %c0_79 = arith.constant 0 : index
      %c0_80 = arith.constant 0 : index
      %161 = vector.load %arg4[%c0_78, %c0_79, %c0_80] : memref<1x9x32xf32, #tpu.memory_space<vmem>>, vector<1x9x32xf32>
      %162 = vector.shape_cast %161 : vector<1x9x32xf32> to vector<9x32xf32>
      %163 = tpu.concatenate %160, %158 in 0 : vector<1x32xf32>, vector<8x32xf32> -> vector<9x32xf32>
      %164 = arith.addf %163, %162 : vector<9x32xf32>
      %c0_81 = arith.constant 0 : index
      %c0_82 = arith.constant 0 : index
      %165 = vector.load %arg21[%c0_81, %c0_82] : memref<9x32xf32, #tpu.memory_space<vmem>>, vector<9x32xf32>
      tpu.vector_store %arg21[%c0_81, %c0_82], %164 {strides = array<i32>} : memref<9x32xf32, #tpu.memory_space<vmem>>, vector<9x32xf32>,
    } else {
    }
    %c0 = arith.constant 0 : index
    %c0_1 = arith.constant 0 : index
    %3 = vector.load %arg21[%c0, %c0_1] : memref<9x32xf32, #tpu.memory_space<vmem>>, vector<9x32xf32>
    %c0_2 = arith.constant 0 : index
    %c0_3 = arith.constant 0 : index
    %c0_4 = arith.constant 0 : index
    %4 = vector.load %arg5[%c0_2, %c0_3, %c0_4] : memref<1x1x32xf32, #tpu.memory_space<vmem>>, vector<1x1x32xf32>
    %5 = vector.shape_cast %4 : vector<1x1x32xf32> to vector<1x32xf32>
    %c0_5 = arith.constant 0 : index
    %c0_6 = arith.constant 0 : index
    %c0_7 = arith.constant 0 : index
    %6 = vector.load %arg6[%c0_5, %c0_6, %c0_7] : memref<1x1x32xf32, #tpu.memory_space<vmem>>, vector<1x1x32xf32>
    %7 = vector.shape_cast %6 : vector<1x1x32xf32> to vector<1x32xf32>
    %cst = arith.constant dense<0.000000e+00> : vector<9xf32>
    %8 = vector.multi_reduction <add>, %3, %cst [1] : vector<9x32xf32> to vector<9xf32>
    %9 = vector.shape_cast %8 : vector<9xf32> to vector<9x1xf32>
    %cst_8 = arith.constant 3.200000e+01 : f32
    %10 = vector.broadcast %cst_8 : f32 to vector<9x1xf32>
    %11 = arith.divf %9, %10 : vector<9x1xf32>
    %12 = vector.broadcast %11 : vector<9x1xf32> to vector<9x32xf32>
    %13 = arith.subf %3, %12 : vector<9x32xf32>
    %14 = arith.mulf %13, %13 : vector<9x32xf32>
    %cst_9 = arith.constant dense<0.000000e+00> : vector<9xf32>
    %15 = vector.multi_reduction <add>, %14, %cst_9 [1] : vector<9x32xf32> to vector<9xf32>
    %16 = vector.shape_cast %15 : vector<9xf32> to vector<9x1xf32>
    %cst_10 = arith.constant 3.200000e+01 : f32
    %17 = vector.broadcast %cst_10 : f32 to vector<9x1xf32>
    %18 = arith.divf %16, %17 : vector<9x1xf32>
    %19 = vector.broadcast %11 : vector<9x1xf32> to vector<9x32xf32>
    %20 = arith.subf %3, %19 : vector<9x32xf32>
    %cst_11 = arith.constant 9.99999974E-6 : f32
    %21 = vector.broadcast %cst_11 : f32 to vector<9x1xf32>
    %22 = arith.addf %18, %21 : vector<9x1xf32>
    %23 = math.rsqrt %22 : vector<9x1xf32>
    %24 = vector.broadcast %23 : vector<9x1xf32> to vector<9x32xf32>
    %25 = arith.mulf %20, %24 : vector<9x32xf32>
    %26 = vector.broadcast %5 : vector<1x32xf32> to vector<9x32xf32>
    %27 = arith.mulf %25, %26 : vector<9x32xf32>
    %28 = vector.broadcast %7 : vector<1x32xf32> to vector<9x32xf32>
    %29 = arith.addf %27, %28 : vector<9x32xf32>
    %c0_12 = arith.constant 0 : index
    %c0_13 = arith.constant 0 : index
    %c0_14 = arith.constant 0 : index
    %30 = vector.load %arg7[%c0_12, %c0_13, %c0_14] : memref<1x32x96xf32, #tpu.memory_space<vmem>>, vector<1x32x96xf32>
    %31 = vector.shape_cast %30 : vector<1x32x96xf32> to vector<32x96xf32>
    %cst_15 = arith.constant dense<0.000000e+00> : vector<9x96xf32>
    %32 = tpu.matmul %29, %31, %cst_15 {dimension_numbers = #tpu.dot_dimension_numbers<[1], [0], [0], [1], [0, 0, 1, 1], [], []>, precision = #tpu.contract_precision<fp32>} : vector<9x32xf32>, vector<32x96xf32>, vector<9x96xf32> -> vector<9x96xf32>
    %33 = vector.extract_strided_slice %32 {offsets = [0, 0], sizes = [9, 8], strides = [1, 1]} : vector<9x96xf32> to vector<9x8xf32>
    %34 = vector.extract_strided_slice %32 {offsets = [0, 32], sizes = [9, 8], strides = [1, 1]} : vector<9x96xf32> to vector<9x8xf32>
    %35 = vector.extract_strided_slice %32 {offsets = [0, 64], sizes = [9, 8], strides = [1, 1]} : vector<9x96xf32> to vector<9x8xf32>
    "tpu.trace_start"() <{level = 10 : i32, message = "qd,kd->qk"}> : () -> ()
    %cst_16 = arith.constant dense<0.000000e+00> : vector<9x9xf32>
    %36 = tpu.matmul %33, %34, %cst_16 {dimension_numbers = #tpu.dot_dimension_numbers<[1], [1], [0], [0], [0, 0, 1, 0], [], []>, precision = #tpu.contract_precision<fp32>} : vector<9x8xf32>, vector<9x8xf32>, vector<9x9xf32> -> vector<9x9xf32>
    "tpu.trace_stop"() : () -> ()
    %cst_17 = arith.constant 0.353553385 : f32
    %37 = vector.broadcast %cst_17 : f32 to vector<9x9xf32>
    %38 = arith.mulf %36, %37 : vector<9x9xf32>
    %cst_18 = arith.constant dense<0xFF800000> : vector<9xf32>
    %39 = vector.multi_reduction <maximumf>, %38, %cst_18 [1] : vector<9x9xf32> to vector<9xf32>
    %40 = vector.shape_cast %39 : vector<9xf32> to vector<9x1xf32>
    %41 = vector.broadcast %40 : vector<9x1xf32> to vector<9x9xf32>
    %42 = arith.subf %38, %41 : vector<9x9xf32>
    %43 = math.exp %42 : vector<9x9xf32>
    %cst_19 = arith.constant dense<0.000000e+00> : vector<9xf32>
    %44 = vector.multi_reduction <add>, %43, %cst_19 [1] : vector<9x9xf32> to vector<9xf32>
    %45 = vector.shape_cast %44 : vector<9xf32> to vector<9x1xf32>
    %46 = tpu.reciprocal %45 {approx = true} : vector<9x1xf32> -> vector<9x1xf32>
    %47 = vector.broadcast %46 : vector<9x1xf32> to vector<9x9xf32>
    %48 = arith.mulf %43, %47 : vector<9x9xf32>
    %cst_20 = arith.constant dense<0.000000e+00> : vector<9x8xf32>
    %49 = tpu.matmul %48, %35, %cst_20 {dimension_numbers = #tpu.dot_dimension_numbers<[1], [0], [0], [1], [0, 0, 1, 1], [], []>, precision = #tpu.contract_precision<fp32>} : vector<9x9xf32>, vector<9x8xf32>, vector<9x8xf32> -> vector<9x8xf32>
    %50 = vector.extract_strided_slice %32 {offsets = [0, 8], sizes = [9, 8], strides = [1, 1]} : vector<9x96xf32> to vector<9x8xf32>
    %51 = vector.extract_strided_slice %32 {offsets = [0, 40], sizes = [9, 8], strides = [1, 1]} : vector<9x96xf32> to vector<9x8xf32>
    %52 = vector.extract_strided_slice %32 {offsets = [0, 72], sizes = [9, 8], strides = [1, 1]} : vector<9x96xf32> to vector<9x8xf32>
    "tpu.trace_start"() <{level = 10 : i32, message = "qd,kd->qk"}> : () -> ()
    %cst_21 = arith.constant dense<0.000000e+00> : vector<9x9xf32>
    %53 = tpu.matmul %50, %51, %cst_21 {dimension_numbers = #tpu.dot_dimension_numbers<[1], [1], [0], [0], [0, 0, 1, 0], [], []>, precision = #tpu.contract_precision<fp32>} : vector<9x8xf32>, vector<9x8xf32>, vector<9x9xf32> -> vector<9x9xf32>
    "tpu.trace_stop"() : () -> ()
    %cst_22 = arith.constant 0.353553385 : f32
    %54 = vector.broadcast %cst_22 : f32 to vector<9x9xf32>
    %55 = arith.mulf %53, %54 : vector<9x9xf32>
    %cst_23 = arith.constant dense<0xFF800000> : vector<9xf32>
    %56 = vector.multi_reduction <maximumf>, %55, %cst_23 [1] : vector<9x9xf32> to vector<9xf32>
    %57 = vector.shape_cast %56 : vector<9xf32> to vector<9x1xf32>
    %58 = vector.broadcast %57 : vector<9x1xf32> to vector<9x9xf32>
    %59 = arith.subf %55, %58 : vector<9x9xf32>
    %60 = math.exp %59 : vector<9x9xf32>
    %cst_24 = arith.constant dense<0.000000e+00> : vector<9xf32>
    %61 = vector.multi_reduction <add>, %60, %cst_24 [1] : vector<9x9xf32> to vector<9xf32>
    %62 = vector.shape_cast %61 : vector<9xf32> to vector<9x1xf32>
    %63 = tpu.reciprocal %62 {approx = true} : vector<9x1xf32> -> vector<9x1xf32>
    %64 = vector.broadcast %63 : vector<9x1xf32> to vector<9x9xf32>
    %65 = arith.mulf %60, %64 : vector<9x9xf32>
    %cst_25 = arith.constant dense<0.000000e+00> : vector<9x8xf32>
    %66 = tpu.matmul %65, %52, %cst_25 {dimension_numbers = #tpu.dot_dimension_numbers<[1], [0], [0], [1], [0, 0, 1, 1], [], []>, precision = #tpu.contract_precision<fp32>} : vector<9x9xf32>, vector<9x8xf32>, vector<9x8xf32> -> vector<9x8xf32>
    %67 = vector.extract_strided_slice %32 {offsets = [0, 16], sizes = [9, 8], strides = [1, 1]} : vector<9x96xf32> to vector<9x8xf32>
    %68 = vector.extract_strided_slice %32 {offsets = [0, 48], sizes = [9, 8], strides = [1, 1]} : vector<9x96xf32> to vector<9x8xf32>
    %69 = vector.extract_strided_slice %32 {offsets = [0, 80], sizes = [9, 8], strides = [1, 1]} : vector<9x96xf32> to vector<9x8xf32>
    "tpu.trace_start"() <{level = 10 : i32, message = "qd,kd->qk"}> : () -> ()
    %cst_26 = arith.constant dense<0.000000e+00> : vector<9x9xf32>
    %70 = tpu.matmul %67, %68, %cst_26 {dimension_numbers = #tpu.dot_dimension_numbers<[1], [1], [0], [0], [0, 0, 1, 0], [], []>, precision = #tpu.contract_precision<fp32>} : vector<9x8xf32>, vector<9x8xf32>, vector<9x9xf32> -> vector<9x9xf32>
    "tpu.trace_stop"() : () -> ()
    %cst_27 = arith.constant 0.353553385 : f32
    %71 = vector.broadcast %cst_27 : f32 to vector<9x9xf32>
    %72 = arith.mulf %70, %71 : vector<9x9xf32>
    %cst_28 = arith.constant dense<0xFF800000> : vector<9xf32>
    %73 = vector.multi_reduction <maximumf>, %72, %cst_28 [1] : vector<9x9xf32> to vector<9xf32>
    %74 = vector.shape_cast %73 : vector<9xf32> to vector<9x1xf32>
    %75 = vector.broadcast %74 : vector<9x1xf32> to vector<9x9xf32>
    %76 = arith.subf %72, %75 : vector<9x9xf32>
    %77 = math.exp %76 : vector<9x9xf32>
    %cst_29 = arith.constant dense<0.000000e+00> : vector<9xf32>
    %78 = vector.multi_reduction <add>, %77, %cst_29 [1] : vector<9x9xf32> to vector<9xf32>
    %79 = vector.shape_cast %78 : vector<9xf32> to vector<9x1xf32>
    %80 = tpu.reciprocal %79 {approx = true} : vector<9x1xf32> -> vector<9x1xf32>
    %81 = vector.broadcast %80 : vector<9x1xf32> to vector<9x9xf32>
    %82 = arith.mulf %77, %81 : vector<9x9xf32>
    %cst_30 = arith.constant dense<0.000000e+00> : vector<9x8xf32>
    %83 = tpu.matmul %82, %69, %cst_30 {dimension_numbers = #tpu.dot_dimension_numbers<[1], [0], [0], [1], [0, 0, 1, 1], [], []>, precision = #tpu.contract_precision<fp32>} : vector<9x9xf32>, vector<9x8xf32>, vector<9x8xf32> -> vector<9x8xf32>
    %84 = vector.extract_strided_slice %32 {offsets = [0, 24], sizes = [9, 8], strides = [1, 1]} : vector<9x96xf32> to vector<9x8xf32>
    %85 = vector.extract_strided_slice %32 {offsets = [0, 56], sizes = [9, 8], strides = [1, 1]} : vector<9x96xf32> to vector<9x8xf32>
    %86 = vector.extract_strided_slice %32 {offsets = [0, 88], sizes = [9, 8], strides = [1, 1]} : vector<9x96xf32> to vector<9x8xf32>
    "tpu.trace_start"() <{level = 10 : i32, message = "qd,kd->qk"}> : () -> ()
    %cst_31 = arith.constant dense<0.000000e+00> : vector<9x9xf32>
    %87 = tpu.matmul %84, %85, %cst_31 {dimension_numbers = #tpu.dot_dimension_numbers<[1], [1], [0], [0], [0, 0, 1, 0], [], []>, precision = #tpu.contract_precision<fp32>} : vector<9x8xf32>, vector<9x8xf32>, vector<9x9xf32> -> vector<9x9xf32>
    "tpu.trace_stop"() : () -> ()
    %cst_32 = arith.constant 0.353553385 : f32
    %88 = vector.broadcast %cst_32 : f32 to vector<9x9xf32>
    %89 = arith.mulf %87, %88 : vector<9x9xf32>
    %cst_33 = arith.constant dense<0xFF800000> : vector<9xf32>
    %90 = vector.multi_reduction <maximumf>, %89, %cst_33 [1] : vector<9x9xf32> to vector<9xf32>
    %91 = vector.shape_cast %90 : vector<9xf32> to vector<9x1xf32>
    %92 = vector.broadcast %91 : vector<9x1xf32> to vector<9x9xf32>
    %93 = arith.subf %89, %92 : vector<9x9xf32>
    %94 = math.exp %93 : vector<9x9xf32>
    %cst_34 = arith.constant dense<0.000000e+00> : vector<9xf32>
    %95 = vector.multi_reduction <add>, %94, %cst_34 [1] : vector<9x9xf32> to vector<9xf32>
    %96 = vector.shape_cast %95 : vector<9xf32> to vector<9x1xf32>
    %97 = tpu.reciprocal %96 {approx = true} : vector<9x1xf32> -> vector<9x1xf32>
    %98 = vector.broadcast %97 : vector<9x1xf32> to vector<9x9xf32>
    %99 = arith.mulf %94, %98 : vector<9x9xf32>
    %cst_35 = arith.constant dense<0.000000e+00> : vector<9x8xf32>
    %100 = tpu.matmul %99, %86, %cst_35 {dimension_numbers = #tpu.dot_dimension_numbers<[1], [0], [0], [1], [0, 0, 1, 1], [], []>, precision = #tpu.contract_precision<fp32>} : vector<9x9xf32>, vector<9x8xf32>, vector<9x8xf32> -> vector<9x8xf32>
    %101 = tpu.concatenate %49, %66, %83, %100 in 1 : vector<9x8xf32>, vector<9x8xf32>, vector<9x8xf32>, vector<9x8xf32> -> vector<9x32xf32>
    %c0_36 = arith.constant 0 : index
    %c0_37 = arith.constant 0 : index
    %c0_38 = arith.constant 0 : index
    %102 = vector.load %arg8[%c0_36, %c0_37, %c0_38] : memref<1x32x32xf32, #tpu.memory_space<vmem>>, vector<1x32x32xf32>
    %103 = vector.shape_cast %102 : vector<1x32x32xf32> to vector<32x32xf32>
    %cst_39 = arith.constant dense<0.000000e+00> : vector<9x32xf32>
    %104 = tpu.matmul %101, %103, %cst_39 {dimension_numbers = #tpu.dot_dimension_numbers<[1], [0], [0], [1], [0, 0, 1, 1], [], []>, precision = #tpu.contract_precision<fp32>} : vector<9x32xf32>, vector<32x32xf32>, vector<9x32xf32> -> vector<9x32xf32>
    %c0_40 = arith.constant 0 : index
    %c0_41 = arith.constant 0 : index
    %c0_42 = arith.constant 0 : index
    %105 = vector.load %arg9[%c0_40, %c0_41, %c0_42] : memref<1x1x32xf32, #tpu.memory_space<vmem>>, vector<1x1x32xf32>
    %106 = vector.shape_cast %105 : vector<1x1x32xf32> to vector<1x32xf32>
    %107 = vector.broadcast %106 : vector<1x32xf32> to vector<9x32xf32>
    %108 = arith.addf %104, %107 : vector<9x32xf32>
    %109 = arith.addf %3, %108 : vector<9x32xf32>
    %c0_43 = arith.constant 0 : index
    %c0_44 = arith.constant 0 : index
    %c0_45 = arith.constant 0 : index
    %110 = vector.load %arg10[%c0_43, %c0_44, %c0_45] : memref<1x1x32xf32, #tpu.memory_space<vmem>>, vector<1x1x32xf32>
    %111 = vector.shape_cast %110 : vector<1x1x32xf32> to vector<1x32xf32>
    %c0_46 = arith.constant 0 : index
    %c0_47 = arith.constant 0 : index
    %c0_48 = arith.constant 0 : index
    %112 = vector.load %arg11[%c0_46, %c0_47, %c0_48] : memref<1x1x32xf32, #tpu.memory_space<vmem>>, vector<1x1x32xf32>
    %113 = vector.shape_cast %112 : vector<1x1x32xf32> to vector<1x32xf32>
    %cst_49 = arith.constant dense<0.000000e+00> : vector<9xf32>
    %114 = vector.multi_reduction <add>, %109, %cst_49 [1] : vector<9x32xf32> to vector<9xf32>
    %115 = vector.shape_cast %114 : vector<9xf32> to vector<9x1xf32>
    %cst_50 = arith.constant 3.200000e+01 : f32
    %116 = vector.broadcast %cst_50 : f32 to vector<9x1xf32>
    %117 = arith.divf %115, %116 : vector<9x1xf32>
    %118 = vector.broadcast %117 : vector<9x1xf32> to vector<9x32xf32>
    %119 = arith.subf %109, %118 : vector<9x32xf32>
    %120 = arith.mulf %119, %119 : vector<9x32xf32>
    %cst_51 = arith.constant dense<0.000000e+00> : vector<9xf32>
    %121 = vector.multi_reduction <add>, %120, %cst_51 [1] : vector<9x32xf32> to vector<9xf32>
    %122 = vector.shape_cast %121 : vector<9xf32> to vector<9x1xf32>
    %cst_52 = arith.constant 3.200000e+01 : f32
    %123 = vector.broadcast %cst_52 : f32 to vector<9x1xf32>
    %124 = arith.divf %122, %123 : vector<9x1xf32>
    %125 = vector.broadcast %117 : vector<9x1xf32> to vector<9x32xf32>
    %126 = arith.subf %109, %125 : vector<9x32xf32>
    %cst_53 = arith.constant 9.99999974E-6 : f32
    %127 = vector.broadcast %cst_53 : f32 to vector<9x1xf32>
    %128 = arith.addf %124, %127 : vector<9x1xf32>
    %129 = math.rsqrt %128 : vector<9x1xf32>
    %130 = vector.broadcast %129 : vector<9x1xf32> to vector<9x32xf32>
    %131 = arith.mulf %126, %130 : vector<9x32xf32>
    %132 = vector.broadcast %111 : vector<1x32xf32> to vector<9x32xf32>
    %133 = arith.mulf %131, %132 : vector<9x32xf32>
    %134 = vector.broadcast %113 : vector<1x32xf32> to vector<9x32xf32>
    %135 = arith.addf %133, %134 : vector<9x32xf32>
    %c0_54 = arith.constant 0 : index
    %c0_55 = arith.constant 0 : index
    %c0_56 = arith.constant 0 : index
    %136 = vector.load %arg12[%c0_54, %c0_55, %c0_56] : memref<1x32x128xf32, #tpu.memory_space<vmem>>, vector<1x32x128xf32>
    %137 = vector.shape_cast %136 : vector<1x32x128xf32> to vector<32x128xf32>
    %cst_57 = arith.constant dense<0.000000e+00> : vector<9x128xf32>
    %138 = tpu.matmul %135, %137, %cst_57 {dimension_numbers = #tpu.dot_dimension_numbers<[1], [0], [0], [1], [0, 0, 1, 1], [], []>, precision = #tpu.contract_precision<fp32>} : vector<9x32xf32>, vector<32x128xf32>, vector<9x128xf32> -> vector<9x128xf32>
    %c0_58 = arith.constant 0 : index
    %c0_59 = arith.constant 0 : index
    %c0_60 = arith.constant 0 : index
    %139 = vector.load %arg13[%c0_58, %c0_59, %c0_60] : memref<1x1x128xf32, #tpu.memory_space<vmem>>, vector<1x1x128xf32>
    %140 = vector.shape_cast %139 : vector<1x1x128xf32> to vector<1x128xf32>
    %141 = vector.broadcast %140 : vector<1x128xf32> to vector<9x128xf32>
    %142 = arith.addf %138, %141 : vector<9x128xf32>
    %cst_61 = arith.constant 0.000000e+00 : f32
    %143 = vector.broadcast %cst_61 : f32 to vector<9x128xf32>
    %144 = arith.maximumf %142, %143 : vector<9x128xf32>
    %c0_62 = arith.constant 0 : index
    %c0_63 = arith.constant 0 : index
    %c0_64 = arith.constant 0 : index
    %145 = vector.load %arg14[%c0_62, %c0_63, %c0_64] : memref<1x128x32xf32, #tpu.memory_space<vmem>>, vector<1x128x32xf32>
    %146 = vector.shape_cast %145 : vector<1x128x32xf32> to vector<128x32xf32>
    %cst_65 = arith.constant dense<0.000000e+00> : vector<9x32xf32>
    %147 = tpu.matmul %144, %146, %cst_65 {dimension_numbers = #tpu.dot_dimension_numbers<[1], [0], [0], [1], [0, 0, 1, 1], [], []>, precision = #tpu.contract_precision<fp32>} : vector<9x128xf32>, vector<128x32xf32>, vector<9x32xf32> -> vector<9x32xf32>
    %c0_66 = arith.constant 0 : index
    %c0_67 = arith.constant 0 : index
    %c0_68 = arith.constant 0 : index
    %148 = vector.load %arg15[%c0_66, %c0_67, %c0_68] : memref<1x1x32xf32, #tpu.memory_space<vmem>>, vector<1x1x32xf32>
    %149 = vector.shape_cast %148 : vector<1x1x32xf32> to vector<1x32xf32>
    %150 = vector.broadcast %149 : vector<1x32xf32> to vector<9x32xf32>
    %151 = arith.addf %147, %150 : vector<9x32xf32>
    %152 = arith.addf %109, %151 : vector<9x32xf32>
    %c0_69 = arith.constant 0 : index
    %c0_70 = arith.constant 0 : index
    %153 = vector.load %arg21[%c0_69, %c0_70] : memref<9x32xf32, #tpu.memory_space<vmem>>, vector<9x32xf32>
    tpu.vector_store %arg21[%c0_69, %c0_70], %152 {strides = array<i32>} : memref<9x32xf32, #tpu.memory_space<vmem>>, vector<9x32xf32>,
    %c1_i32 = arith.constant 1 : i32
    %154 = arith.cmpi eq, %arg1, %c1_i32 : i32
    %155 = arith.extui %154 : i1 to i32
    %c0_i32_71 = arith.constant 0 : i32
    %156 = arith.cmpi ne, %155, %c0_i32_71 : i32
    scf.if %156 {
      %157 = vector.extract_strided_slice %152 {offsets = [0, 0], sizes = [1, 32], strides = [1, 1]} : vector<9x32xf32> to vector<1x32xf32>
      %c0_72 = arith.constant 0 : index
      %c0_73 = arith.constant 0 : index
      %158 = vector.load %arg16[%c0_72, %c0_73] : memref<1x32xf32, #tpu.memory_space<vmem>>, vector<1x32xf32>
      %c0_74 = arith.constant 0 : index
      %c0_75 = arith.constant 0 : index
      %159 = vector.load %arg17[%c0_74, %c0_75] : memref<1x32xf32, #tpu.memory_space<vmem>>, vector<1x32xf32>
      %cst_76 = arith.constant dense<0.000000e+00> : vector<1xf32>
      %160 = vector.multi_reduction <add>, %157, %cst_76 [1] : vector<1x32xf32> to vector<1xf32>
      %161 = vector.shape_cast %160 : vector<1xf32> to vector<1x1xf32>
      %cst_77 = arith.constant 3.200000e+01 : f32
      %162 = vector.broadcast %cst_77 : f32 to vector<1x1xf32>
      %163 = arith.divf %161, %162 : vector<1x1xf32>
      %164 = vector.broadcast %163 : vector<1x1xf32> to vector<1x32xf32>
      %165 = arith.subf %157, %164 : vector<1x32xf32>
      %166 = arith.mulf %165, %165 : vector<1x32xf32>
      %cst_78 = arith.constant dense<0.000000e+00> : vector<1xf32>
      %167 = vector.multi_reduction <add>, %166, %cst_78 [1] : vector<1x32xf32> to vector<1xf32>
      %168 = vector.shape_cast %167 : vector<1xf32> to vector<1x1xf32>
      %cst_79 = arith.constant 3.200000e+01 : f32
      %169 = vector.broadcast %cst_79 : f32 to vector<1x1xf32>
      %170 = arith.divf %168, %169 : vector<1x1xf32>
      %171 = vector.broadcast %163 : vector<1x1xf32> to vector<1x32xf32>
      %172 = arith.subf %157, %171 : vector<1x32xf32>
      %cst_80 = arith.constant 9.99999974E-6 : f32
      %173 = vector.broadcast %cst_80 : f32 to vector<1x1xf32>
      %174 = arith.addf %170, %173 : vector<1x1xf32>
      %175 = math.rsqrt %174 : vector<1x1xf32>
      %176 = vector.broadcast %175 : vector<1x1xf32> to vector<1x32xf32>
      %177 = arith.mulf %172, %176 : vector<1x32xf32>
      %178 = arith.mulf %177, %158 : vector<1x32xf32>
      %179 = arith.addf %178, %159 : vector<1x32xf32>
      %c0_81 = arith.constant 0 : index
      %c0_82 = arith.constant 0 : index
      %180 = vector.load %arg18[%c0_81, %c0_82] : memref<32x8xf32, #tpu.memory_space<vmem>>, vector<32x8xf32>
      %cst_83 = arith.constant dense<0.000000e+00> : vector<1x8xf32>
      %181 = tpu.matmul %179, %180, %cst_83 {dimension_numbers = #tpu.dot_dimension_numbers<[1], [0], [0], [1], [0, 0, 1, 1], [], []>, precision = #tpu.contract_precision<fp32>} : vector<1x32xf32>, vector<32x8xf32>, vector<1x8xf32> -> vector<1x8xf32>
      %c0_84 = arith.constant 0 : index
      %c0_85 = arith.constant 0 : index
      %182 = vector.load %arg19[%c0_84, %c0_85] : memref<1x8xf32, #tpu.memory_space<vmem>>, vector<1x8xf32>
      %183 = arith.addf %181, %182 : vector<1x8xf32>
      %c0_86 = arith.constant 0 : index
      %c0_87 = arith.constant 0 : index
      %c0_88 = arith.constant 0 : index
      %184 = vector.load %arg20[%c0_86, %c0_87, %c0_88] : memref<1x1x8xf32, #tpu.memory_space<vmem>>, vector<1x1x8xf32>
      %185 = vector.shape_cast %184 : vector<1x1x8xf32> to vector<1x8xf32>
      %186 = vector.shape_cast %183 : vector<1x8xf32> to vector<1x1x8xf32>
      tpu.vector_store %arg20[%c0_86, %c0_87, %c0_88], %186 {strides = array<i32>} : memref<1x1x8xf32, #tpu.memory_space<vmem>>, vector<1x1x8xf32>,
    } else {
    }
    return
  }
  func.func @transform_0(%arg0: i32, %arg1: i32) -> (i32, i32, i32) {
    %c0_i32 = arith.constant 0 : i32
    %c0_i32_0 = arith.constant 0 : i32
    %c0_i32_1 = arith.constant 0 : i32
    return %arg0, %c0_i32, %c0_i32_0 : i32, i32, i32
  }
  func.func @transform_1(%arg0: i32, %arg1: i32) -> (i32, i32, i32) {
    %c0_i32 = arith.constant 0 : i32
    %c0_i32_0 = arith.constant 0 : i32
    %c0_i32_1 = arith.constant 0 : i32
    %c0_i32_2 = arith.constant 0 : i32
    return %c0_i32, %c0_i32_0, %c0_i32_1 : i32, i32, i32
  }
  func.func @transform_2(%arg0: i32, %arg1: i32) -> (i32, i32, i32) {
    %c0_i32 = arith.constant 0 : i32
    %c0_i32_0 = arith.constant 0 : i32
    %c0_i32_1 = arith.constant 0 : i32
    %c0_i32_2 = arith.constant 0 : i32
    return %c0_i32, %c0_i32_0, %c0_i32_1 : i32, i32, i32
  }
  func.func @transform_3(%arg0: i32, %arg1: i32) -> (i32, i32, i32) {
    %c0_i32 = arith.constant 0 : i32
    %c0_i32_0 = arith.constant 0 : i32
    %c0_i32_1 = arith.constant 0 : i32
    return %arg1, %c0_i32, %c0_i32_0 : i32, i32, i32
  }
  func.func @transform_4(%arg0: i32, %arg1: i32) -> (i32, i32, i32) {
    %c0_i32 = arith.constant 0 : i32
    %c0_i32_0 = arith.constant 0 : i32
    %c0_i32_1 = arith.constant 0 : i32
    return %arg1, %c0_i32, %c0_i32_0 : i32, i32, i32
  }
  func.func @transform_5(%arg0: i32, %arg1: i32) -> (i32, i32, i32) {
    %c0_i32 = arith.constant 0 : i32
    %c0_i32_0 = arith.constant 0 : i32
    %c0_i32_1 = arith.constant 0 : i32
    return %arg1, %c0_i32, %c0_i32_0 : i32, i32, i32
  }
  func.func @transform_6(%arg0: i32, %arg1: i32) -> (i32, i32, i32) {
    %c0_i32 = arith.constant 0 : i32
    %c0_i32_0 = arith.constant 0 : i32
    %c0_i32_1 = arith.constant 0 : i32
    return %arg1, %c0_i32, %c0_i32_0 : i32, i32, i32
  }
  func.func @transform_7(%arg0: i32, %arg1: i32) -> (i32, i32, i32) {
    %c0_i32 = arith.constant 0 : i32
    %c0_i32_0 = arith.constant 0 : i32
    %c0_i32_1 = arith.constant 0 : i32
    return %arg1, %c0_i32, %c0_i32_0 : i32, i32, i32
  }
  func.func @transform_8(%arg0: i32, %arg1: i32) -> (i32, i32, i32) {
    %c0_i32 = arith.constant 0 : i32
    %c0_i32_0 = arith.constant 0 : i32
    %c0_i32_1 = arith.constant 0 : i32
    return %arg1, %c0_i32, %c0_i32_0 : i32, i32, i32
  }
  func.func @transform_9(%arg0: i32, %arg1: i32) -> (i32, i32, i32) {
    %c0_i32 = arith.constant 0 : i32
    %c0_i32_0 = arith.constant 0 : i32
    %c0_i32_1 = arith.constant 0 : i32
    return %arg1, %c0_i32, %c0_i32_0 : i32, i32, i32
  }
  func.func @transform_10(%arg0: i32, %arg1: i32) -> (i32, i32, i32) {
    %c0_i32 = arith.constant 0 : i32
    %c0_i32_0 = arith.constant 0 : i32
    %c0_i32_1 = arith.constant 0 : i32
    return %arg1, %c0_i32, %c0_i32_0 : i32, i32, i32
  }
  func.func @transform_11(%arg0: i32, %arg1: i32) -> (i32, i32, i32) {
    %c0_i32 = arith.constant 0 : i32
    %c0_i32_0 = arith.constant 0 : i32
    %c0_i32_1 = arith.constant 0 : i32
    return %arg1, %c0_i32, %c0_i32_0 : i32, i32, i32
  }
  func.func @transform_12(%arg0: i32, %arg1: i32) -> (i32, i32, i32) {
    %c0_i32 = arith.constant 0 : i32
    %c0_i32_0 = arith.constant 0 : i32
    %c0_i32_1 = arith.constant 0 : i32
    return %arg1, %c0_i32, %c0_i32_0 : i32, i32, i32
  }
  func.func @transform_13(%arg0: i32, %arg1: i32) -> (i32, i32, i32) {
    %c0_i32 = arith.constant 0 : i32
    %c0_i32_0 = arith.constant 0 : i32
    %c0_i32_1 = arith.constant 0 : i32
    return %arg1, %c0_i32, %c0_i32_0 : i32, i32, i32
  }
  func.func @transform_14(%arg0: i32, %arg1: i32) -> (i32, i32) {
    %c0_i32 = arith.constant 0 : i32
    %c0_i32_0 = arith.constant 0 : i32
    %c0_i32_1 = arith.constant 0 : i32
    return %c0_i32, %c0_i32_0 : i32, i32
  }
  func.func @transform_15(%arg0: i32, %arg1: i32) -> (i32, i32) {
    %c0_i32 = arith.constant 0 : i32
    %c0_i32_0 = arith.constant 0 : i32
    %c0_i32_1 = arith.constant 0 : i32
    return %c0_i32, %c0_i32_0 : i32, i32
  }
  func.func @transform_16(%arg0: i32, %arg1: i32) -> (i32, i32) {
    %c0_i32 = arith.constant 0 : i32
    %c0_i32_0 = arith.constant 0 : i32
    %c0_i32_1 = arith.constant 0 : i32
    return %c0_i32, %c0_i32_0 : i32, i32
  }
  func.func @transform_17(%arg0: i32, %arg1: i32) -> (i32, i32) {
    %c0_i32 = arith.constant 0 : i32
    %c0_i32_0 = arith.constant 0 : i32
    %c0_i32_1 = arith.constant 0 : i32
    return %c0_i32, %c0_i32_0 : i32, i32
  }
  func.func @transform_18(%arg0: i32, %arg1: i32) -> (i32, i32, i32) {
    %c0_i32 = arith.constant 0 : i32
    %c0_i32_0 = arith.constant 0 : i32
    %c0_i32_1 = arith.constant 0 : i32
    return %arg0, %c0_i32, %c0_i32_0 : i32, i32, i32
  }
}

</mosaic_0001>

<bundles_post_ra>
// kernel: forward.1
= control target key start
LH: loop header
LB: loop body
LE: loop exit
PB: predicated region body
PF: predicated region fallthrough
CT: control target
= control target key end

     0   :  { %s5347_s0 = inlined_call_operand.vmem [shape: f32[2,8,32], index: 0, kind: input, shape index: {}]   ;;  %s5348_s1 = inlined_call_operand.vmem [shape: f32[1,1,32], index: 1, kind: input, shape index: {}]   ;;  %s5349_s2 = inlined_call_operand.vmem [shape: f32[1,9,32], index: 2, kind: input, shape index: {}]   ;;  %s5350_s3 = inlined_call_operand.vmem [shape: f32[2,1,32], index: 3, kind: input, shape index: {}]   ;;  %s5351_s4 = inlined_call_operand.vmem [shape: f32[2,1,32], index: 4, kind: input, shape index: {}]   ;;  %s5352_s5 = inlined_call_operand.vmem [shape: f32[2,32,96], index: 5, kind: input, shape index: {}]   ;;  %s5353_s6 = inlined_call_operand.vmem [shape: f32[2,32,32], index: 6, kind: input, shape index: {}]   ;;  %s5354_s7 = inlined_call_operand.vmem [shape: f32[2,1,32], index: 7, kind: input, shape index: {}]   ;;  %s5355_s8 = inlined_call_operand.vmem [shape: f32[2,1,32], index: 8, kind: input, shape index: {}]   ;;  %s5356_s9 = inlined_call_operand.vmem [shape: f32[2,1,32], index: 9, kind: input, shape index: {}]   ;;  %s5357_s10 = inlined_call_operand.vmem [shape: f32[2,32,128], index: 10, kind: input, shape index: {}]   ;;  %s5358_s11 = inlined_call_operand.vmem [shape: f32[2,1,128], index: 11, kind: input, shape index: {}]   ;;  %s5359_s12 = inlined_call_operand.vmem [shape: f32[2,128,32], index: 12, kind: input, shape index: {}]   ;;  %s5360_s13 = inlined_call_operand.vmem [shape: f32[2,1,32], index: 13, kind: input, shape index: {}]   ;;  %s5361_s14 = inlined_call_operand.vmem [shape: f32[1,32], index: 14, kind: input, shape index: {}]   ;;  %s5362_s15 = inlined_call_operand.vmem [shape: f32[1,32], index: 15, kind: input, shape index: {}]   ;;  %s5363_s16 = inlined_call_operand.vmem [shape: f32[32,8], index: 16, kind: input, shape index: {}]   ;;  %s5364_s17 = inlined_call_operand.vmem [shape: f32[1,8], index: 17, kind: input, shape index: {}]   ;;  %s5365_s18 = inlined_call_operand.hbm [shape: f32[2,1,8], index: 18, kind: output, shape index: {}]  }
   0x1   :  { %5381 = sst [smem:[#allocation18_spill]] %s5347_s0 }
   0x2   :  { %5382 = sst [smem:[#allocation19_spill]] %s5348_s1 }
   0x3   :  { %5383 = sst [smem:[#allocation20_spill]] %s5349_s2 }
   0x4   :  { %5384 = sst [smem:[#allocation21_spill]] %s5352_s5 }
   0x5   :  { %5385 = sst [smem:[#allocation22_spill]] %s5353_s6 }
   0x6   :  { %5386 = sst [smem:[#allocation23_spill]] %s5361_s14 }
   0x7   :  { %5387 = sst [smem:[#allocation24_spill]] %s5362_s15 }
   0x8   :  { %5388 = sst [smem:[#allocation25_spill]] %s5363_s16 }
   0x9   :  { %5389 = sst [smem:[#allocation26_spill]] %s5364_s17 }
   0xa   :  { %5390 = sst [smem:[#allocation27_spill]] %s5365_s18 }
   0xb   :  { %23 = vsyncpa [#allocation4], 0 }
   0xc   :  { %25 = vsyncpa [#allocation4 + $0x1], 0  ;;  %s4544_s27 = smov 0   ;;  %s4546_s28 = smov 0  }
   0xd   :  { %s4548_s29 = smov 0   ;;  %s4550_s30 = smov 0  }
   0xe   :  { %s4552_s0 = smov 0   ;;  %s4554_s19 = smov 0  }
   0xf   :  { %s4556_s1 = smov 0   ;;  %s4558_s20 = smov 0  }
  0x10 LB: > { %5391 = sst [smem:[#allocation6_spill]] %s4404_s27  ;;  %s4169_s21 = sadd.s32 4294967295, %s4432_s20   ;;  %s4432_s20 = sphi %s4558_s20, %s31_s20   ;;  %s4428_s1 = sphi %s4556_s1, %s5434_s1   ;;  %s4424_s19 = sphi %s4554_s19, %s5433_s19   ;;  %s4420_s0 = sphi %s4552_s0, %s5432_s0   ;;  %s4416_s30 = sphi %s4550_s30, %s5437_s30   ;;  %s4412_s29 = sphi %s4548_s29, %s5430_s29   ;;  %s4408_s28 = sphi %s4546_s28, %s5436_s28   ;;  %s4404_s27 = sphi %s4544_s27, %s5435_s27  }
  0x11   : > { %5392 = sst [smem:[#allocation7_spill]] %s4412_s29  ;;  %s4170_s22 = sadd.s32 4294967294, %s4432_s20  }
  0x12   : > { %5393 = sst [smem:[#allocation8_spill]] %s4416_s30  ;;  %s40_s2 = sadd.s32 1, %s4424_s19 }
  0x13   : > { %5394 = sst [smem:[#allocation9_spill]] %s4420_s0  ;;  %p41_p0 = scmp.ge.s32.totalorder %s40_s2, 2 }
  0x14   : > { %5395 = sst [smem:[#allocation10_spill]] %s4424_s19  ;;  %s43_s23 = sadd.s32 1, %s4428_s1 }
  0x15   : > { %5396 = sst [smem:[#allocation11_spill]] %s4428_s1  ;;  %p498_p1 = scmp.ne.s32.totalorder %s4412_s29, %s4408_s28 }
  0x16   : > { %5397 = sst [smem:[#allocation12_spill]] %s4432_s20  ;;  %p499_p2 = scmp.eq.s32.totalorder %s4169_s21, 3 }
  0x17   : > { %s5439_s2 = smov (%p41_p0, %s40_s2), 0  ;;  %s5441_s23 = smov (!%p41_p0, %s43_s23), %s4428_s1 }
  0x18   : > { %5398 = sst [smem:[#allocation13_spill]] %s5439_s2  ;;  %p4593_p3 = por %p499_p2, %p498_p1 }
  0x19   : > { %p504_p4 = scmp.ne.s32.totalorder %s4408_s28, %s4404_s27  ;;  %p45_p5 = scmp.ge.s32.totalorder %s5441_s23, 2 }
  0x1a   : > { %s5399_s24 = scalar_select %p4593_p3, 1, 0 }
  0x1b   : > { %p505_p6 = scmp.eq.s32.totalorder %s4170_s22, 3  ;;  %p4173_p7 = scmp.ge.s32.totalorder %s4432_s20, 1 }
  0x1c   : > { %5400 = sst [smem:[#allocation14_spill]] %s5399_s24  ;;  %p622_p8 = scmp.lt.s32.totalorder %s4432_s20, 5 }
  0x1d   : > { %s5443_s23 = smov (%p45_p5, %s5441_s23), 0  ;;  %p4603_p9 = por %p505_p6, %p504_p4 }
  0x1e   : > { %5401 = sst [smem:[#allocation15_spill]] %s5443_s23  ;;  %p623_p10 = pnand %p4173_p7, %p622_p8 }
  0x1f   : > { %s5402_s25 = scalar_select %p4603_p9, 1, 0 }
  0x20   : > { %s485_s26 = ssub.s32 %s4428_s1, %s5443_s23  ;;  %s488_s21 = sadd.s32 1, %s4412_s29 }
  0x21   : > { %5403 = sst [smem:[#allocation16_spill]] %s5402_s25  ;;  %p486_p11 = scmp.eq.s32.totalorder %s485_s26, 0 }
  0x22   : > { %626 = sbr.rel (%p623_p10) target bundleno = 3827 (0xef3), region = 92  ;;  %p715_p12 = scmp.lt.s32.totalorder (!%p623_p10), %s4420_s0, 1 }
  0x23   : > { %s4611_s2 = scalar_select %p486_p11, %s4412_s29, %s488_s21  }
  0x24   : > { %p719_p13 = scmp.lt.s32.totalorder (!%p623_p10), %s4416_s30, 1  ;;  %s5405_s1 = sld [smem:[#allocation18_spill]] (!%p623_p10) }
  0x25   : > { %5404 = sst [smem:[#allocation17_spill]] %s4611_s2  ;;  %s5408_s21 = sand.u32 (!%p623_p10), 1, %s4408_s28  }
  0x26   : > { %s5406_s5 = sld [smem:[#allocation21_spill]] (!%p623_p10)  ;;  %s4675_s18 = scalar_lea.vmem (!%p623_p10), [#allocation3], %s5408_s21 }
  0x27   : > { %s716_s19 = scalar_select %p715_p12, %s4420_s0, 1 }
  0x28   : > { %s4618_s27 = scalar_select %p719_p13, %s4416_s30, 1 }
  0x29   : > { %s4174_s26 = sshll.u32 %s716_s19, 3  ;;  %s5407_s6 = sld [smem:[#allocation22_spill]] }
  0x2a   : > { %s718_s22 = scalar_lea.vmem %s5405_s1, %s4174_s26  ;;  %s4187_s0 = sshll.u32 %s4618_s27, 5 }
  0x2b   : > { %s740_s20 = scalar_lea.vmem %s5355_s8, %s4618_s27  ;;  %s4657_s25 = scalar_lea.vmem %s5357_s10, %s4187_s0 }
  0x2c   : > { %s4635_s14 = scalar_lea.vmem %s5406_s5, %s4187_s0  ;;  %s751_s5 = scalar_lea.vmem %s5358_s11, %s4618_s27 }
  0x2d   : > { %s759_s24 = scalar_lea.vmem %s5360_s13, %s4618_s27  ;;  %s5409_s15 = sld [smem:[#allocation8_spill]] }
  0x2f   : > { %s4640_s30 = scalar_lea.vmem %s5407_s6, %s4187_s0  ;;  %s4190_s6 = sshll.u32 %s4618_s27, 7 }
  0x30   : > { %s4667_s29 = scalar_lea.vmem %s5359_s12, %s4190_s6 }
  0x33   : > { %p4183_p0 = scmp.ne.s32.totalorder %s5409_s15, 0 }
  0x34   : > { %s5410_s16 = sld [smem:[#allocation19_spill]] (!%p4183_p0) }
  0x35   : > { %763 = sbr.rel (%p4183_p0) target bundleno = 65 (0x41), region = 96  ;;  %s5411_s6 = sld [smem:[#allocation20_spill]] (!%p4183_p0) }
  0x3a   : > { %v764_v0 = vld [vmem:[%s718_s22] sm:$0xff]  ;;  %vm771_vm0 = vcmask 1040384   ;;  %vm777_vm1 = vcmask 253952   ;;  %vm775_vm2 = vcmask 261120  }
  0x3b   : > { %v765_v1 = vld [vmem:[%s5410_s16] sm:$0x1]  ;;  %v769_v3 = vrot.slane %v764_v0, 7  ;;  %v767_v4 = vld [vmem:[%s5411_s6 + $0x8] sm:$0x1] }
  0x3c   : > { %v766_v2 = vld [vmem:[%s5411_s6] sm:$0xff] }
  0x3d   : > { %v772_v5 = vsel %vm771_vm0, %v765_v1, %v769_v3  ;;  %v774_v6 = vadd.f32 %v769_v3, %v767_v4 }
  0x3e   : > { %v773_v7 = vadd.f32 %v772_v5, %v766_v2 }
  0x3f   : > { %778 = vst.msk [vmem:[#allocation2 + $0x8] sm:$0x1] %vm777_vm1, %v774_v6 }
  0x40   : > { %776 = vst.msk [vmem:[#allocation2] sm:$0xff] %vm775_vm2, %v773_v7 }
  0x41 PF: > { %vm783_vm3 = vcmask 261120   ;;  %vm787_vm4 = vcmask 253952   ;;  %v4434_v12 = vmov 32.0   ;;  %v849_v29 = vld [vmem:[%s4635_s14 + $0x18] sm:$0xff]  ;;  %v848_v31 = vld [vmem:[%s4635_s14 + $0x10] sm:$0xff]  ;;  %v847_v34 = vld [vmem:[%s4635_s14 + $0x8] sm:$0xff]  ;;  %s5412_s26 = scalar_lea.vmem %s5350_s3, %s4618_s27  ;;  %s5413_s0 = scalar_lea.vmem %s5351_s4, %s4618_s27 }
  0x42   : > { %4292 = vrcp.f32 %v4434_v12  ;;  %v4704_v30 = vand.u32 4294901760, %v849_v29  ;;  %v4710_v33 = vand.u32 4294901760, %v848_v31  ;;  %v4719_v37 = vand.u32 4294901760, %v847_v34  ;;  %v846_v38 = vld [vmem:[%s4635_s14] sm:$0xff]  ;;  %s4435_s17 = smov 96   ;;  %s4436_s16 = smov 64  }
  0x43   : > { %v4732_v42 = vand.u32 4294901760, %v846_v38  ;;  %v4285_v3 = vld [vmem:[%s5412_s26] ss:$0 sm:$0xff]  ;;  %vm1078_vm12 = vcmask 64512   ;;  %vm1279_vm13 = vcmask 72704   ;;  %vm1283_vm14 = vcmask 65536  }
  0x44   : > { %v4708_v32 = vsub.f32 %v849_v29, %v4704_v30  ;;  %869 = vmatpush.msra.mxu0 %v4704_v30  ;;  %4195 = vmatpush.msra.mxu3 %v4704_v30  ;;  %v4717_v36 = vsub.f32 %v848_v31, %v4710_v33  ;;  %v4730_v41 = vsub.f32 %v847_v34, %v4719_v37  ;;  %v4286_v7 = vld [vmem:[%s5413_s0] ss:$0 sm:$0xff]  ;;  %s4437_s19 = smov 88   ;;  %s4438_s1 = smov 120   ;;  %vm1314_vm15 = vcmask 1040384  }
  0x45   : > { %v4742_v46 = vsub.f32 %v846_v38, %v4732_v42  ;;  %s4439_s23 = smov 56   ;;  %s4440_s2 = smov 80   ;;  %vm2832_vm0 = vcmask 130048   ;;  %vm2835_vm1 = vcmask 195584  }
  0x46   : > { %v780_v10 = vld [vmem:[#allocation2 + $0x8] sm:$0x1]  ;;  %v907_v35 = vand.u32 4294901760, %v4708_v32  ;;  %871 = vmatpush.msra.mxu0 %v4710_v33  ;;  %4191 = vmatpush.msra.mxu2 %v4708_v32  ;;  %v913_v40 = vand.u32 4294901760, %v4717_v36  ;;  %v919_v45 = vand.u32 4294901760, %v4730_v41  ;;  %s4441_s14 = smov 112  }
  0x47   : > { %v779_v8 = vld [vmem:[#allocation2] sm:$0xff]  ;;  %v788_v11 = vsel %vm787_vm4, %v780_v10, 0.0  ;;  %4196 = vmatpush.msra.mxu3 %v4710_v33  ;;  %v925_v49 = vand.u32 4294901760, %v4742_v46  ;;  %s4442_s22 = smov 48   ;;  %s4443_s26 = smov 72  }
  0x48   : > { %v784_v9 = vsel %vm783_vm3, %v779_v8, 0.0  ;;  %v4293_v13 = vpop.eup %4292  ;;  %v908_v39 = vsub.f32 %v4708_v32, %v907_v35  ;;  %873 = vmatpush.msra.mxu0 %v4719_v37  ;;  %4192 = vmatpush.msra.mxu2 %v4717_v36  ;;  %v914_v44 = vsub.f32 %v4717_v36, %v913_v40  ;;  %v920_v48 = vsub.f32 %v4730_v41, %v919_v45  ;;  %s4444_s21 = smov 104   ;;  %s4445_s15 = smov 40  }
  0x49   : > { %785 = vadd.xlane.f32.xlu0 %v784_v9  ;;  %v792_v14 = vmul.f32 32.0, %v4293_v13  ;;  %vm796_vm5 = vweird.f32 %v4293_v13  ;;  %4197 = vmatpush.msra.mxu3 %v4719_v37  ;;  %v926_v51 = vsub.f32 %v4742_v46, %v925_v49  ;;  %s4446_s0 = smov 16  }
  0x4a   : > { %v909_v43 = vand.u32 4294901760, %v908_v39  ;;  %875 = vmatpush.msra.mxu0 %v4732_v42  ;;  %4193 = vmatpush.msra.mxu2 %v4730_v41  ;;  %v915_v47 = vand.u32 4294901760, %v914_v44  ;;  %v921_v50 = vand.u32 4294901760, %v920_v48 }
  0x4b   : > { %v793_v15 = vsub.f32 1.0, %v792_v14  ;;  %4198 = vmatpush.msra.mxu3 %v4732_v42  ;;  %v927_v52 = vand.u32 4294901760, %v926_v51 }
  0x4c   : > { %952 = vmatpush.msrb.mxu0 %v4708_v32  ;;  %910 = vmatpush.msra.mxu1 %v909_v43 }
  0x4d   : > { %v794_v16 = vmul.f32 %v4293_v13, %v793_v15  ;;  %4194 = vmatpush.msra.mxu2 %v4742_v46 }
  0x4e   : > { %955 = vmatpush.msrb.mxu0 %v4717_v36  ;;  %916 = vmatpush.msra.mxu1 %v915_v47 }
  0x4f   : > { %v795_v17 = vadd.f32 %v4293_v13, %v794_v16 }
  0x50   : > { %958 = vmatpush.msrb.mxu0 %v4730_v41  ;;  %922 = vmatpush.msra.mxu1 %v921_v50 }
  0x51   : > { %789 = vadd.xlane.f32.xlu0 %v788_v11  ;;  %v4689_v18 = vsel %vm796_vm5, %v4293_v13, %v795_v17 }
  0x52   : > { %961 = vmatpush.msrb.mxu0 %v4742_v46  ;;  %928 = vmatpush.msra.mxu1 %v927_v52 }
  0x54   : > { %986 = vmatpush.msrb.mxu1 %v4704_v30 }
  0x56   : > { %988 = vmatpush.msrb.mxu1 %v4710_v33 }
  0x58   : > { %990 = vmatpush.msrb.mxu1 %v4719_v37 }
  0x5a   : > { %992 = vmatpush.msrb.mxu1 %v4732_v42 }
  0xbc   : > { %v786_v19 = vpop.xlane.xlu0 %785 }
  0xbd   : > { %v798_v20 = vmul.f32 %v4689_v18, %v786_v19 }
  0xbf   : > { %v4692_v21 = vsub.f32 %v779_v8, %v798_v20 }
  0xc1   : > { %v802_v22 = vmul.f32 %v4692_v21, %v4692_v21 }
  0xc3   : > { %v804_v23 = vsel %vm783_vm3, %v802_v22, 0.0 }
  0xc4   : > { %805 = vadd.xlane.f32.xlu1 %v804_v23  ;;  %v790_v24 = vpop.xlane.xlu0 %789 }
  0xc5   : > { %v799_v25 = vmul.f32 %v4689_v18, %v790_v24 }
  0xc7   : > { %v4698_v26 = vsub.f32 %v780_v10, %v799_v25 }
  0xc9   : > { %v803_v27 = vmul.f32 %v4698_v26, %v4698_v26 }
  0xcb   : > { %v807_v28 = vsel %vm787_vm4, %v803_v27, 0.0 }
  0xcc   : > { %808 = vadd.xlane.f32.xlu1 %v807_v28 }
 0x137   : > { %v806_v53 = vpop.xlane.xlu1 %805 }
 0x138   : > { %v810_v54 = vmul.f32 %v806_v53, %v4689_v18 }
 0x13a   : > { %v812_v55 = vadd.f32 1e-05, %v810_v54 }
 0x13c   : > { %4294 = vrsqrt.f32 %v812_v55  ;;  %vm820_vm7 = vweird.f32 %v812_v55 }
 0x13f   : > { %v809_v56 = vpop.xlane.xlu1 %808 }
 0x140   : > { %v811_v57 = vmul.f32 %v809_v56, %v4689_v18 }
 0x142   : > { %v4295_v58 = vpop.eup %4294  ;;  %v813_v59 = vadd.f32 1e-05, %v811_v57 }
 0x143   : > { %v815_v60 = vmul.f32 %v4295_v58, %v812_v55  ;;  %vm821_vm6 = vweird.f32 %v4295_v58 }
 0x144   : > { %4296 = vrsqrt.f32 %v813_v59  ;;  %vm822_vm8 = vmor %vm820_vm7, %vm821_vm6  ;;  %vm830_vm10 = vweird.f32 %v813_v59 }
 0x145   : > { %v816_v61 = vmul.f32 %v4295_v58, %v815_v60 }
 0x147   : > { %v817_v62 = vmul.f32 0.5, %v816_v61 }
 0x149   : > { %v818_v63 = vsub.f32 1.5, %v817_v62 }
 0x14a   : > { %v4297_v0 = vpop.eup %4296 }
 0x14b   : > { %v819_v1 = vmul.f32 %v4295_v58, %v818_v63  ;;  %v825_v2 = vmul.f32 %v4297_v0, %v813_v59  ;;  %vm831_vm9 = vweird.f32 %v4297_v0 }
 0x14c   : > { %vm832_vm11 = vmor %vm830_vm10, %vm831_vm9 }
 0x14d   : > { %v823_v4 = vsel %vm822_vm8, %v4295_v58, %v819_v1  ;;  %v826_v5 = vmul.f32 %v4297_v0, %v825_v2 }
 0x14e   : > { %v834_v6 = vmul.f32 %v823_v4, %v4692_v21 }
 0x14f   : > { %v827_v8 = vmul.f32 0.5, %v826_v5 }
 0x150   : > { %v839_v9 = vmul.f32 %v4285_v3, %v834_v6 }
 0x151   : > { %v828_v10 = vsub.f32 1.5, %v827_v8 }
 0x152   : > { %v844_v11 = vadd.f32 %v4286_v7, %v839_v9 }
 0x153   : > { %v829_v12 = vmul.f32 %v4297_v0, %v828_v10 }
 0x154   : > { %v851_v13 = vsel %vm783_vm3, %v844_v11, 0 }
 0x155   : > { %v833_v14 = vsel %vm832_vm11, %v4297_v0, %v829_v12  ;;  %v876_v15 = vand.u32 4294901760, %v851_v13 }
 0x156   : > { %v835_v16 = vmul.f32 %v833_v14, %v4698_v26 }
 0x157   : > { %930 = vmatmul.f32.vlgmr.msra.gmra.mxu1 %v876_v15  ;;  %v877_v17 = vsub.f32 %v851_v13, %v876_v15 }
 0x158   : > { %v840_v19 = vmul.f32 %v4285_v3, %v835_v16  ;;  %1056 = vmatpush.msra.mxu1 %v4704_v30 }
 0x159   : > { %v878_v20 = vand.u32 4294901760, %v877_v17 }
 0x15a   : > { %v845_v21 = vadd.f32 %v4286_v7, %v840_v19  ;;  %1058 = vmatpush.msra.mxu1 %v4710_v33 }
 0x15b   : > { %v879_v22 = vsub.f32 %v877_v17, %v878_v20 }
 0x15c   : > { %v854_v23 = vsel %vm783_vm3, %v845_v21, 0  ;;  %1060 = vmatpush.msra.mxu1 %v4719_v37 }
 0x15d   : > { %v880_v24 = vand.u32 4294901760, %v879_v22  ;;  %v884_v25 = vand.u32 4294901760, %v854_v23 }
 0x15e   : > { %1062 = vmatpush.msra.mxu1 %v4732_v42 }
 0x15f   : > { %881 = vmatmul.f32.vlgmr.msra.gmra.mxu0 %v880_v24  ;;  %934 = vmatmul.f32.gmra.mxu1 %v884_v25  ;;  %v885_v26 = vsub.f32 %v854_v23, %v884_v25 }
 0x160   : > { %1021 = vmatpush.msra.mxu0 %v907_v35 }
 0x161   : > { %969 = vmatmul.f32.vlgmr.msra.gmra.mxu2 %v885_v26  ;;  %v886_v27 = vand.u32 4294901760, %v885_v26 }
 0x162   : > { %1025 = vmatpush.msra.mxu0 %v913_v40 }
 0x163   : > { %1002 = vmatmul.f32.vlgmr.msra.gmra.mxu3 %v886_v27  ;;  %v887_v28 = vsub.f32 %v885_v26, %v886_v27 }
 0x164   : > { %1029 = vmatpush.msra.mxu0 %v919_v45 }
 0x165   : > { %v888_v29 = vand.u32 4294901760, %v887_v28 }
 0x166   : > { %1033 = vmatpush.msra.mxu0 %v925_v49 }
 0x167   : > { %889 = vmatmul.f32.gmra.mxu0 %v888_v29  ;;  %996 = vmatmul.f32.vlgmr.msrb.gmra.mxu1 %v878_v20 }
 0x16f   : > { %964 = vmatmul.f32.vlgmr.msrb.gmra.mxu0 %v877_v17  ;;  %1064 = vmatmul.f32.vlgmr.msra.gmra.mxu1 %v876_v15 }
 0x177   : > { %1035 = vmatmul.f32.vlgmr.msra.gmra.mxu0 %v876_v15  ;;  %1068 = vmatmul.f32.gmra.mxu1 %v884_v25 }
 0x17f   : > { %1039 = vmatmul.f32.gmra.mxu0 %v884_v25 }
 0x1d4   : > { %v931_v30 = vpop.f32.mrf.mxu1 }
 0x1dc   : > { %v882_v31 = vpop.f32.mrf.mxu0  ;;  %v935_v32 = vpop.f32.mrf.mxu1 }
 0x1dd   : > { %v932_v42 = vadd.f32 %v931_v30, %v882_v31 }
 0x1e4   : > { %v890_v33 = vpop.f32.mrf.mxu0  ;;  %v997_v34 = vpop.f32.mrf.mxu1 }
 0x1e5   : > { %v936_v36 = vadd.f32 %v935_v32, %v890_v33  ;;  %v970_v39 = vpop.f32.mrf.mxu2 }
 0x1e6   : > { %v1003_v41 = vpop.f32.mrf.mxu3 }
 0x1e7   : > { %v971_v40 = vadd.f32 %v970_v39, %v936_v36 }
 0x1e9   : > { %v1004_v43 = vadd.f32 %v1003_v41, %v971_v40 }
 0x1ec   : > { %v965_v35 = vpop.f32.mrf.mxu0  ;;  %v1065_v37 = vpop.f32.mrf.mxu1 }
 0x1ed   : > { %v966_v45 = vadd.f32 %v965_v35, %v932_v42 }
 0x1ef   : > { %v998_v49 = vadd.f32 %v997_v34, %v966_v45 }
 0x1f4   : > { %v1036_v38 = vpop.f32.mrf.mxu0  ;;  %v1069_v47 = vpop.f32.mrf.mxu1 }
 0x1f5   : > { %v1037_v50 = vadd.f32 %v1036_v38, %v998_v49 }
 0x1f7   : > { %v4794_v51 = vadd.f32 %v1065_v37, %v1037_v50 }
 0x1f9   : > { %v1079_v52 = vsel %vm1078_vm12, %v4794_v51, 0 }
 0x1fa   : > { %v1105_v53 = vand.u32 4294901760, %v1079_v52 }
 0x1fc   : > { %v1040_v44 = vpop.f32.mrf.mxu0  ;;  %v1106_v56 = vsub.f32 %v1079_v52, %v1105_v53 }
 0x1fd   : > { %v1041_v46 = vadd.f32 %v1040_v44, %v1004_v43 }
 0x1fe   : > { %v1107_v60 = vand.u32 4294901760, %v1106_v56 }
 0x1ff   : > { %v4791_v48 = vadd.f32 %v1069_v47, %v1041_v46 }
 0x200   : > { %v1108_v2 = vsub.f32 %v1106_v56, %v1107_v60 }
 0x201   : > { %1076 = vrot.lane.b32.xlu2 %v4791_v48, %s4435_s17  ;;  %v1081_v58 = vsel %vm1078_vm12, %v4791_v48, 0 }
 0x202   : > { %v1113_v61 = vand.u32 4294901760, %v1081_v58  ;;  %v1109_v7 = vand.u32 4294901760, %v1108_v2 }
 0x204   : > { %v1114_v3 = vsub.f32 %v1081_v58, %v1113_v61 }
 0x206   : > { %v1115_v8 = vand.u32 4294901760, %v1114_v3 }
 0x208   : > { %v1116_v11 = vsub.f32 %v1114_v3, %v1115_v8 }
 0x209   : > { %1074 = vrot.lane.b32.xlu2 %v4794_v51, %s4435_s17  ;;  %s4447_s17 = smov 8  }
 0x20a   : > { %v1117_v13 = vand.u32 4294901760, %v1116_v11 }
 0x25b   : > { %v1077_v54 = vpop.permute.xlu2 %1076 }
 0x25c   : > { %v1085_v55 = vsel %vm1078_vm12, %v1077_v54, 0 }
 0x25d   : > { %v1101_v57 = vand.u32 4294901760, %v1085_v55 }
 0x25f   : > { %v1137_v59 = vsub.f32 %v1085_v55, %v1101_v57  ;;  %1102 = vmatpush.xpose.msrb.mxu2 %v1101_v57  ;;  %1203 = vmatpush.xpose.msrb.mxu1 %v1101_v57 }
 0x261   : > { %1173 = vmatpush.xpose.msrb.mxu0 %v1137_v59  ;;  %v1138_v62 = vand.u32 4294901760, %v1137_v59 }
 0x263   : > { %v1075_v63 = vpop.permute.xlu2 %1074  ;;  %v1139_v0 = vsub.f32 %v1137_v59, %v1138_v62 }
 0x264   : > { %v1083_v1 = vsel %vm1078_vm12, %v1075_v63, 0 }
 0x265   : > { %v1103_v4 = vand.u32 4294901760, %v1083_v1  ;;  %v1140_v5 = vand.u32 4294901760, %v1139_v0 }
 0x267   : > { %v1143_v6 = vsub.f32 %v1083_v1, %v1103_v4  ;;  %1104 = vmatpush.xpose.msrb.mxu2 %v1103_v4  ;;  %1141 = vmatpush.xpose.msrb.mxu3 %v1140_v5 }
 0x268   : > { %1205 = vmatpush.xpose.msrb.mxu1 %v1103_v4 }
 0x269   : > { %1176 = vmatpush.xpose.msrb.mxu0 %v1143_v6  ;;  %v1144_v9 = vand.u32 4294901760, %v1143_v6 }
 0x26a   : > { %1110 = vmatmul.f32.vlgmr.msrb.gmra.mxu2 %v1109_v7 }
 0x26b   : > { %1236 = vmatpush.xpose.msra.mxu2 %v1138_v62  ;;  %1209 = vmatmul.f32.vlgmr.msrb.gmra.mxu1 %v1107_v60  ;;  %v1145_v10 = vsub.f32 %v1143_v6, %v1144_v9 }
 0x26c   : > { %1179 = vmatmul.f32.vlgmr.msrb.gmra.mxu0 %v1106_v56 }
 0x26d   : > { %v1146_v12 = vand.u32 4294901760, %v1145_v10 }
 0x26f   : > { %1240 = vmatpush.xpose.msra.mxu2 %v1144_v9  ;;  %1147 = vmatpush.xpose.msrb.mxu3 %v1146_v12 }
 0x272   : > { %1118 = vmatmul.f32.gmra.mxu2 %v1117_v13  ;;  %1149 = vmatmul.f32.vlgmr.msrb.gmra.mxu3 %v1105_v53 }
 0x273   : > { %1265 = vmatpush.xpose.msra.mxu3 %v1101_v57  ;;  %1215 = vmatmul.f32.gmra.mxu1 %v1115_v8 }
 0x274   : > { %1184 = vmatmul.f32.gmra.mxu0 %v1114_v3 }
 0x277   : > { %1267 = vmatpush.xpose.msra.mxu3 %v1103_v4 }
 0x27a   : > { %1153 = vmatmul.f32.gmra.mxu3 %v1113_v61  ;;  %1242 = vmatmul.f32.vlgmr.msra.gmra.mxu2 %v1105_v53 }
 0x282   : > { %1246 = vmatmul.f32.gmra.mxu2 %v1113_v61  ;;  %1269 = vmatmul.f32.vlgmr.msra.gmra.mxu3 %v1105_v53 }
 0x28a   : > { %1273 = vmatmul.f32.gmra.mxu3 %v1113_v61 }
 0x2e8   : > { %v1210_v22 = vpop.f32.mrf.mxu1 }
 0x2e9   : > { %v1180_v19 = vpop.f32.mrf.mxu0 }
 0x2ed   : > { %v1111_v14 = vpop.f32.mrf.mxu2 }
 0x2f0   : > { %v1216_v32 = vpop.f32.mrf.mxu1 }
 0x2f1   : > { %v1185_v27 = vpop.f32.mrf.mxu0 }
 0x2f5   : > { %v1119_v15 = vpop.f32.mrf.mxu2  ;;  %v1150_v16 = vpop.f32.mrf.mxu3 }
 0x2f6   : > { %v1151_v17 = vadd.f32 %v1150_v16, %v1111_v14 }
 0x2f8   : > { %v1181_v21 = vadd.f32 %v1180_v19, %v1151_v17 }
 0x2fa   : > { %v1211_v25 = vadd.f32 %v1210_v22, %v1181_v21 }
 0x2fd   : > { %v1154_v20 = vpop.f32.mrf.mxu3  ;;  %v1243_v23 = vpop.f32.mrf.mxu2 }
 0x2fe   : > { %v1155_v24 = vadd.f32 %v1154_v20, %v1119_v15  ;;  %v1244_v26 = vadd.f32 %v1243_v23, %v1211_v25 }
 0x300   : > { %v1186_v29 = vadd.f32 %v1185_v27, %v1155_v24 }
 0x302   : > { %v1217_v34 = vadd.f32 %v1216_v32, %v1186_v29 }
 0x305   : > { %v1270_v28 = vpop.f32.mrf.mxu3  ;;  %v1247_v33 = vpop.f32.mrf.mxu2 }
 0x306   : > { %v1271_v30 = vadd.f32 %v1270_v28, %v1244_v26  ;;  %v1248_v36 = vadd.f32 %v1247_v33, %v1217_v34 }
 0x308   : > { %v1277_v31 = vmul.f32 0.35355338, %v1271_v30 }
 0x30a   : > { %v1280_v35 = vsel %vm1279_vm13, %v1277_v31, -inf }
 0x30b   : > { %1281 = vmax.xlane.f32.xlu0 %v1280_v35 }
 0x30d   : > { %v1274_v37 = vpop.f32.mrf.mxu3 }
 0x30e   : > { %v1275_v38 = vadd.f32 %v1274_v37, %v1248_v36 }
 0x310   : > { %v1278_v39 = vmul.f32 0.35355338, %v1275_v38 }
 0x312   : > { %v1284_v40 = vsel %vm1283_vm14, %v1278_v39, -inf }
 0x313   : > { %1285 = vmax.xlane.f32.xlu1 %v1284_v40 }
 0x31f   : > { %1303 = vrot.lane.b32.xlu0 %v4794_v51, %s4436_s16 }
 0x32c   : > { %1305 = vrot.lane.b32.xlu1 %v4791_v48, %s4436_s16  ;;  %s4448_s16 = smov 24  }
 0x334   : > { %1513 = vrot.lane.b32.xlu1 %v4791_v48, %s4437_s19 }
 0x33c   : > { %1507 = vrot.lane.b32.xlu1 %v4794_v51, %s4438_s1 }
 0x37e   : > { %v1282_v41 = vpop.xlane.xlu0 %1281 }
 0x37f   : > { %v1287_v42 = vsub.f32 %v1277_v31, %v1282_v41 }
 0x381   : > { %v1289_v43 = vmul.f32 1.442695, %v1287_v42 }
 0x383   : > { %4298 = vpow2.f32 %v1289_v43 }
 0x386   : > { %v1286_v44 = vpop.xlane.xlu1 %1285 }
 0x387   : > { %v1288_v45 = vsub.f32 %v1278_v39, %v1286_v44 }
 0x389   : > { %v4299_v46 = vpop.eup %4298  ;;  %v1291_v47 = vmul.f32 1.442695, %v1288_v45 }
 0x38a   : > { %v1293_v49 = vsel %vm1279_vm13, %v4299_v46, 0.0 }
 0x38b   : > { %4300 = vpow2.f32 %v1291_v47  ;;  %1294 = vadd.xlane.f32.xlu2 %v1293_v49 }
 0x391   : > { %v4301_v50 = vpop.eup %4300  ;;  %v1304_v53 = vpop.permute.xlu0 %1303 }
 0x392   : > { %v1296_v52 = vsel %vm1283_vm14, %v4301_v50, 0.0  ;;  %v1333_v54 = vand.u32 4294901760, %v1304_v53 }
 0x393   : > { %1297 = vadd.xlane.f32.xlu0 %v1296_v52 }
 0x394   : > { %v1373_v55 = vsub.f32 %v1304_v53, %v1333_v54 }
 0x396   : > { %v1374_v60 = vand.u32 4294901760, %v1373_v55 }
 0x398   : > { %v1375_v0 = vsub.f32 %v1373_v55, %v1374_v60 }
 0x39a   : > { %v1376_v5 = vand.u32 4294901760, %v1375_v0 }
 0x39e   : > { %v1306_v56 = vpop.permute.xlu1 %1305 }
 0x39f   : > { %v1315_v57 = vsel %vm1314_vm15, %v1306_v56, 0 }
 0x3a0   : > { %v1331_v58 = vand.u32 4294901760, %v1315_v57 }
 0x3a2   : > { %v1367_v59 = vsub.f32 %v1315_v57, %v1331_v58  ;;  %1332 = vmatpush.msra.mxu0 %v1331_v58  ;;  %1433 = vmatpush.msrb.mxu3 %v1331_v58 }
 0x3a3   : > { %1509 = vrot.lane.b32.xlu2 %v4791_v48, %s4438_s1  ;;  %s5414_s1 = scalar_lea.vmem %s5354_s7, %s4618_s27 }
 0x3a4   : > { %v1368_v61 = vand.u32 4294901760, %v1367_v59  ;;  %1334 = vmatpush.msra.mxu0 %v1333_v54  ;;  %1403 = vmatpush.msrb.mxu2 %v1367_v59 }
 0x3a5   : > { %1435 = vmatpush.msrb.mxu3 %v1333_v54 }
 0x3a6   : > { %v1369_v62 = vsub.f32 %v1367_v59, %v1368_v61  ;;  %1406 = vmatpush.msrb.mxu2 %v1373_v55  ;;  %1466 = vmatpush.msrb.mxu0 %v1368_v61  ;;  %v1514_v63 = vpop.permute.xlu1 %1513 }
 0x3a7   : > { %v1521_v1 = vsel %vm1078_vm12, %v1514_v63, 0  ;;  %1511 = vrot.lane.b32.xlu0 %v4794_v51, %s4437_s19 }
 0x3a8   : > { %v1370_v2 = vand.u32 4294901760, %v1369_v62  ;;  %v4817_v3 = vand.u32 4294901760, %v1521_v1  ;;  %1470 = vmatpush.msrb.mxu0 %v1374_v60 }
 0x3aa   : > { %v1573_v4 = vsub.f32 %v1521_v1, %v4817_v3  ;;  %1371 = vmatpush.msra.mxu1 %v1370_v2  ;;  %1538 = vmatpush.xpose.msra.mxu2 %v4817_v3 }
 0x3ac   : > { %v1574_v6 = vand.u32 4294901760, %v1573_v4  ;;  %1377 = vmatpush.msra.mxu1 %v1376_v5 }
 0x3ae   : > { %1495 = vmatpush.msrb.mxu1 %v1331_v58  ;;  %v1575_v7 = vsub.f32 %v1573_v4, %v1574_v6  ;;  %v1508_v13 = vpop.permute.xlu1 %1507 }
 0x3af   : > { %v1515_v16 = vsel %vm1078_vm12, %v1508_v13, 0 }
 0x3b0   : > { %1497 = vmatpush.msrb.mxu1 %v1333_v54  ;;  %v1576_v8 = vand.u32 4294901760, %v1575_v7  ;;  %v1541_v21 = vand.u32 4294901760, %v1515_v16 }
 0x3b2   : > { %1577 = vmatpush.xpose.msra.mxu3 %v1576_v8  ;;  %v1542_v28 = vsub.f32 %v1515_v16, %v1541_v21 }
 0x3b4   : > { %v1543_v32 = vand.u32 4294901760, %v1542_v28 }
 0x3b6   : > { %v1544_v37 = vsub.f32 %v1542_v28, %v1543_v32 }
 0x3b8   : > { %v1545_v42 = vand.u32 4294901760, %v1544_v37 }
 0x3fe   : > { %v1295_v9 = vpop.xlane.xlu2 %1294 }
 0x3ff   : > { %4302 = vrcp.f32 %v1295_v9 }
 0x405   : > { %v4303_v10 = vpop.eup %4302 }
 0x406   : > { %v1301_v11 = vmul.f32 %v4303_v10, %v4299_v46  ;;  %v1298_v12 = vpop.xlane.xlu0 %1297  ;;  %v1510_v24 = vpop.permute.xlu2 %1509 }
 0x407   : > { %4304 = vrcp.f32 %v1298_v12  ;;  %v1517_v29 = vsel %vm1078_vm12, %v1510_v24, 0 }
 0x408   : > { %v1309_v14 = vsel %vm1279_vm13, %v1301_v11, 0  ;;  %v1549_v33 = vand.u32 4294901760, %v1517_v29 }
 0x409   : > { %v1335_v15 = vand.u32 4294901760, %v1309_v14 }
 0x40a   : > { %v1550_v38 = vsub.f32 %v1517_v29, %v1549_v33 }
 0x40b   : > { %1379 = vmatmul.f32.vlgmr.msra.gmra.mxu1 %v1335_v15  ;;  %v1336_v17 = vsub.f32 %v1309_v14, %v1335_v15 }
 0x40c   : > { %1639 = vmatpush.xpose.msra.mxu1 %v4817_v3  ;;  %v1551_v43 = vand.u32 4294901760, %v1550_v38 }
 0x40d   : > { %v4305_v19 = vpop.eup %4304  ;;  %1409 = vmatmul.f32.vlgmr.msrb.gmra.mxu2 %v1336_v17  ;;  %v1337_v20 = vand.u32 4294901760, %v1336_v17 }
 0x40e   : > { %v1302_v22 = vmul.f32 %v4305_v19, %v4301_v50  ;;  %v1552_v46 = vsub.f32 %v1550_v38, %v1551_v43 }
 0x40f   : > { %1439 = vmatmul.f32.vlgmr.msrb.gmra.mxu3 %v1337_v20  ;;  %v1338_v23 = vsub.f32 %v1336_v17, %v1337_v20 }
 0x410   : > { %v1312_v25 = vsel %vm1279_vm13, %v1302_v22, 0  ;;  %v1553_v49 = vand.u32 4294901760, %v1552_v46 }
 0x411   : > { %v1339_v26 = vand.u32 4294901760, %v1338_v23  ;;  %v1343_v27 = vand.u32 4294901760, %v1312_v25 }
 0x413   : > { %1340 = vmatmul.f32.vlgmr.msra.gmra.mxu0 %v1339_v26  ;;  %1383 = vmatmul.f32.gmra.mxu1 %v1343_v27  ;;  %v1344_v30 = vsub.f32 %v1312_v25, %v1343_v27 }
 0x414   : > { %1609 = vmatpush.xpose.msra.mxu0 %v1573_v4 }
 0x415   : > { %1414 = vmatmul.f32.gmra.mxu2 %v1344_v30  ;;  %v1345_v31 = vand.u32 4294901760, %v1344_v30 }
 0x417   : > { %1445 = vmatmul.f32.gmra.mxu3 %v1345_v31  ;;  %v1346_v34 = vsub.f32 %v1344_v30, %v1345_v31 }
 0x419   : > { %v1512_v35 = vpop.permute.xlu0 %1511  ;;  %v1347_v36 = vand.u32 4294901760, %v1346_v34 }
 0x41a   : > { %v1519_v39 = vsel %vm1078_vm12, %v1512_v35, 0 }
 0x41b   : > { %v1539_v40 = vand.u32 4294901760, %v1519_v39  ;;  %1348 = vmatmul.f32.gmra.mxu0 %v1347_v36  ;;  %1499 = vmatmul.f32.vlgmr.msrb.gmra.mxu1 %v1335_v15 }
 0x41d   : > { %v1579_v41 = vsub.f32 %v1519_v39, %v1539_v40  ;;  %1540 = vmatpush.xpose.msra.mxu2 %v1539_v40  ;;  %1641 = vmatpush.xpose.msra.mxu1 %v1539_v40 }
 0x41f   : > { %1612 = vmatpush.xpose.msra.mxu0 %v1579_v41  ;;  %v1580_v44 = vand.u32 4294901760, %v1579_v41 }
 0x420   : > { %1546 = vmatmul.f32.vlgmr.msra.gmra.mxu2 %v1545_v42 }
 0x421   : > { %1672 = vmatpush.xpose.msrb.mxu2 %v1574_v6  ;;  %v1581_v45 = vsub.f32 %v1579_v41, %v1580_v44 }
 0x423   : > { %1472 = vmatmul.f32.vlgmr.msrb.gmra.mxu0 %v1335_v15  ;;  %1503 = vmatmul.f32.gmra.mxu1 %v1343_v27  ;;  %v1582_v47 = vand.u32 4294901760, %v1581_v45 }
 0x425   : > { %1676 = vmatpush.xpose.msrb.mxu2 %v1580_v44  ;;  %1583 = vmatpush.xpose.msra.mxu3 %v1582_v47 }
 0x428   : > { %1554 = vmatmul.f32.gmra.mxu2 %v1553_v49  ;;  %1585 = vmatmul.f32.vlgmr.msra.gmra.mxu3 %v1541_v21 }
 0x429   : > { %1701 = vmatpush.xpose.msrb.mxu3 %v4817_v3 }
 0x42b   : > { %1476 = vmatmul.f32.gmra.mxu0 %v1343_v27  ;;  %1645 = vmatmul.f32.vlgmr.msra.gmra.mxu1 %v1543_v32 }
 0x42d   : > { %1703 = vmatpush.xpose.msrb.mxu3 %v1539_v40 }
 0x430   : > { %1589 = vmatmul.f32.gmra.mxu3 %v1549_v33  ;;  %1678 = vmatmul.f32.vlgmr.msrb.gmra.mxu2 %v1541_v21 }
 0x433   : > { %1615 = vmatmul.f32.vlgmr.msra.gmra.mxu0 %v1542_v28  ;;  %1651 = vmatmul.f32.gmra.mxu1 %v1551_v43 }
 0x438   : > { %1682 = vmatmul.f32.gmra.mxu2 %v1549_v33  ;;  %1705 = vmatmul.f32.vlgmr.msrb.gmra.mxu3 %v1541_v21 }
 0x43b   : > { %1620 = vmatmul.f32.gmra.mxu0 %v1550_v38 }
 0x440   : > { %1709 = vmatmul.f32.gmra.mxu3 %v1549_v33 }
 0x488   : > { %v4828_v50 = vpop.f32.mrf.mxu1 }
 0x490   : > { %v4830_v52 = vpop.f32.mrf.mxu0  ;;  %v4832_v53 = vpop.f32.mrf.mxu2 }
 0x491   : > { %v4834_v54 = vpop.f32.mrf.mxu1 }
 0x492   : > { %v4838_v56 = vpop.f32.mrf.mxu3 }
 0x498   : > { %v4836_v55 = vpop.f32.mrf.mxu0  ;;  %v4840_v57 = vpop.f32.mrf.mxu2 }
 0x499   : > { %v4842_v58 = vpop.f32.mrf.mxu1 }
 0x49a   : > { %v4846_v60 = vpop.f32.mrf.mxu3 }
 0x4a0   : > { %v4844_v59 = vpop.f32.mrf.mxu0 }
 0x4a1   : > { %v4850_v63 = vpop.f32.mrf.mxu1 }
 0x4a3   : > { %v1547_v61 = vpop.f32.mrf.mxu2 }
 0x4a8   : > { %v4848_v62 = vpop.f32.mrf.mxu0 }
 0x4a9   : > { %v1646_v5 = vpop.f32.mrf.mxu1 }
 0x4ab   : > { %v1555_v0 = vpop.f32.mrf.mxu2  ;;  %v1586_v1 = vpop.f32.mrf.mxu3 }
 0x4ac   : > { %v1587_v2 = vadd.f32 %v1586_v1, %v1547_v61 }
 0x4b0   : > { %v1616_v3 = vpop.f32.mrf.mxu0 }
 0x4b1   : > { %v1617_v4 = vadd.f32 %v1616_v3, %v1587_v2  ;;  %v1652_v15 = vpop.f32.mrf.mxu1 }
 0x4b3   : > { %v1590_v6 = vpop.f32.mrf.mxu3  ;;  %v1679_v7 = vpop.f32.mrf.mxu2  ;;  %v1647_v8 = vadd.f32 %v1646_v5, %v1617_v4 }
 0x4b4   : > { %v1591_v9 = vadd.f32 %v1590_v6, %v1555_v0 }
 0x4b5   : > { %v1680_v11 = vadd.f32 %v1679_v7, %v1647_v8 }
 0x4b8   : > { %v1621_v10 = vpop.f32.mrf.mxu0 }
 0x4b9   : > { %v1622_v12 = vadd.f32 %v1621_v10, %v1591_v9 }
 0x4bb   : > { %v1706_v13 = vpop.f32.mrf.mxu3  ;;  %v1653_v16 = vadd.f32 %v1652_v15, %v1622_v12  ;;  %v1683_v19 = vpop.f32.mrf.mxu2 }
 0x4bc   : > { %v1707_v14 = vadd.f32 %v1706_v13, %v1680_v11 }
 0x4bd   : > { %v1684_v21 = vadd.f32 %v1683_v19, %v1653_v16 }
 0x4be   : > { %v1713_v17 = vmul.f32 0.35355338, %v1707_v14 }
 0x4c0   : > { %v1715_v20 = vsel %vm1279_vm13, %v1713_v17, -inf }
 0x4c1   : > { %1716 = vmax.xlane.f32.xlu0 %v1715_v20 }
 0x4c3   : > { %v1710_v22 = vpop.f32.mrf.mxu3 }
 0x4c4   : > { %v1711_v23 = vadd.f32 %v1710_v22, %v1684_v21 }
 0x4c6   : > { %v1714_v24 = vmul.f32 0.35355338, %v1711_v23 }
 0x4c8   : > { %v1718_v25 = vsel %vm1283_vm14, %v1714_v24, -inf }
 0x4c9   : > { %1719 = vmax.xlane.f32.xlu1 %v1718_v25 }
 0x4d5   : > { %1737 = vrot.lane.b32.xlu0 %v4794_v51, %s4439_s23 }
 0x4dd   : > { %1944 = vrot.lane.b32.xlu0 %v4794_v51, %s4440_s2 }
 0x4e2   : > { %1739 = vrot.lane.b32.xlu1 %v4791_v48, %s4439_s23 }
 0x4ea   : > { %1940 = vrot.lane.b32.xlu1 %v4794_v51, %s4441_s14 }
 0x534   : > { %v1717_v26 = vpop.xlane.xlu0 %1716 }
 0x535   : > { %v1721_v27 = vsub.f32 %v1713_v17, %v1717_v26 }
 0x537   : > { %v1723_v28 = vmul.f32 1.442695, %v1721_v27 }
 0x539   : > { %4306 = vpow2.f32 %v1723_v28 }
 0x53c   : > { %v1720_v29 = vpop.xlane.xlu1 %1719 }
 0x53d   : > { %v1722_v30 = vsub.f32 %v1714_v24, %v1720_v29 }
 0x53f   : > { %v4307_v31 = vpop.eup %4306  ;;  %v1725_v32 = vmul.f32 1.442695, %v1722_v30 }
 0x540   : > { %v1727_v33 = vsel %vm1279_vm13, %v4307_v31, 0.0 }
 0x541   : > { %4308 = vpow2.f32 %v1725_v32  ;;  %1728 = vadd.xlane.f32.xlu2 %v1727_v33 }
 0x547   : > { %v4309_v34 = vpop.eup %4308  ;;  %v1738_v36 = vpop.permute.xlu0 %1737 }
 0x548   : > { %v1730_v35 = vsel %vm1283_vm14, %v4309_v34, 0.0  ;;  %v1766_v37 = vand.u32 4294901760, %v1738_v36 }
 0x549   : > { %1731 = vadd.xlane.f32.xlu0 %v1730_v35 }
 0x54a   : > { %v1806_v38 = vsub.f32 %v1738_v36, %v1766_v37 }
 0x54c   : > { %v1807_v43 = vand.u32 4294901760, %v1806_v38 }
 0x54e   : > { %v1808_v46 = vsub.f32 %v1806_v38, %v1807_v43 }
 0x54f   : > { %v1945_v61 = vpop.permute.xlu0 %1944 }
 0x550   : > { %v1809_v49 = vand.u32 4294901760, %v1808_v46  ;;  %v1952_v1 = vsel %vm1078_vm12, %v1945_v61, 0 }
 0x551   : > { %v4868_v2 = vand.u32 4294901760, %v1952_v1 }
 0x553   : > { %v2012_v9 = vsub.f32 %v1952_v1, %v4868_v2 }
 0x554   : > { %v1740_v39 = vpop.permute.xlu1 %1739 }
 0x555   : > { %v1748_v40 = vsel %vm1314_vm15, %v1740_v39, 0  ;;  %v2013_v19 = vand.u32 4294901760, %v2012_v9 }
 0x556   : > { %v1764_v41 = vand.u32 4294901760, %v1748_v40 }
 0x558   : > { %v1800_v42 = vsub.f32 %v1748_v40, %v1764_v41  ;;  %1765 = vmatpush.msrb.mxu0 %v1764_v41  ;;  %1866 = vmatpush.msra.mxu3 %v1764_v41 }
 0x559   : > { %1946 = vrot.lane.b32.xlu2 %v4791_v48, %s4440_s2 }
 0x55a   : > { %v1801_v44 = vand.u32 4294901760, %v1800_v42  ;;  %1767 = vmatpush.msrb.mxu0 %v1766_v37  ;;  %1836 = vmatpush.msra.mxu2 %v1800_v42 }
 0x55b   : > { %1868 = vmatpush.msra.mxu3 %v1766_v37 }
 0x55c   : > { %v1802_v45 = vsub.f32 %v1800_v42, %v1801_v44  ;;  %1839 = vmatpush.msra.mxu2 %v1806_v38  ;;  %1899 = vmatpush.msra.mxu0 %v1801_v44  ;;  %v1941_v4 = vpop.permute.xlu1 %1940 }
 0x55d   : > { %1942 = vrot.lane.b32.xlu0 %v4791_v48, %s4441_s14  ;;  %v1948_v10 = vsel %vm1078_vm12, %v1941_v4, 0 }
 0x55e   : > { %v1803_v47 = vand.u32 4294901760, %v1802_v45  ;;  %1903 = vmatpush.msra.mxu0 %v1807_v43  ;;  %v4876_v15 = vand.u32 4294901760, %v1948_v10 }
 0x560   : > { %1804 = vmatpush.msrb.mxu1 %v1803_v47  ;;  %v1975_v25 = vsub.f32 %v1948_v10, %v4876_v15 }
 0x561   : > { %2172 = vrot.lane.b32.xlu2 %v4791_v48, %s4442_s22 }
 0x562   : > { %1810 = vmatpush.msrb.mxu1 %v1809_v49  ;;  %v1976_v35 = vand.u32 4294901760, %v1975_v25 }
 0x564   : > { %1928 = vmatpush.msra.mxu1 %v1764_v41  ;;  %v1977_v41 = vsub.f32 %v1975_v25, %v1976_v35 }
 0x566   : > { %1930 = vmatpush.msra.mxu1 %v1766_v37  ;;  %v1978_v47 = vand.u32 4294901760, %v1977_v41 }
 0x5b4   : > { %v1729_v0 = vpop.xlane.xlu2 %1728 }
 0x5b5   : > { %4310 = vrcp.f32 %v1729_v0 }
 0x5bb   : > { %v4311_v3 = vpop.eup %4310 }
 0x5bc   : > { %v1735_v5 = vmul.f32 %v4311_v3, %v4307_v31  ;;  %v1947_v6 = vpop.permute.xlu2 %1946  ;;  %v1732_v7 = vpop.xlane.xlu0 %1731  ;;  %v2014_v31 = vsub.f32 %v2012_v9, %v2013_v19 }
 0x5bd   : > { %v1954_v8 = vsel %vm1078_vm12, %v1947_v6, 0  ;;  %4312 = vrcp.f32 %v1732_v7 }
 0x5be   : > { %v1970_v11 = vand.u32 4294901760, %v1954_v8  ;;  %v1743_v12 = vsel %vm1279_vm13, %v1735_v5, 0  ;;  %v2015_v38 = vand.u32 4294901760, %v2014_v31 }
 0x5bf   : > { %v4874_v13 = vand.u32 4294901760, %v1743_v12 }
 0x5c0   : > { %v2006_v14 = vsub.f32 %v1954_v8, %v1970_v11  ;;  %1971 = vmatpush.xpose.msrb.mxu2 %v1970_v11 }
 0x5c1   : > { %1812 = vmatmul.f32.vlgmr.msrb.gmra.mxu1 %v4874_v13  ;;  %v1769_v16 = vsub.f32 %v1743_v12, %v4874_v13 }
 0x5c2   : > { %v2007_v17 = vand.u32 4294901760, %v2006_v14  ;;  %2072 = vmatpush.xpose.msrb.mxu1 %v1970_v11 }
 0x5c3   : > { %v4313_v20 = vpop.eup %4312  ;;  %1842 = vmatmul.f32.vlgmr.msra.gmra.mxu2 %v1769_v16  ;;  %v1770_v21 = vand.u32 4294901760, %v1769_v16 }
 0x5c4   : > { %v2008_v22 = vsub.f32 %v2006_v14, %v2007_v17  ;;  %v1736_v23 = vmul.f32 %v4313_v20, %v4309_v34  ;;  %v2173_v24 = vpop.permute.xlu2 %2172  ;;  %1973 = vmatpush.xpose.msrb.mxu2 %v4868_v2 }
 0x5c5   : > { %v2181_v26 = vsel %vm1314_vm15, %v2173_v24, 0  ;;  %1872 = vmatmul.f32.vlgmr.msra.gmra.mxu3 %v1770_v21  ;;  %v1771_v27 = vsub.f32 %v1769_v16, %v1770_v21 }
 0x5c6   : > { %v2009_v28 = vand.u32 4294901760, %v2008_v22  ;;  %v4883_v29 = vand.u32 4294901760, %v2181_v26  ;;  %2074 = vmatpush.xpose.msrb.mxu1 %v4868_v2  ;;  %v1746_v30 = vsel %vm1279_vm13, %v1736_v23, 0 }
 0x5c7   : > { %v1772_v32 = vand.u32 4294901760, %v1771_v27  ;;  %v1776_v33 = vand.u32 4294901760, %v1746_v30 }
 0x5c8   : > { %2105 = vmatpush.xpose.msra.mxu2 %v2007_v17  ;;  %v4888_v34 = vsub.f32 %v2181_v26, %v4883_v29  ;;  %2010 = vmatpush.xpose.msrb.mxu3 %v2009_v28 }
 0x5c9   : > { %1773 = vmatmul.f32.vlgmr.msrb.gmra.mxu0 %v1772_v32  ;;  %1816 = vmatmul.f32.gmra.mxu1 %v1776_v33  ;;  %v1777_v36 = vsub.f32 %v1746_v30, %v1776_v33 }
 0x5ca   : > { %v2234_v37 = vand.u32 4294901760, %v4888_v34  ;;  %2042 = vmatpush.xpose.msrb.mxu0 %v2006_v14 }
 0x5cb   : > { %1847 = vmatmul.f32.gmra.mxu2 %v1777_v36  ;;  %v1778_v39 = vand.u32 4294901760, %v1777_v36 }
 0x5cc   : > { %2109 = vmatpush.xpose.msra.mxu2 %v2013_v19  ;;  %v2235_v40 = vsub.f32 %v4888_v34, %v2234_v37  ;;  %2016 = vmatpush.xpose.msrb.mxu3 %v2015_v38 }
 0x5cd   : > { %1878 = vmatmul.f32.gmra.mxu3 %v1778_v39  ;;  %v1779_v42 = vsub.f32 %v1777_v36, %v1778_v39 }
 0x5ce   : > { %v2236_v43 = vand.u32 4294901760, %v2235_v40  ;;  %2045 = vmatpush.xpose.msrb.mxu0 %v2012_v9 }
 0x5cf   : > { %v1943_v44 = vpop.permute.xlu0 %1942  ;;  %v1780_v45 = vand.u32 4294901760, %v1779_v42 }
 0x5d0   : > { %2134 = vmatpush.xpose.msra.mxu3 %v1970_v11  ;;  %v1950_v46 = vsel %vm1078_vm12, %v1943_v44, 0 }
 0x5d1   : > { %v1982_v49 = vand.u32 4294901760, %v1950_v46  ;;  %1781 = vmatmul.f32.gmra.mxu0 %v1780_v45  ;;  %1932 = vmatmul.f32.vlgmr.msra.gmra.mxu1 %v4874_v13 }
 0x5d2   : > { %2237 = vmatpush.msra.mxu1 %v2236_v43 }
 0x5d3   : > { %v1983_v61 = vsub.f32 %v1950_v46, %v1982_v49  ;;  %1979 = vmatmul.f32.vlgmr.msrb.gmra.mxu2 %v1978_v47 }
 0x5d4   : > { %2136 = vmatpush.xpose.msra.mxu3 %v4868_v2  ;;  %2269 = vmatpush.msrb.mxu2 %v4888_v34 }
 0x5d5   : > { %2018 = vmatmul.f32.vlgmr.msrb.gmra.mxu3 %v4876_v15  ;;  %v1984_v0 = vand.u32 4294901760, %v1983_v61 }
 0x5d7   : > { %v1985_v1 = vsub.f32 %v1983_v61, %v1984_v0 }
 0x5d8   : > { %2299 = vmatpush.msrb.mxu3 %v4883_v29 }
 0x5d9   : > { %1905 = vmatmul.f32.vlgmr.msra.gmra.mxu0 %v4874_v13  ;;  %1936 = vmatmul.f32.gmra.mxu1 %v1776_v33  ;;  %v1986_v3 = vand.u32 4294901760, %v1985_v1 }
 0x5da   : > { %2198 = vmatpush.msra.mxu0 %v4883_v29 }
 0x5db   : > { %1987 = vmatmul.f32.gmra.mxu2 %v1986_v3 }
 0x5dd   : > { %2022 = vmatmul.f32.gmra.mxu3 %v1982_v49 }
 0x5e1   : > { %1909 = vmatmul.f32.gmra.mxu0 %v1776_v33  ;;  %2078 = vmatmul.f32.vlgmr.msrb.gmra.mxu1 %v1976_v35 }
 0x5e3   : > { %2111 = vmatmul.f32.vlgmr.msra.gmra.mxu2 %v4876_v15 }
 0x5e5   : > { %2138 = vmatmul.f32.vlgmr.msra.gmra.mxu3 %v4876_v15 }
 0x5e9   : > { %2048 = vmatmul.f32.vlgmr.msrb.gmra.mxu0 %v1975_v25  ;;  %2084 = vmatmul.f32.gmra.mxu1 %v1984_v0 }
 0x5eb   : > { %2115 = vmatmul.f32.gmra.mxu2 %v1982_v49 }
 0x5ed   : > { %2142 = vmatmul.f32.gmra.mxu3 %v1982_v49 }
 0x5f1   : > { %2053 = vmatmul.f32.gmra.mxu0 %v1983_v61 }
 0x63e   : > { %v1813_v2 = vpop.f32.mrf.mxu1 }
 0x646   : > { %v1774_v4 = vpop.f32.mrf.mxu0  ;;  %v1843_v6 = vpop.f32.mrf.mxu2 }
 0x647   : > { %v1814_v5 = vadd.f32 %v1813_v2, %v1774_v4  ;;  %v1817_v7 = vpop.f32.mrf.mxu1 }
 0x648   : > { %v1873_v8 = vpop.f32.mrf.mxu3 }
 0x649   : > { %v1844_v9 = vadd.f32 %v1843_v6, %v1814_v5 }
 0x64b   : > { %v1874_v10 = vadd.f32 %v1873_v8, %v1844_v9 }
 0x64e   : > { %v1782_v11 = vpop.f32.mrf.mxu0  ;;  %v1848_v13 = vpop.f32.mrf.mxu2 }
 0x64f   : > { %v1818_v12 = vadd.f32 %v1817_v7, %v1782_v11  ;;  %v1933_v17 = vpop.f32.mrf.mxu1 }
 0x650   : > { %v1879_v14 = vpop.f32.mrf.mxu3 }
 0x651   : > { %v1849_v16 = vadd.f32 %v1848_v13, %v1818_v12 }
 0x653   : > { %v1880_v15 = vadd.f32 %v1879_v14, %v1849_v16 }
 0x656   : > { %v1906_v19 = vpop.f32.mrf.mxu0  ;;  %v1980_v21 = vpop.f32.mrf.mxu2 }
 0x657   : > { %v1907_v20 = vadd.f32 %v1906_v19, %v1874_v10  ;;  %v1937_v24 = vpop.f32.mrf.mxu1 }
 0x658   : > { %v2019_v22 = vpop.f32.mrf.mxu3 }
 0x659   : > { %v4904_v23 = vadd.f32 %v1933_v17, %v1907_v20  ;;  %v2020_v31 = vadd.f32 %v2019_v22, %v1980_v21 }
 0x65e   : > { %v1910_v25 = vpop.f32.mrf.mxu0  ;;  %v1988_v27 = vpop.f32.mrf.mxu2 }
 0x65f   : > { %v1911_v26 = vadd.f32 %v1910_v25, %v1880_v15  ;;  %v2079_v32 = vpop.f32.mrf.mxu1 }
 0x660   : > { %v2023_v28 = vpop.f32.mrf.mxu3 }
 0x661   : > { %v4906_v30 = vadd.f32 %v1937_v24, %v1911_v26  ;;  %v2024_v41 = vadd.f32 %v2023_v28, %v1988_v27 }
 0x666   : > { %v2049_v33 = vpop.f32.mrf.mxu0  ;;  %v2112_v36 = vpop.f32.mrf.mxu2 }
 0x667   : > { %v2050_v35 = vadd.f32 %v2049_v33, %v2020_v31  ;;  %v2085_v46 = vpop.f32.mrf.mxu1 }
 0x668   : > { %v2139_v39 = vpop.f32.mrf.mxu3 }
 0x669   : > { %v2080_v38 = vadd.f32 %v2079_v32, %v2050_v35 }
 0x66b   : > { %v2113_v40 = vadd.f32 %v2112_v36, %v2080_v38 }
 0x66d   : > { %v2140_v42 = vadd.f32 %v2139_v39, %v2113_v40 }
 0x66e   : > { %v2054_v43 = vpop.f32.mrf.mxu0  ;;  %v2116_v61 = vpop.f32.mrf.mxu2 }
 0x66f   : > { %v2146_v44 = vmul.f32 0.35355338, %v2140_v42  ;;  %v2055_v45 = vadd.f32 %v2054_v43, %v2024_v41 }
 0x670   : > { %v2143_v1 = vpop.f32.mrf.mxu3 }
 0x671   : > { %v2086_v47 = vadd.f32 %v2085_v46, %v2055_v45  ;;  %v2148_v49 = vsel %vm1279_vm13, %v2146_v44, -inf }
 0x672   : > { %2149 = vmax.xlane.f32.xlu1 %v2148_v49 }
 0x673   : > { %v2117_v0 = vadd.f32 %v2116_v61, %v2086_v47 }
 0x675   : > { %v2144_v3 = vadd.f32 %v2143_v1, %v2117_v0 }
 0x677   : > { %v2147_v2 = vmul.f32 0.35355338, %v2144_v3 }
 0x679   : > { %v2151_v4 = vsel %vm1283_vm14, %v2147_v2, -inf }
 0x67a   : > { %2152 = vmax.xlane.f32.xlu0 %v2151_v4 }
 0x68b   : > { %2379 = vrot.lane.b32.xlu1 %v4791_v48, %s4443_s26 }
 0x68e   : > { %2170 = vrot.lane.b32.xlu0 %v4794_v51, %s4442_s22  ;;  %s5415_s22 = scalar_lea.vmem %s5356_s9, %s4618_s27  ;;  %s5416_s27 = sld [smem:[#allocation8_spill]] }
 0x694   : > { %p4184_p1 = scmp.ne.s32.totalorder %s5416_s27, 1 }
 0x695   : > { %s5418_s2 = sld [smem:[#allocation23_spill]] (!%p4184_p1) }
 0x696   : > { %2377 = vrot.lane.b32.xlu0 %v4794_v51, %s4443_s26  ;;  %s5420_s26 = sld [smem:[#allocation26_spill]] (!%p4184_p1) }
 0x6e5   : > { %v2150_v5 = vpop.xlane.xlu1 %2149 }
 0x6e6   : > { %v2154_v6 = vsub.f32 %v2146_v44, %v2150_v5 }
 0x6e8   : > { %v2156_v7 = vmul.f32 1.442695, %v2154_v6 }
 0x6ea   : > { %4314 = vpow2.f32 %v2156_v7 }
 0x6ed   : > { %v2153_v8 = vpop.xlane.xlu0 %2152 }
 0x6ee   : > { %v2155_v9 = vsub.f32 %v2147_v2, %v2153_v8 }
 0x6f0   : > { %v4315_v10 = vpop.eup %4314  ;;  %v2158_v11 = vmul.f32 1.442695, %v2155_v9 }
 0x6f1   : > { %v2160_v12 = vsel %vm1279_vm13, %v4315_v10, 0.0 }
 0x6f2   : > { %4316 = vpow2.f32 %v2158_v11  ;;  %2161 = vadd.xlane.f32.xlu2 %v2160_v12 }
 0x6f8   : > { %v4317_v13 = vpop.eup %4316 }
 0x6f9   : > { %v2163_v14 = vsel %vm1283_vm14, %v4317_v13, 0.0 }
 0x6fa   : > { %2164 = vadd.xlane.f32.xlu1 %v2163_v14 }
 0x6fd   : > { %v2380_v16 = vpop.permute.xlu1 %2379 }
 0x6fe   : > { %v2387_v17 = vsel %vm1078_vm12, %v2380_v16, 0 }
 0x6ff   : > { %v2403_v15 = vand.u32 4294901760, %v2387_v17 }
 0x700   : > { %v2171_v19 = vpop.permute.xlu0 %2170 }
 0x701   : > { %v4917_v20 = vsub.f32 %v2387_v17, %v2403_v15  ;;  %v2199_v21 = vand.u32 4294901760, %v2171_v19 }
 0x703   : > { %v2440_v22 = vand.u32 4294901760, %v4917_v20  ;;  %v2239_v24 = vsub.f32 %v2171_v19, %v2199_v21  ;;  %2200 = vmatpush.msra.mxu0 %v2199_v21  ;;  %2301 = vmatpush.msrb.mxu3 %v2199_v21 }
 0x705   : > { %2332 = vmatpush.msrb.mxu0 %v2234_v37  ;;  %v2441_v25 = vsub.f32 %v4917_v20, %v2440_v22  ;;  %2272 = vmatpush.msrb.mxu2 %v2239_v24  ;;  %v2240_v26 = vand.u32 4294901760, %v2239_v24 }
 0x707   : > { %2404 = vmatpush.xpose.msra.mxu2 %v2403_v15  ;;  %v2442_v27 = vand.u32 4294901760, %v2441_v25  ;;  %2336 = vmatpush.msrb.mxu0 %v2240_v26  ;;  %v2241_v28 = vsub.f32 %v2239_v24, %v2240_v26 }
 0x708   : > { %v2378_v31 = vpop.permute.xlu0 %2377 }
 0x709   : > { %v2385_v32 = vsel %vm1078_vm12, %v2378_v31, 0  ;;  %2443 = vmatpush.xpose.msra.mxu3 %v2442_v27  ;;  %v2242_v33 = vand.u32 4294901760, %v2241_v28 }
 0x70a   : > { %v2405_v35 = vand.u32 4294901760, %v2385_v32  ;;  %2373 = vrot.lane.b32.xlu2 %v4794_v51, %s4444_s21 }
 0x70b   : > { %2243 = vmatpush.msra.mxu1 %v2242_v33 }
 0x70c   : > { %v2445_v34 = vsub.f32 %v2385_v32, %v2405_v35  ;;  %2406 = vmatpush.xpose.msra.mxu2 %v2405_v35 }
 0x70d   : > { %2361 = vmatpush.msrb.mxu1 %v4883_v29 }
 0x70e   : > { %v2446_v37 = vand.u32 4294901760, %v2445_v34 }
 0x70f   : > { %2363 = vmatpush.msrb.mxu1 %v2199_v21 }
 0x710   : > { %v2447_v36 = vsub.f32 %v2445_v34, %v2446_v37 }
 0x712   : > { %v2448_v38 = vand.u32 4294901760, %v2447_v36 }
 0x713   : > { %2375 = vrot.lane.b32.xlu1 %v4791_v48, %s4444_s21 }
 0x714   : > { %2449 = vmatpush.xpose.msra.mxu3 %v2448_v38 }
 0x765   : > { %v2162_v39 = vpop.xlane.xlu2 %2161 }
 0x766   : > { %4318 = vrcp.f32 %v2162_v39 }
 0x76c   : > { %v4319_v40 = vpop.eup %4318 }
 0x76d   : > { %v2168_v41 = vmul.f32 %v4319_v40, %v4315_v10  ;;  %v2374_v42 = vpop.permute.xlu2 %2373  ;;  %v2165_v43 = vpop.xlane.xlu1 %2164 }
 0x76e   : > { %4320 = vrcp.f32 %v2165_v43  ;;  %v2381_v44 = vsel %vm1078_vm12, %v2374_v42, 0 }
 0x76f   : > { %v2176_v45 = vsel %vm1279_vm13, %v2168_v41, 0  ;;  %v2407_v46 = vand.u32 4294901760, %v2381_v44 }
 0x770   : > { %v2201_v29 = vand.u32 4294901760, %v2176_v45 }
 0x771   : > { %v2408_v1 = vsub.f32 %v2381_v44, %v2407_v46 }
 0x772   : > { %2245 = vmatmul.f32.vlgmr.msra.gmra.mxu1 %v2201_v29  ;;  %v2202_v47 = vsub.f32 %v2176_v45, %v2201_v29 }
 0x773   : > { %2505 = vmatpush.xpose.msra.mxu1 %v2403_v15  ;;  %v2409_v6 = vand.u32 4294901760, %v2408_v1 }
 0x774   : > { %v4321_v49 = vpop.eup %4320  ;;  %2275 = vmatmul.f32.vlgmr.msrb.gmra.mxu2 %v2202_v47  ;;  %v2203_v61 = vand.u32 4294901760, %v2202_v47 }
 0x775   : > { %v2169_v0 = vmul.f32 %v4321_v49, %v4317_v13  ;;  %2538 = vmatpush.xpose.msrb.mxu2 %v2440_v22  ;;  %v2410_v9 = vsub.f32 %v2408_v1, %v2409_v6 }
 0x776   : > { %2305 = vmatmul.f32.vlgmr.msrb.gmra.mxu3 %v2203_v61  ;;  %v2204_v3 = vsub.f32 %v2202_v47, %v2203_v61 }
 0x777   : > { %2507 = vmatpush.xpose.msra.mxu1 %v2405_v35  ;;  %2567 = vmatpush.xpose.msrb.mxu3 %v2403_v15  ;;  %v2179_v2 = vsel %vm1279_vm13, %v2169_v0, 0  ;;  %v2411_v12 = vand.u32 4294901760, %v2410_v9 }
 0x778   : > { %v2205_v4 = vand.u32 4294901760, %v2204_v3  ;;  %v2209_v5 = vand.u32 4294901760, %v2179_v2 }
 0x779   : > { %2542 = vmatpush.xpose.msrb.mxu2 %v2446_v37 }
 0x77a   : > { %2206 = vmatmul.f32.vlgmr.msra.gmra.mxu0 %v2205_v4  ;;  %2249 = vmatmul.f32.gmra.mxu1 %v2209_v5  ;;  %v2210_v7 = vsub.f32 %v2179_v2, %v2209_v5 }
 0x77b   : > { %2475 = vmatpush.xpose.msra.mxu0 %v4917_v20  ;;  %2569 = vmatpush.xpose.msrb.mxu3 %v2405_v35 }
 0x77c   : > { %2280 = vmatmul.f32.gmra.mxu2 %v2210_v7  ;;  %v2211_v8 = vand.u32 4294901760, %v2210_v7 }
 0x77e   : > { %2311 = vmatmul.f32.gmra.mxu3 %v2211_v8  ;;  %v2212_v10 = vsub.f32 %v2210_v7, %v2211_v8 }
 0x77f   : > { %2478 = vmatpush.xpose.msra.mxu0 %v2445_v34 }
 0x780   : > { %v2213_v11 = vand.u32 4294901760, %v2212_v10 }
 0x782   : > { %2214 = vmatmul.f32.gmra.mxu0 %v2213_v11  ;;  %2365 = vmatmul.f32.vlgmr.msrb.gmra.mxu1 %v2201_v29 }
 0x784   : > { %2412 = vmatmul.f32.vlgmr.msra.gmra.mxu2 %v2411_v12 }
 0x785   : > { %v2376_v13 = vpop.permute.xlu1 %2375 }
 0x786   : > { %v2383_v14 = vsel %vm1078_vm12, %v2376_v13, 0  ;;  %2451 = vmatmul.f32.vlgmr.msra.gmra.mxu3 %v2407_v46 }
 0x787   : > { %v2415_v16 = vand.u32 4294901760, %v2383_v14 }
 0x789   : > { %v2416_v17 = vsub.f32 %v2383_v14, %v2415_v16 }
 0x78a   : > { %2338 = vmatmul.f32.vlgmr.msrb.gmra.mxu0 %v2201_v29  ;;  %2369 = vmatmul.f32.gmra.mxu1 %v2209_v5 }
 0x78b   : > { %v2417_v15 = vand.u32 4294901760, %v2416_v17 }
 0x78d   : > { %v2418_v19 = vsub.f32 %v2416_v17, %v2417_v15 }
 0x78e   : > { %2455 = vmatmul.f32.gmra.mxu3 %v2415_v16 }
 0x78f   : > { %v2419_v20 = vand.u32 4294901760, %v2418_v19 }
 0x791   : > { %2420 = vmatmul.f32.gmra.mxu2 %v2419_v20 }
 0x792   : > { %2342 = vmatmul.f32.gmra.mxu0 %v2209_v5  ;;  %2511 = vmatmul.f32.vlgmr.msra.gmra.mxu1 %v2409_v6 }
 0x796   : > { %2571 = vmatmul.f32.vlgmr.msrb.gmra.mxu3 %v2407_v46 }
 0x799   : > { %2544 = vmatmul.f32.vlgmr.msrb.gmra.mxu2 %v2407_v46 }
 0x79a   : > { %2481 = vmatmul.f32.vlgmr.msra.gmra.mxu0 %v2408_v1  ;;  %2517 = vmatmul.f32.gmra.mxu1 %v2417_v15 }
 0x79e   : > { %2575 = vmatmul.f32.gmra.mxu3 %v2415_v16 }
 0x7a1   : > { %2548 = vmatmul.f32.gmra.mxu2 %v2415_v16 }
 0x7a2   : > { %2486 = vmatmul.f32.gmra.mxu0 %v2416_v17 }
 0x7ef   : > { %v2246_v21 = vpop.f32.mrf.mxu1 }
 0x7f7   : > { %v2207_v22 = vpop.f32.mrf.mxu0  ;;  %v2276_v25 = vpop.f32.mrf.mxu2 }
 0x7f8   : > { %v2247_v24 = vadd.f32 %v2246_v21, %v2207_v22  ;;  %v2250_v26 = vpop.f32.mrf.mxu1 }
 0x7f9   : > { %v2306_v27 = vpop.f32.mrf.mxu3 }
 0x7fa   : > { %v2277_v28 = vadd.f32 %v2276_v25, %v2247_v24 }
 0x7fc   : > { %v2307_v31 = vadd.f32 %v2306_v27, %v2277_v28 }
 0x7ff   : > { %v2215_v32 = vpop.f32.mrf.mxu0  ;;  %v2281_v35 = vpop.f32.mrf.mxu2 }
 0x800   : > { %v2251_v33 = vadd.f32 %v2250_v26, %v2215_v32  ;;  %v2366_v36 = vpop.f32.mrf.mxu1 }
 0x801   : > { %v2312_v34 = vpop.f32.mrf.mxu3 }
 0x802   : > { %v2282_v37 = vadd.f32 %v2281_v35, %v2251_v33 }
 0x804   : > { %v2313_v38 = vadd.f32 %v2312_v34, %v2282_v37 }
 0x807   : > { %v2339_v39 = vpop.f32.mrf.mxu0  ;;  %v2413_v41 = vpop.f32.mrf.mxu2 }
 0x808   : > { %v2370_v42 = vpop.f32.mrf.mxu1  ;;  %v2340_v15 = vadd.f32 %v2339_v39, %v2307_v31 }
 0x809   : > { %v2452_v40 = vpop.f32.mrf.mxu3 }
 0x80a   : > { %v2453_v29 = vadd.f32 %v2452_v40, %v2413_v41  ;;  %v2367_v19 = vadd.f32 %v2366_v36, %v2340_v15 }
 0x80f   : > { %v2343_v43 = vpop.f32.mrf.mxu0 }
 0x810   : > { %v2512_v46 = vpop.f32.mrf.mxu1  ;;  %v2344_v20 = vadd.f32 %v2343_v43, %v2313_v38 }
 0x811   : > { %v2456_v44 = vpop.f32.mrf.mxu3 }
 0x812   : > { %v2371_v21 = vadd.f32 %v2370_v42, %v2344_v20 }
 0x814   : > { %v2421_v45 = vpop.f32.mrf.mxu2 }
 0x815   : > { %v2457_v2 = vadd.f32 %v2456_v44, %v2421_v45 }
 0x817   : > { %v2482_v47 = vpop.f32.mrf.mxu0 }
 0x818   : > { %v2483_v49 = vadd.f32 %v2482_v47, %v2453_v29  ;;  %v2518_v7 = vpop.f32.mrf.mxu1 }
 0x819   : > { %v2572_v0 = vpop.f32.mrf.mxu3 }
 0x81a   : > { %v2513_v61 = vadd.f32 %v2512_v46, %v2483_v49 }
 0x81c   : > { %v2545_v1 = vpop.f32.mrf.mxu2 }
 0x81d   : > { %v2546_v3 = vadd.f32 %v2545_v1, %v2513_v61 }
 0x81f   : > { %v2573_v4 = vadd.f32 %v2572_v0, %v2546_v3  ;;  %v2487_v5 = vpop.f32.mrf.mxu0 }
 0x820   : > { %v2488_v6 = vadd.f32 %v2487_v5, %v2457_v2 }
 0x821   : > { %v2579_v8 = vmul.f32 0.35355338, %v2573_v4  ;;  %v2576_v13 = vpop.f32.mrf.mxu3 }
 0x822   : > { %v2519_v9 = vadd.f32 %v2518_v7, %v2488_v6 }
 0x823   : > { %v2581_v10 = vsel %vm1279_vm13, %v2579_v8, -inf }
 0x824   : > { %v2549_v11 = vpop.f32.mrf.mxu2  ;;  %2582 = vmax.xlane.f32.xlu0 %v2581_v10 }
 0x825   : > { %v2550_v12 = vadd.f32 %v2549_v11, %v2519_v9 }
 0x827   : > { %v2577_v14 = vadd.f32 %v2576_v13, %v2550_v12  ;;  %v2841_v12 = vld [vmem:[%s4640_s30 + $0x18] sm:$0xff]  ;;  %v2840_v13 = vld [vmem:[%s4640_s30 + $0x10] sm:$0xff] }
 0x829   : > { %v2580_v16 = vmul.f32 0.35355338, %v2577_v14  ;;  %v4947_v14 = vand.u32 4294901760, %v2841_v12 }
 0x82b   : > { %v2584_v17 = vsel %vm1283_vm14, %v2580_v16, -inf }
 0x82c   : > { %2585 = vmax.xlane.f32.xlu2 %v2584_v17  ;;  %v2902_v17 = vsub.f32 %v2841_v12, %v4947_v14 }
 0x844   : > { %2605 = vrot.lane.b32.xlu2 %v4791_v48, %s4445_s15 }
 0x84c   : > { %2816 = vrot.lane.b32.xlu2 %v2367_v19, %s4446_s0 }
 0x854   : > { %2818 = vrot.lane.b32.xlu2 %v2371_v21, %s4446_s0  ;;  %v2903_v21 = vand.u32 4294901760, %v2902_v17 }
 0x897   : > { %v2583_v22 = vpop.xlane.xlu0 %2582 }
 0x898   : > { %v2587_v24 = vsub.f32 %v2579_v8, %v2583_v22 }
 0x89a   : > { %v2589_v25 = vmul.f32 1.442695, %v2587_v24  ;;  %v2904_v24 = vsub.f32 %v2902_v17, %v2903_v21 }
 0x89c   : > { %4322 = vpow2.f32 %v2589_v25 }
 0x89f   : > { %v2586_v26 = vpop.xlane.xlu2 %2585 }
 0x8a0   : > { %v2588_v27 = vsub.f32 %v2580_v16, %v2586_v26  ;;  %v4949_v16 = vand.u32 4294901760, %v2840_v13  ;;  %v2905_v26 = vand.u32 4294901760, %v2904_v24 }
 0x8a2   : > { %v4323_v28 = vpop.eup %4322  ;;  %v2591_v32 = vmul.f32 1.442695, %v2588_v27  ;;  %v2908_v15 = vsub.f32 %v2840_v13, %v4949_v16 }
 0x8a3   : > { %v2593_v33 = vsel %vm1279_vm13, %v4323_v28, 0.0 }
 0x8a4   : > { %4324 = vpow2.f32 %v2591_v32  ;;  %2594 = vadd.xlane.f32.xlu1 %v2593_v33  ;;  %v2909_v22 = vand.u32 4294901760, %v2908_v15 }
 0x8a6   : > { %v2910_v25 = vsub.f32 %v2908_v15, %v2909_v22 }
 0x8a7   : > { %v2606_v48 = vpop.permute.xlu2 %2605 }
 0x8a8   : > { %v2614_v31 = vsel %vm1314_vm15, %v2606_v48, 0  ;;  %v2911_v27 = vand.u32 4294901760, %v2910_v25 }
 0x8a9   : > { %v2630_v35 = vand.u32 4294901760, %v2614_v31 }
 0x8aa   : > { %v4325_v34 = vpop.eup %4324 }
 0x8ab   : > { %v2666_v37 = vsub.f32 %v2614_v31, %v2630_v35  ;;  %2631 = vmatpush.msrb.mxu0 %v2630_v35  ;;  %2732 = vmatpush.msra.mxu3 %v2630_v35  ;;  %v2596_v36 = vsel %vm1283_vm14, %v4325_v34, 0.0 }
 0x8ac   : > { %2597 = vadd.xlane.f32.xlu0 %v2596_v36 }
 0x8ad   : > { %v2667_v38 = vand.u32 4294901760, %v2666_v37  ;;  %2702 = vmatpush.msra.mxu2 %v2666_v37 }
 0x8af   : > { %v2668_v39 = vsub.f32 %v2666_v37, %v2667_v38 }
 0x8b1   : > { %v2669_v40 = vand.u32 4294901760, %v2668_v39 }
 0x8b3   : > { %2670 = vmatpush.msrb.mxu1 %v2669_v40 }
 0x8bd   : > { %2603 = vrot.lane.b32.xlu1 %v4794_v51, %s4445_s15  ;;  %s5417_s15 = sld [smem:[#allocation25_spill]] (!%p4184_p1) }
 0x8c0   : > { %2808 = vrot.lane.b32.xlu0 %v4904_v23, %s4447_s17 }
 0x8c5   : > { %2810 = vrot.lane.b32.xlu1 %v4906_v30, %s4447_s17 }
 0x917   : > { %v2595_v41 = vpop.xlane.xlu1 %2594 }
 0x918   : > { %4326 = vrcp.f32 %v2595_v41 }
 0x91e   : > { %v4327_v42 = vpop.eup %4326 }
 0x91f   : > { %v2601_v43 = vmul.f32 %v4327_v42, %v4323_v28  ;;  %v2598_v44 = vpop.xlane.xlu0 %2597 }
 0x920   : > { %4328 = vrcp.f32 %v2598_v44 }
 0x921   : > { %v2609_v45 = vsel %vm1279_vm13, %v2601_v43, 0 }
 0x922   : > { %v2634_v29 = vand.u32 4294901760, %v2609_v45 }
 0x924   : > { %v2635_v46 = vsub.f32 %v2609_v45, %v2634_v29 }
 0x926   : > { %v4329_v47 = vpop.eup %4328  ;;  %v2636_v51 = vand.u32 4294901760, %v2635_v46 }
 0x927   : > { %v2602_v49 = vmul.f32 %v4329_v47, %v4325_v34  ;;  %v2839_v47 = vld [vmem:[%s4640_s30 + $0x8] sm:$0xff] }
 0x928   : > { %v2637_v1 = vsub.f32 %v2635_v46, %v2636_v51 }
 0x929   : > { %v2612_v61 = vsel %vm1279_vm13, %v2602_v49, 0  ;;  %v2868_v49 = vand.u32 4294901760, %v2839_v47 }
 0x92a   : > { %v2642_v0 = vand.u32 4294901760, %v2612_v61  ;;  %v2638_v2 = vand.u32 4294901760, %v2637_v1 }
 0x92c   : > { %v2643_v23 = vsub.f32 %v2612_v61, %v2642_v0  ;;  %v2838_v61 = vld [vmem:[%s4640_s30] sm:$0xff] }
 0x92e   : > { %v2644_v4 = vand.u32 4294901760, %v2643_v23 }
 0x92f   : > { %v2604_v3 = vpop.permute.xlu1 %2603 }
 0x930   : > { %v2632_v30 = vand.u32 4294901760, %v2604_v3  ;;  %v2645_v7 = vsub.f32 %v2643_v23, %v2644_v4 }
 0x932   : > { %v2672_v5 = vsub.f32 %v2604_v3, %v2632_v30  ;;  %2633 = vmatpush.msrb.mxu0 %v2632_v30  ;;  %2734 = vmatpush.msra.mxu3 %v2632_v30  ;;  %v2646_v10 = vand.u32 4294901760, %v2645_v7 }
 0x933   : > { %2639 = vmatmul.f32.vlgmr.msrb.gmra.mxu0 %v2638_v2  ;;  %2738 = vmatmul.f32.vlgmr.msra.gmra.mxu3 %v2636_v51  ;;  %v2914_v51 = vsub.f32 %v2839_v47, %v2868_v49 }
 0x934   : > { %2765 = vmatpush.msra.mxu0 %v2667_v38  ;;  %2705 = vmatpush.msra.mxu2 %v2672_v5  ;;  %v2673_v6 = vand.u32 4294901760, %v2672_v5 }
 0x935   : > { %2708 = vmatmul.f32.vlgmr.msra.gmra.mxu2 %v2635_v46  ;;  %2906 = vmatpush.msrb.mxu3 %v2905_v26  ;;  %v2915_v1 = vand.u32 4294901760, %v2914_v51 }
 0x936   : > { %2769 = vmatpush.msra.mxu0 %v2673_v6  ;;  %v2674_v8 = vsub.f32 %v2672_v5, %v2673_v6  ;;  %2865 = vmatpush.msrb.mxu2 %v4947_v14  ;;  %v1381_v6 = vadd.f32 %v4828_v50, %v4830_v52 }
 0x937   : > { %2912 = vmatpush.msrb.mxu3 %v2911_v27  ;;  %v2916_v3 = vsub.f32 %v2914_v51, %v2915_v1 }
 0x938   : > { %v2675_v9 = vand.u32 4294901760, %v2674_v8  ;;  %2948 = vmatpush.msrb.mxu0 %v2902_v17  ;;  %2867 = vmatpush.msrb.mxu2 %v4949_v16  ;;  %v1411_v7 = vadd.f32 %v4832_v53, %v1381_v6 }
 0x939   : > { %v2917_v2 = vand.u32 4294901760, %v2916_v3 }
 0x93a   : > { %2676 = vmatpush.msrb.mxu1 %v2675_v9  ;;  %2951 = vmatpush.msrb.mxu0 %v2908_v15  ;;  %v1441_v8 = vadd.f32 %v4838_v56, %v1411_v7  ;;  %v1385_v9 = vadd.f32 %v4834_v54, %v4836_v55  ;;  %v2811_v55 = vpop.permute.xlu1 %2810 }
 0x93b   : > { %2647 = vmatmul.f32.gmra.mxu0 %v2646_v10  ;;  %2678 = vmatmul.f32.vlgmr.msrb.gmra.mxu1 %v2634_v29 }
 0x93c   : > { %2744 = vmatmul.f32.gmra.mxu3 %v2644_v4  ;;  %2794 = vmatpush.msra.mxu1 %v2630_v35  ;;  %v1474_v10 = vadd.f32 %v4844_v59, %v1441_v8  ;;  %v1416_v12 = vadd.f32 %v4840_v57, %v1385_v9 }
 0x93d   : > { %2713 = vmatmul.f32.gmra.mxu2 %v2643_v23  ;;  %2954 = vmatpush.msrb.mxu0 %v2914_v51 }
 0x93e   : > { %2796 = vmatpush.msra.mxu1 %v2632_v30  ;;  %2869 = vmatpush.msrb.mxu2 %v2868_v49  ;;  %v1501_v13 = vadd.f32 %v4842_v58, %v1474_v10 }
 0x93f   : > { %2918 = vmatpush.msrb.mxu3 %v2917_v2 }
 0x940   : > { %2982 = vmatpush.msrb.mxu1 %v4947_v14 }
 0x942   : > { %2984 = vmatpush.msrb.mxu1 %v4949_v16 }
 0x943   : > { %2682 = vmatmul.f32.gmra.mxu1 %v2642_v0  ;;  %2771 = vmatmul.f32.vlgmr.msra.gmra.mxu0 %v2634_v29 }
 0x944   : > { %2986 = vmatpush.msrb.mxu1 %v2868_v49 }
 0x94b   : > { %2775 = vmatmul.f32.gmra.mxu0 %v2642_v0  ;;  %2798 = vmatmul.f32.vlgmr.msra.gmra.mxu1 %v2634_v29 }
 0x953   : > { %2802 = vmatmul.f32.gmra.mxu1 %v2642_v0  ;;  %v2870_v0 = vand.u32 4294901760, %v2838_v61 }
 0x955   : > { %v2920_v23 = vsub.f32 %v2838_v61, %v2870_v0  ;;  %2988 = vmatpush.msrb.mxu1 %v2870_v0  ;;  %2871 = vmatpush.msrb.mxu2 %v2870_v0  ;;  %v4334_v61 = vld [vmem:[#allocation2] sm:$0xff] }
 0x957   : > { %v2921_v30 = vand.u32 4294901760, %v2920_v23  ;;  %2957 = vmatpush.msrb.mxu0 %v2920_v23  ;;  %3017 = vmatpush.msra.mxu2 %v2903_v21 }
 0x959   : > { %v2922_v4 = vsub.f32 %v2920_v23, %v2921_v30  ;;  %3021 = vmatpush.msra.mxu2 %v2909_v22 }
 0x95b   : > { %v2923_v5 = vand.u32 4294901760, %v2922_v4  ;;  %3025 = vmatpush.msra.mxu2 %v2915_v1 }
 0x95d   : > { %2924 = vmatpush.msrb.mxu3 %v2923_v5  ;;  %3029 = vmatpush.msra.mxu2 %v2921_v30  ;;  %v4335_v5 = vld [vmem:[#allocation2 + $0x8] sm:$0x1] }
 0x95f   : > { %3052 = vmatpush.msra.mxu3 %v4947_v14  ;;  %v1447_v14 = vadd.f32 %v4846_v60, %v1416_v12 }
 0x961   : > { %3054 = vmatpush.msra.mxu3 %v4949_v16  ;;  %v2817_v16 = vpop.permute.xlu2 %2816  ;;  %v1478_v50 = vadd.f32 %v4848_v62, %v1447_v14 }
 0x963   : > { %3056 = vmatpush.msra.mxu3 %v2868_v49  ;;  %v1505_v57 = vadd.f32 %v4850_v63, %v1478_v50 }
 0x965   : > { %3058 = vmatpush.msra.mxu3 %v2870_v0  ;;  %v2831_v59 = vsel %vm1078_vm12, %v1505_v57, %v2811_v55  ;;  %v3127_v57 = vld [vmem:[%s4657_s25 + $0x8] sm:$0xff] }
 0x969   : > { %v2819_v15 = vpop.permute.xlu2 %2818 }
 0x96a   : > { %v2834_v62 = vsel %vm2832_vm0, %v2831_v59, %v2819_v15  ;;  %v3126_v15 = vld [vmem:[%s4657_s25] sm:$0xff] }
 0x9b0   : > { %v2640_v11 = vpop.f32.mrf.mxu0 }
 0x9b6   : > { %v2739_v31 = vpop.f32.mrf.mxu3 }
 0x9b8   : > { %v2648_v19 = vpop.f32.mrf.mxu0  ;;  %v2679_v20 = vpop.f32.mrf.mxu1 }
 0x9b9   : > { %v2680_v28 = vadd.f32 %v2679_v20, %v2640_v11  ;;  %v2709_v32 = vpop.f32.mrf.mxu2  ;;  %v2809_v11 = vpop.permute.xlu0 %2808 }
 0x9ba   : > { %v2830_v17 = vsel %vm1078_vm12, %v1501_v13, %v2809_v11 }
 0x9bb   : > { %v2710_v48 = vadd.f32 %v2709_v32, %v2680_v28  ;;  %v2833_v53 = vsel %vm2832_vm0, %v2830_v17, %v2817_v16 }
 0x9bd   : > { %v2740_v37 = vadd.f32 %v2739_v31, %v2710_v48  ;;  %v4287_v48 = vld [vmem:[%s5414_s1] ss:$0 sm:$0xff] }
 0x9bf   : > { %v2745_v42 = vpop.f32.mrf.mxu3 }
 0x9c0   : > { %v2683_v33 = vpop.f32.mrf.mxu1  ;;  %v2772_v35 = vpop.f32.mrf.mxu0 }
 0x9c1   : > { %v2684_v34 = vadd.f32 %v2683_v33, %v2648_v19  ;;  %v2773_v36 = vadd.f32 %v2772_v35, %v2740_v37  ;;  %v2714_v38 = vpop.f32.mrf.mxu2 }
 0x9c3   : > { %v2715_v40 = vadd.f32 %v2714_v38, %v2684_v34 }
 0x9c5   : > { %v2746_v44 = vadd.f32 %v2745_v42, %v2715_v40 }
 0x9c8   : > { %v2799_v39 = vpop.f32.mrf.mxu1  ;;  %v2776_v43 = vpop.f32.mrf.mxu0 }
 0x9c9   : > { %v2800_v41 = vadd.f32 %v2799_v39, %v2773_v36  ;;  %v2777_v45 = vadd.f32 %v2776_v43, %v2746_v44 }
 0x9cb   : > { %2824 = vrot.lane.b32.xlu0 %v2800_v41, %s4448_s16 }
 0x9d0   : > { %v2803_v29 = vpop.f32.mrf.mxu1 }
 0x9d1   : > { %v2804_v46 = vadd.f32 %v2803_v29, %v2777_v45 }
 0x9d3   : > { %2826 = vrot.lane.b32.xlu0 %v2804_v46, %s4448_s16 }
 0xa3d   : > { %v2825_v52 = vpop.permute.xlu0 %2824 }
 0xa3e   : > { %v2836_v54 = vsel %vm2835_vm1, %v2833_v53, %v2825_v52  ;;  %v3129_v52 = vld [vmem:[%s4657_s25 + $0x18] sm:$0xff] }
 0xa3f   : > { %v2847_v56 = vsel %vm783_vm3, %v2836_v54, 0  ;;  %v3152_v53 = vand.u32 4294901760, %v3129_v52  ;;  %v3128_v54 = vld [vmem:[%s4657_s25 + $0x10] sm:$0xff] }
 0xa40   : > { %v2872_v58 = vand.u32 4294901760, %v2847_v56 }
 0xa41   : > { %v3190_v55 = vsub.f32 %v3129_v52, %v3152_v53  ;;  %3153 = vmatpush.msra.mxu0 %v3152_v53  ;;  %v3370_v52 = vld [vmem:[%s4667_s29 + $0x60] sm:$0xff] }
 0xa42   : > { %v2873_v60 = vsub.f32 %v2847_v56, %v2872_v58  ;;  %2926 = vmatmul.f32.vlgmr.msrb.gmra.mxu3 %v2872_v58  ;;  %v3154_v56 = vand.u32 4294901760, %v3128_v54 }
 0xa43   : > { %3270 = vmatpush.msrb.mxu3 %v3152_v53 }
 0xa44   : > { %v2874_v19 = vand.u32 4294901760, %v2873_v60  ;;  %2960 = vmatmul.f32.vlgmr.msrb.gmra.mxu0 %v2873_v60  ;;  %v3196_v59 = vsub.f32 %v3128_v54, %v3154_v56  ;;  %v3368_v54 = vld [vmem:[%s4667_s29 + $0x50] sm:$0xff] }
 0xa45   : > { %v2827_v20 = vpop.permute.xlu0 %2826  ;;  %3272 = vmatpush.msrb.mxu3 %v3154_v56  ;;  %3155 = vmatpush.msra.mxu0 %v3154_v56 }
 0xa46   : > { %v2875_v21 = vsub.f32 %v2873_v60, %v2874_v19  ;;  %v2837_v22 = vsel %vm2835_vm1, %v2834_v62, %v2827_v20  ;;  %2992 = vmatmul.f32.vlgmr.msrb.gmra.mxu1 %v2874_v19  ;;  %v3156_v60 = vand.u32 4294901760, %v3127_v57  ;;  %v3197_v20 = vand.u32 4294901760, %v3196_v59 }
 0xa47   : > { %v2850_v24 = vsel %vm783_vm3, %v2837_v22, 0 }
 0xa48   : > { %v2876_v25 = vand.u32 4294901760, %v2875_v21  ;;  %v2880_v63 = vand.u32 4294901760, %v2850_v24  ;;  %v3202_v62 = vsub.f32 %v3127_v57, %v3156_v60  ;;  %v3158_v21 = vand.u32 4294901760, %v3126_v15  ;;  %3274 = vmatpush.msrb.mxu3 %v3156_v60  ;;  %3157 = vmatpush.msra.mxu0 %v3156_v60 }
 0xa49   : > { %v5047_v57 = vand.u32 4294901760, %v3368_v54 }
 0xa4a   : > { %v2881_v26 = vsub.f32 %v2850_v24, %v2880_v63  ;;  %2877 = vmatmul.f32.vlgmr.msrb.gmra.mxu2 %v2876_v25  ;;  %2930 = vmatmul.f32.gmra.mxu3 %v2880_v63  ;;  %v3198_v24 = vsub.f32 %v3196_v59, %v3197_v20  ;;  %v3203_v25 = vand.u32 4294901760, %v3202_v62 }
 0xa4b   : > { %3236 = vmatpush.msrb.mxu2 %v3190_v55  ;;  %3276 = vmatpush.msrb.mxu3 %v3158_v21 }
 0xa4c   : > { %2965 = vmatmul.f32.gmra.mxu0 %v2881_v26  ;;  %v2882_v27 = vand.u32 4294901760, %v2881_v26 }
 0xa4d   : > { %3239 = vmatpush.msrb.mxu2 %v3196_v59  ;;  %3159 = vmatpush.msra.mxu0 %v3158_v21 }
 0xa4e   : > { %2998 = vmatmul.f32.gmra.mxu1 %v2882_v27  ;;  %v2883_v28 = vsub.f32 %v2881_v26, %v2882_v27  ;;  %v3199_v26 = vand.u32 4294901760, %v3198_v24  ;;  %v3204_v27 = vsub.f32 %v3202_v62, %v3203_v25 }
 0xa4f   : > { %3242 = vmatpush.msrb.mxu2 %v3202_v62 }
 0xa50   : > { %v2884_v32 = vand.u32 4294901760, %v2883_v28 }
 0xa52   : > { %2885 = vmatmul.f32.gmra.mxu2 %v2884_v32  ;;  %3060 = vmatmul.f32.vlgmr.msra.gmra.mxu3 %v2872_v58  ;;  %v3205_v32 = vand.u32 4294901760, %v3204_v27 }
 0xa5a   : > { %3031 = vmatmul.f32.vlgmr.msra.gmra.mxu2 %v2872_v58  ;;  %3064 = vmatmul.f32.gmra.mxu3 %v2880_v63  ;;  %v3191_v58 = vand.u32 4294901760, %v3190_v55 }
 0xa5c   : > { %v3192_v19 = vsub.f32 %v3190_v55, %v3191_v58  ;;  %3305 = vmatpush.msrb.mxu0 %v3191_v58 }
 0xa5e   : > { %v3193_v22 = vand.u32 4294901760, %v3192_v19  ;;  %3309 = vmatpush.msrb.mxu0 %v3197_v20 }
 0xa60   : > { %3194 = vmatpush.msra.mxu1 %v3193_v22  ;;  %3313 = vmatpush.msrb.mxu0 %v3203_v25 }
 0xa62   : > { %3035 = vmatmul.f32.gmra.mxu2 %v2880_v63  ;;  %v3208_v63 = vsub.f32 %v3126_v15, %v3158_v21  ;;  %3200 = vmatpush.msra.mxu1 %v3199_v26  ;;  %v3367_v26 = vld [vmem:[%s4667_s29 + $0x48] sm:$0xff] }
 0xa64   : > { %v3209_v28 = vand.u32 4294901760, %v3208_v63  ;;  %3245 = vmatpush.msrb.mxu2 %v3208_v63  ;;  %3206 = vmatpush.msra.mxu1 %v3205_v32 }
 0xa66   : > { %3317 = vmatpush.msrb.mxu0 %v3209_v28 }
 0xac1   : > { %v2961_v36 = vpop.f32.mrf.mxu0 }
 0xac3   : > { %v2993_v41 = vpop.f32.mrf.mxu1 }
 0xac5   : > { %v2927_v33 = vpop.f32.mrf.mxu3 }
 0xac9   : > { %v2966_v46 = vpop.f32.mrf.mxu0 }
 0xacb   : > { %v2999_v0 = vpop.f32.mrf.mxu1 }
 0xacd   : > { %v2878_v31 = vpop.f32.mrf.mxu2  ;;  %v2931_v34 = vpop.f32.mrf.mxu3 }
 0xace   : > { %v2879_v35 = vadd.f32 %v4287_v48, %v2878_v31 }
 0xad0   : > { %v2928_v37 = vadd.f32 %v2927_v33, %v2879_v35  ;;  %v3210_v33 = vsub.f32 %v3208_v63, %v3209_v28 }
 0xad2   : > { %v2962_v40 = vadd.f32 %v2961_v36, %v2928_v37 }
 0xad4   : > { %v2994_v43 = vadd.f32 %v2993_v41, %v2962_v40 }
 0xad5   : > { %v2886_v38 = vpop.f32.mrf.mxu2  ;;  %v3061_v44 = vpop.f32.mrf.mxu3 }
 0xad6   : > { %v2887_v39 = vadd.f32 %v4287_v48, %v2886_v38  ;;  %v3211_v48 = vand.u32 4294901760, %v3210_v33 }
 0xad8   : > { %v2932_v42 = vadd.f32 %v2931_v34, %v2887_v39  ;;  %3212 = vmatpush.msra.mxu1 %v3211_v48 }
 0xada   : > { %v2967_v49 = vadd.f32 %v2966_v46, %v2932_v42  ;;  %3340 = vmatpush.msrb.mxu1 %v3152_v53  ;;  %v4288_v46 = vld [vmem:[%s740_s20] ss:$0 sm:$0xff]  ;;  %v3369_v53 = vld [vmem:[%s4667_s29 + $0x58] sm:$0xff] }
 0xadc   : > { %v3000_v1 = vadd.f32 %v2999_v0, %v2967_v49  ;;  %3342 = vmatpush.msrb.mxu1 %v3154_v56  ;;  %v5045_v56 = vand.u32 4294901760, %v3369_v53 }
 0xadd   : > { %v3032_v45 = vpop.f32.mrf.mxu2  ;;  %v3065_v2 = vpop.f32.mrf.mxu3 }
 0xade   : > { %v3033_v29 = vadd.f32 %v3032_v45, %v2994_v43  ;;  %3344 = vmatpush.msrb.mxu1 %v3156_v60  ;;  %v5063_v62 = vsub.f32 %v3369_v53, %v5045_v56 }
 0xae0   : > { %v3062_v47 = vadd.f32 %v3061_v44, %v3033_v29  ;;  %3346 = vmatpush.msrb.mxu1 %v3158_v21  ;;  %v5066_v21 = vsub.f32 %v3368_v54, %v5047_v57  ;;  %v3362_v54 = vld [vmem:[%s4667_s29 + $0x20] sm:$0xff] }
 0xae2   : > { %v4986_v51 = vadd.f32 %v4334_v61, %v3062_v47  ;;  %v4289_v61 = vld [vmem:[%s5415_s22] ss:$0 sm:$0xff] }
 0xae4   : > { %v3072_v23 = vsel %vm783_vm3, %v4986_v51, 0.0 }
 0xae5   : > { %v3036_v3 = vpop.f32.mrf.mxu2  ;;  %3073 = vadd.xlane.f32.xlu1 %v3072_v23 }
 0xae6   : > { %v3037_v30 = vadd.f32 %v3036_v3, %v3000_v1 }
 0xae8   : > { %v3066_v4 = vadd.f32 %v3065_v2, %v3037_v30 }
 0xaea   : > { %v4990_v6 = vadd.f32 %v4335_v5, %v3066_v4 }
 0xaec   : > { %v3075_v7 = vsel %vm787_vm4, %v4990_v6, 0.0 }
 0xaed   : > { %3076 = vadd.xlane.f32.xlu2 %v3075_v7 }
 0xb58   : > { %v3074_v8 = vpop.xlane.xlu1 %3073 }
 0xb59   : > { %v3078_v9 = vmul.f32 %v3074_v8, %v4689_v18 }
 0xb5b   : > { %v4996_v10 = vsub.f32 %v4986_v51, %v3078_v9 }
 0xb5d   : > { %v3082_v11 = vmul.f32 %v4996_v10, %v4996_v10 }
 0xb5f   : > { %v3084_v12 = vsel %vm783_vm3, %v3082_v11, 0.0  ;;  %v3372_v11 = vld [vmem:[%s4667_s29 + $0x70] sm:$0xff] }
 0xb60   : > { %3085 = vadd.xlane.f32.xlu0 %v3084_v12  ;;  %v3077_v13 = vpop.xlane.xlu2 %3076  ;;  %v3371_v12 = vld [vmem:[%s4667_s29 + $0x68] sm:$0xff] }
 0xb61   : > { %v3079_v14 = vmul.f32 %v3077_v13, %v4689_v18 }
 0xb63   : > { %v5003_v16 = vsub.f32 %v4990_v6, %v3079_v14 }
 0xb65   : > { %v3083_v17 = vmul.f32 %v5003_v16, %v5003_v16 }
 0xb67   : > { %v3087_v50 = vsel %vm787_vm4, %v3083_v17, 0.0  ;;  %v5036_v17 = vand.u32 4294901760, %v3372_v11 }
 0xb68   : > { %3088 = vadd.xlane.f32.xlu1 %v3087_v50  ;;  %v5038_v50 = vand.u32 4294901760, %v3371_v12 }
 0xb69   : > { %v5053_v60 = vsub.f32 %v3372_v11, %v5036_v17  ;;  %v3363_v11 = vld [vmem:[%s4667_s29 + $0x28] sm:$0xff] }
 0xb6a   : > { %v5056_v15 = vsub.f32 %v3371_v12, %v5038_v50  ;;  %v5154_v53 = vand.u32 4294901760, %v3363_v11 }
 0xb6b   : > { %v3435_v25 = vand.u32 4294901760, %v5053_v60 }
 0xb6c   : > { %v3441_v63 = vand.u32 4294901760, %v5056_v15 }
 0xb6d   : > { %v3436_v48 = vsub.f32 %v5053_v60, %v3435_v25 }
 0xbd3   : > { %v3086_v31 = vpop.xlane.xlu0 %3085 }
 0xbd4   : > { %v3090_v35 = vmul.f32 %v3086_v31, %v4689_v18  ;;  %v3442_v31 = vsub.f32 %v5056_v15, %v3441_v63 }
 0xbd6   : > { %v3092_v34 = vadd.f32 1e-05, %v3090_v35  ;;  %v3453_v35 = vand.u32 4294901760, %v5063_v62 }
 0xbd8   : > { %4330 = vrsqrt.f32 %v3092_v34  ;;  %vm3100_vm5 = vweird.f32 %v3092_v34 }
 0xbdb   : > { %v3089_v37 = vpop.xlane.xlu1 %3088 }
 0xbdc   : > { %v3091_v36 = vmul.f32 %v3089_v37, %v4689_v18  ;;  %v5088_v37 = vand.u32 4294901760, %v3367_v26 }
 0xbde   : > { %v4331_v38 = vpop.eup %4330  ;;  %v3093_v39 = vadd.f32 1e-05, %v3091_v36 }
 0xbdf   : > { %v3095_v40 = vmul.f32 %v4331_v38, %v3092_v34  ;;  %vm3101_vm2 = vweird.f32 %v4331_v38 }
 0xbe0   : > { %4332 = vrsqrt.f32 %v3093_v39  ;;  %vm3102_vm6 = vmor %vm3100_vm5, %vm3101_vm2  ;;  %vm3110_vm8 = vweird.f32 %v3093_v39 }
 0xbe1   : > { %v3096_v41 = vmul.f32 %v4331_v38, %v3095_v40  ;;  %v3459_v40 = vand.u32 4294901760, %v5066_v21 }
 0xbe3   : > { %v3097_v42 = vmul.f32 0.5, %v3096_v41 }
 0xbe5   : > { %v3098_v43 = vsub.f32 1.5, %v3097_v42  ;;  %v5097_v42 = vsub.f32 %v3367_v26, %v5088_v37  ;;  %v5169_v26 = vand.u32 4294901760, %v3362_v54 }
 0xbe6   : > { %v4333_v44 = vpop.eup %4332 }
 0xbe7   : > { %v3099_v45 = vmul.f32 %v4331_v38, %v3098_v43  ;;  %v3105_v29 = vmul.f32 %v4333_v44, %v3093_v39  ;;  %vm3111_vm7 = vweird.f32 %v4333_v44  ;;  %v3443_v43 = vand.u32 4294901760, %v3442_v31 }
 0xbe8   : > { %vm3112_vm9 = vmor %vm3110_vm8, %vm3111_vm7 }
 0xbe9   : > { %v3103_v47 = vsel %vm3102_vm6, %v4331_v38, %v3099_v45  ;;  %v3106_v49 = vmul.f32 %v4333_v44, %v3105_v29  ;;  %v3437_v38 = vand.u32 4294901760, %v3436_v48  ;;  %v3465_v29 = vand.u32 4294901760, %v5097_v42 }
 0xbea   : > { %v3114_v0 = vmul.f32 %v3103_v47, %v4996_v10  ;;  %v3373_v10 = vld [vmem:[%s4667_s29 + $0x78] sm:$0xff]  ;;  %v3460_v47 = vsub.f32 %v5066_v21, %v3459_v40 }
 0xbeb   : > { %v3107_v1 = vmul.f32 0.5, %v3106_v49  ;;  %v5034_v14 = vand.u32 4294901760, %v3373_v10 }
 0xbec   : > { %v3119_v23 = vmul.f32 %v4288_v46, %v3114_v0  ;;  %v3466_v0 = vsub.f32 %v5097_v42, %v3465_v29 }
 0xbed   : > { %v3108_v3 = vsub.f32 1.5, %v3107_v1  ;;  %v5050_v59 = vsub.f32 %v3373_v10, %v5034_v14  ;;  %3379 = vmatpush.msra.mxu2 %v5034_v14  ;;  %v3461_v1 = vand.u32 4294901760, %v3460_v47 }
 0xbee   : > { %v3124_v30 = vadd.f32 %v4289_v61, %v3119_v23  ;;  %v3467_v23 = vand.u32 4294901760, %v3466_v0 }
 0xbef   : > { %v3109_v2 = vmul.f32 %v4333_v44, %v3108_v3  ;;  %v3429_v24 = vand.u32 4294901760, %v5050_v59  ;;  %3381 = vmatpush.msra.mxu2 %v5036_v17  ;;  %v3366_v3 = vld [vmem:[%s4667_s29 + $0x40] sm:$0xff] }
 0xbf0   : > { %v3135_v4 = vsel %vm783_vm3, %v3124_v30, 0  ;;  %v5126_v30 = vand.u32 4294901760, %v3366_v3 }
 0xbf1   : > { %v3113_v5 = vsel %vm3112_vm9, %v4333_v44, %v3109_v2  ;;  %v5026_v7 = vand.u32 4294901760, %v3135_v4  ;;  %v3430_v33 = vsub.f32 %v5050_v59, %v3429_v24  ;;  %3383 = vmatpush.msra.mxu2 %v5038_v50  ;;  %v3454_v44 = vsub.f32 %v5063_v62, %v3453_v35  ;;  %v3365_v2 = vld [vmem:[%s4667_s29 + $0x38] sm:$0xff] }
 0xbf2   : > { %v3115_v8 = vmul.f32 %v3113_v5, %v5003_v16  ;;  %v5043_v16 = vand.u32 4294901760, %v3370_v52  ;;  %v5132_v5 = vand.u32 4294901760, %v3365_v2 }
 0xbf3   : > { %3214 = vmatmul.f32.vlgmr.msra.gmra.mxu1 %v5026_v7  ;;  %v3161_v9 = vsub.f32 %v3135_v4, %v5026_v7  ;;  %v3431_v36 = vand.u32 4294901760, %v3430_v33  ;;  %v5130_v4 = vsub.f32 %v3366_v3, %v5126_v30 }
 0xbf4   : > { %v3120_v13 = vmul.f32 %v4288_v46, %v3115_v8  ;;  %v5060_v20 = vsub.f32 %v3370_v52, %v5043_v16  ;;  %3592 = vmatpush.msra.mxu1 %v5034_v14  ;;  %3385 = vmatpush.msra.mxu2 %v5043_v16  ;;  %v3364_v8 = vld [vmem:[%s4667_s29 + $0x30] sm:$0xff] }
 0xbf5   : > { %3248 = vmatmul.f32.vlgmr.msrb.gmra.mxu2 %v3161_v9  ;;  %v3162_v55 = vand.u32 4294901760, %v3161_v9  ;;  %3432 = vmatpush.msra.mxu3 %v3431_v36  ;;  %v5141_v10 = vand.u32 4294901760, %v3364_v8  ;;  %v3360_v36 = vld [vmem:[%s4667_s29 + $0x10] sm:$0xff] }
 0xbf6   : > { %v3125_v58 = vadd.f32 %v4289_v61, %v3120_v13  ;;  %v3447_v32 = vand.u32 4294901760, %v5060_v20  ;;  %3594 = vmatpush.msra.mxu1 %v5036_v17  ;;  %3387 = vmatpush.msra.mxu2 %v5045_v56  ;;  %v3455_v61 = vand.u32 4294901760, %v3454_v44 }
 0xbf7   : > { %3280 = vmatmul.f32.vlgmr.msrb.gmra.mxu3 %v3162_v55  ;;  %v3163_v19 = vsub.f32 %v3161_v9, %v3162_v55  ;;  %v5139_v9 = vsub.f32 %v3365_v2, %v5132_v5  ;;  %v5152_v52 = vsub.f32 %v3364_v8, %v5141_v10 }
 0xbf8   : > { %v3138_v22 = vsel %vm783_vm3, %v3125_v58, 0  ;;  %v3448_v39 = vsub.f32 %v5060_v20, %v3447_v32  ;;  %3596 = vmatpush.msra.mxu1 %v5038_v50  ;;  %3438 = vmatpush.msra.mxu3 %v3437_v38 }
 0xbf9   : > { %v3164_v27 = vand.u32 4294901760, %v3163_v19  ;;  %v3168_v28 = vand.u32 4294901760, %v3138_v22  ;;  %3389 = vmatpush.msra.mxu2 %v5047_v57  ;;  %v3477_v13 = vand.u32 4294901760, %v5139_v9  ;;  %v3483_v19 = vand.u32 4294901760, %v5152_v52 }
 0xbfa   : > { %v3449_v46 = vand.u32 4294901760, %v3448_v39  ;;  %3598 = vmatpush.msra.mxu1 %v5043_v16  ;;  %3444 = vmatpush.msra.mxu3 %v3443_v43  ;;  %v5192_v43 = vand.u32 4294901760, %v3360_v36 }
 0xbfb   : > { %3165 = vmatmul.f32.vlgmr.msra.gmra.mxu0 %v3164_v27  ;;  %3218 = vmatmul.f32.gmra.mxu1 %v3168_v28  ;;  %v3169_v34 = vsub.f32 %v3138_v22, %v3168_v28  ;;  %v3478_v58 = vsub.f32 %v5139_v9, %v3477_v13  ;;  %v5165_v22 = vsub.f32 %v3363_v11, %v5154_v53  ;;  %v3361_v27 = vld [vmem:[%s4667_s29 + $0x18] sm:$0xff] }
 0xbfc   : > { %3534 = vmatpush.msra.mxu0 %v5050_v59  ;;  %3391 = vmatpush.msra.mxu2 %v5088_v37  ;;  %v3484_v33 = vsub.f32 %v5152_v52, %v3483_v19  ;;  %v5177_v31 = vand.u32 4294901760, %v3361_v27 }
 0xbfd   : > { %3253 = vmatmul.f32.gmra.mxu2 %v3169_v34  ;;  %v3170_v41 = vand.u32 4294901760, %v3169_v34  ;;  %3450 = vmatpush.msra.mxu3 %v3449_v46  ;;  %v3489_v48 = vand.u32 4294901760, %v5165_v22 }
 0xbfe   : > { %3537 = vmatpush.msra.mxu0 %v5053_v60  ;;  %3600 = vmatpush.msra.mxu1 %v5045_v56  ;;  %v3485_v38 = vand.u32 4294901760, %v3484_v33 }
 0xbff   : > { %3286 = vmatmul.f32.gmra.mxu3 %v3170_v41  ;;  %v3171_v45 = vsub.f32 %v3169_v34, %v3170_v41  ;;  %3393 = vmatpush.msra.mxu2 %v5126_v30  ;;  %v5181_v34 = vsub.f32 %v3362_v54, %v5169_v26  ;;  %v3490_v39 = vsub.f32 %v5165_v22, %v3489_v48 }
 0xc00   : > { %3540 = vmatpush.msra.mxu0 %v5056_v15  ;;  %3456 = vmatpush.msra.mxu3 %v3455_v61  ;;  %v5190_v41 = vsub.f32 %v3361_v27, %v5177_v31 }
 0xc01   : > { %v3172_v49 = vand.u32 4294901760, %v3171_v45  ;;  %3602 = vmatpush.msra.mxu1 %v5047_v57  ;;  %3395 = vmatpush.msra.mxu2 %v5132_v5  ;;  %v3495_v44 = vand.u32 4294901760, %v5181_v34  ;;  %v3359_v45 = vld [vmem:[%s4667_s29 + $0x8] sm:$0xff]  ;;  %v3491_v46 = vand.u32 4294901760, %v3490_v39 }
 0xc02   : > { %3543 = vmatpush.msra.mxu0 %v5060_v20  ;;  %3462 = vmatpush.msra.mxu3 %v3461_v1  ;;  %v3501_v47 = vand.u32 4294901760, %v5190_v41  ;;  %v5200_v61 = vand.u32 4294901760, %v3359_v45  ;;  %v3358_v1 = vld [vmem:[%s4667_s29] sm:$0xff]  ;;  %s5419_s29 = sld [smem:[#allocation24_spill]] (!%p4184_p1) }
 0xc03   : > { %3173 = vmatmul.f32.gmra.mxu0 %v3172_v49  ;;  %3348 = vmatmul.f32.vlgmr.msrb.gmra.mxu1 %v5026_v7  ;;  %v3506_v49 = vsub.f32 %v3360_v36, %v5192_v43  ;;  %v3496_v0 = vsub.f32 %v5181_v34, %v3495_v44  ;;  %v5209_v8 = vand.u32 4294901760, %v3358_v1 }
 0xc04   : > { %3546 = vmatpush.msra.mxu0 %v5063_v62  ;;  %3604 = vmatpush.msra.mxu1 %v5088_v37  ;;  %v3512_v2 = vsub.f32 %v3359_v45, %v5200_v61 }
 0xc05   : > { %3468 = vmatpush.msra.mxu3 %v3467_v23  ;;  %3397 = vmatpush.msra.mxu2 %v5141_v10  ;;  %v3502_v23 = vsub.f32 %v5190_v41, %v3501_v47  ;;  %v3507_v3 = vand.u32 4294901760, %v3506_v49  ;;  %v3497_v11 = vand.u32 4294901760, %v3496_v0 }
 0xc06   : > { %3549 = vmatpush.msra.mxu0 %v5066_v21  ;;  %3606 = vmatpush.msra.mxu1 %v5126_v30 }
 0xc07   : > { %3399 = vmatpush.msra.mxu2 %v5154_v53  ;;  %v3508_v54 = vsub.f32 %v3506_v49, %v3507_v3 }
 0xc08   : > { %3552 = vmatpush.msra.mxu0 %v5097_v42  ;;  %3608 = vmatpush.msra.mxu1 %v5132_v5 }
 0xc09   : > { %3401 = vmatpush.msra.mxu2 %v5169_v26  ;;  %v3509_v27 = vand.u32 4294901760, %v3508_v54 }
 0xc0a   : > { %3555 = vmatpush.msra.mxu0 %v5130_v4  ;;  %3610 = vmatpush.msra.mxu1 %v5141_v10 }
 0xc0b   : > { %3319 = vmatmul.f32.vlgmr.msrb.gmra.mxu0 %v5026_v7  ;;  %3352 = vmatmul.f32.gmra.mxu1 %v3168_v28  ;;  %v3471_v7 = vand.u32 4294901760, %v5130_v4 }
 0xc0c   : > { %3558 = vmatpush.msra.mxu0 %v5139_v9  ;;  %3612 = vmatpush.msra.mxu1 %v5154_v53 }
 0xc0d   : > { %v3472_v12 = vsub.f32 %v5130_v4, %v3471_v7  ;;  %3403 = vmatpush.msra.mxu2 %v5177_v31 }
 0xc0e   : > { %3561 = vmatpush.msra.mxu0 %v5152_v52  ;;  %3614 = vmatpush.msra.mxu1 %v5169_v26 }
 0xc0f   : > { %v3473_v55 = vand.u32 4294901760, %v3472_v12  ;;  %3405 = vmatpush.msra.mxu2 %v5192_v43  ;;  %v3503_v12 = vand.u32 4294901760, %v3502_v23 }
 0xc10   : > { %3564 = vmatpush.msra.mxu0 %v5165_v22  ;;  %3616 = vmatpush.msra.mxu1 %v5177_v31 }
 0xc11   : > { %3474 = vmatpush.msra.mxu3 %v3473_v55  ;;  %3407 = vmatpush.msra.mxu2 %v5200_v61  ;;  %v3513_v55 = vand.u32 4294901760, %v3512_v2 }
 0xc12   : > { %3567 = vmatpush.msra.mxu0 %v5181_v34  ;;  %3618 = vmatpush.msra.mxu1 %v5192_v43 }
 0xc13   : > { %3323 = vmatmul.f32.gmra.mxu0 %v3168_v28  ;;  %v3479_v28 = vand.u32 4294901760, %v3478_v58  ;;  %v3518_v58 = vsub.f32 %v3358_v1, %v5209_v8  ;;  %3409 = vmatpush.msra.mxu2 %v5209_v8 }
 0xc14   : > { %3570 = vmatpush.msra.mxu0 %v5190_v41  ;;  %3620 = vmatpush.msra.mxu1 %v5200_v61 }
 0xc15   : > { %3480 = vmatpush.msra.mxu3 %v3479_v28  ;;  %v3514_v28 = vsub.f32 %v3512_v2, %v3513_v55  ;;  %v3519_v33 = vand.u32 4294901760, %v3518_v58  ;;  %3639 = vmatpush.msrb.mxu2 %v3429_v24 }
 0xc16   : > { %3573 = vmatpush.msra.mxu0 %v3506_v49  ;;  %3622 = vmatpush.msra.mxu1 %v5209_v8 }
 0xc17   : > { %3486 = vmatpush.msra.mxu3 %v3485_v38  ;;  %v3515_v34 = vand.u32 4294901760, %v3514_v28  ;;  %v3520_v36 = vsub.f32 %v3518_v58, %v3519_v33  ;;  %3643 = vmatpush.msrb.mxu2 %v3435_v25 }
 0xc18   : > { %3576 = vmatpush.msra.mxu0 %v3512_v2 }
 0xc19   : > { %3492 = vmatpush.msra.mxu3 %v3491_v46  ;;  %v3521_v38 = vand.u32 4294901760, %v3520_v36  ;;  %3647 = vmatpush.msrb.mxu2 %v3441_v63 }
 0xc1a   : > { %3579 = vmatpush.msra.mxu0 %v3518_v58 }
 0xc1b   : > { %3498 = vmatpush.msra.mxu3 %v3497_v11  ;;  %3651 = vmatpush.msrb.mxu2 %v3447_v32 }
 0xc1d   : > { %3504 = vmatpush.msra.mxu3 %v3503_v12  ;;  %3655 = vmatpush.msrb.mxu2 %v3453_v35 }
 0xc1f   : > { %3510 = vmatpush.msra.mxu3 %v3509_v27  ;;  %3659 = vmatpush.msrb.mxu2 %v3459_v40 }
 0xc21   : > { %3516 = vmatpush.msra.mxu3 %v3515_v34  ;;  %3663 = vmatpush.msrb.mxu2 %v3465_v29 }
 0xc23   : > { %3522 = vmatpush.msra.mxu3 %v3521_v38  ;;  %3667 = vmatpush.msrb.mxu2 %v3471_v7 }
 0xc25   : > { %3710 = vmatpush.msrb.mxu3 %v5034_v14  ;;  %3671 = vmatpush.msrb.mxu2 %v3477_v13 }
 0xc27   : > { %3712 = vmatpush.msrb.mxu3 %v5036_v17  ;;  %3675 = vmatpush.msrb.mxu2 %v3483_v19  ;;  %v4290_v17 = vld [vmem:[%s751_s5] ss:$0 sm:$0xff] }
 0xc29   : > { %3714 = vmatpush.msrb.mxu3 %v5038_v50  ;;  %3679 = vmatpush.msrb.mxu2 %v3489_v48 }
 0xc2b   : > { %3716 = vmatpush.msrb.mxu3 %v5043_v16  ;;  %3683 = vmatpush.msrb.mxu2 %v3495_v44  ;;  %v4291_v44 = vld [vmem:[%s759_s24] ss:$0 sm:$0xff] }
 0xc2d   : > { %3718 = vmatpush.msrb.mxu3 %v5045_v56  ;;  %3687 = vmatpush.msrb.mxu2 %v3501_v47 }
 0xc2f   : > { %3720 = vmatpush.msrb.mxu3 %v5047_v57  ;;  %3691 = vmatpush.msrb.mxu2 %v3507_v3 }
 0xc31   : > { %3722 = vmatpush.msrb.mxu3 %v5088_v37  ;;  %3695 = vmatpush.msrb.mxu2 %v3513_v55 }
 0xc33   : > { %3724 = vmatpush.msrb.mxu3 %v5126_v30  ;;  %3699 = vmatpush.msrb.mxu2 %v3519_v33 }
 0xc35   : > { %3726 = vmatpush.msrb.mxu3 %v5132_v5 }
 0xc37   : > { %3728 = vmatpush.msrb.mxu3 %v5141_v10 }
 0xc39   : > { %3730 = vmatpush.msrb.mxu3 %v5154_v53 }
 0xc3b   : > { %3732 = vmatpush.msrb.mxu3 %v5169_v26 }
 0xc3d   : > { %3734 = vmatpush.msrb.mxu3 %v5177_v31 }
 0xc3f   : > { %3736 = vmatpush.msrb.mxu3 %v5192_v43 }
 0xc41   : > { %3738 = vmatpush.msrb.mxu3 %v5200_v61 }
 0xc43   : > { %3740 = vmatpush.msrb.mxu3 %v5209_v8 }
 0xc70   : > { %v3215_v14 = vpop.f32.mrf.mxu1 }
 0xc78   : > { %v3166_v50 = vpop.f32.mrf.mxu0  ;;  %v3219_v56 = vpop.f32.mrf.mxu1 }
 0xc79   : > { %v3167_v16 = vadd.f32 %v4290_v17, %v3166_v50  ;;  %v3249_v59 = vpop.f32.mrf.mxu2 }
 0xc7a   : > { %v3281_v62 = vpop.f32.mrf.mxu3 }
 0xc7b   : > { %v3216_v57 = vadd.f32 %v3215_v14, %v3167_v16 }
 0xc7d   : > { %v3250_v15 = vadd.f32 %v3249_v59, %v3216_v57 }
 0xc7f   : > { %v3282_v21 = vadd.f32 %v3281_v62, %v3250_v15 }
 0xc80   : > { %v3174_v60 = vpop.f32.mrf.mxu0  ;;  %v3349_v25 = vpop.f32.mrf.mxu1 }
 0xc81   : > { %v3175_v20 = vadd.f32 %v4290_v17, %v3174_v60  ;;  %v3254_v35 = vpop.f32.mrf.mxu2 }
 0xc82   : > { %v3287_v29 = vpop.f32.mrf.mxu3 }
 0xc83   : > { %v3220_v24 = vadd.f32 %v3219_v56, %v3175_v20 }
 0xc85   : > { %v3255_v37 = vadd.f32 %v3254_v35, %v3220_v24 }
 0xc87   : > { %v3288_v30 = vadd.f32 %v3287_v29, %v3255_v37 }
 0xc88   : > { %v3320_v63 = vpop.f32.mrf.mxu0  ;;  %v3353_v10 = vpop.f32.mrf.mxu1 }
 0xc89   : > { %v3321_v32 = vadd.f32 %v3320_v63, %v3282_v21 }
 0xc8b   : > { %v3350_v40 = vadd.f32 %v3349_v25, %v3321_v32 }
 0xc8d   : > { %v3356_v42 = vmax.f32 %v3350_v40, 0.0 }
 0xc8f   : > { %v3410_v4 = vand.u32 4294901760, %v3356_v42 }
 0xc90   : > { %v3324_v5 = vpop.f32.mrf.mxu0 }
 0xc91   : > { %v3411_v7 = vsub.f32 %v3356_v42, %v3410_v4  ;;  %v3325_v9 = vadd.f32 %v3324_v5, %v3288_v30  ;;  %3524 = vmatmul.f32.vlgmr.msra.gmra.mxu3 %v3410_v4 }
 0xc93   : > { %v3412_v13 = vand.u32 4294901760, %v3411_v7  ;;  %v3354_v52 = vadd.f32 %v3353_v10, %v3325_v9  ;;  %3582 = vmatmul.f32.vlgmr.msra.gmra.mxu0 %v3411_v7 }
 0xc95   : > { %v3413_v53 = vsub.f32 %v3411_v7, %v3412_v13  ;;  %v3357_v19 = vmax.f32 %v3354_v52, 0.0  ;;  %3626 = vmatmul.f32.vlgmr.msra.gmra.mxu1 %v3412_v13 }
 0xc97   : > { %v3414_v22 = vand.u32 4294901760, %v3413_v53  ;;  %v3418_v26 = vand.u32 4294901760, %v3357_v19 }
 0xc99   : > { %3415 = vmatmul.f32.vlgmr.msra.gmra.mxu2 %v3414_v22  ;;  %3528 = vmatmul.f32.gmra.mxu3 %v3418_v26  ;;  %v3419_v48 = vsub.f32 %v3357_v19, %v3418_v26 }
 0xc9b   : > { %3587 = vmatmul.f32.gmra.mxu0 %v3419_v48  ;;  %v3420_v31 = vand.u32 4294901760, %v3419_v48 }
 0xc9d   : > { %3632 = vmatmul.f32.gmra.mxu1 %v3420_v31  ;;  %v3421_v39 = vsub.f32 %v3419_v48, %v3420_v31 }
 0xc9f   : > { %v3422_v41 = vand.u32 4294901760, %v3421_v39 }
 0xca1   : > { %3423 = vmatmul.f32.gmra.mxu2 %v3422_v41  ;;  %3742 = vmatmul.f32.vlgmr.msrb.gmra.mxu3 %v3410_v4 }
 0xca9   : > { %3701 = vmatmul.f32.vlgmr.msrb.gmra.mxu2 %v3410_v4  ;;  %3746 = vmatmul.f32.gmra.mxu3 %v3418_v26 }
 0xcb1   : > { %3705 = vmatmul.f32.gmra.mxu2 %v3418_v26 }
 0xd10   : > { %v3583_v61 = vpop.f32.mrf.mxu0 }
 0xd12   : > { %v3627_v3 = vpop.f32.mrf.mxu1 }
 0xd14   : > { %v3525_v43 = vpop.f32.mrf.mxu3 }
 0xd18   : > { %v3588_v55 = vpop.f32.mrf.mxu0 }
 0xd1a   : > { %v3633_v33 = vpop.f32.mrf.mxu1 }
 0xd1c   : > { %v3416_v45 = vpop.f32.mrf.mxu2  ;;  %v3529_v47 = vpop.f32.mrf.mxu3 }
 0xd1d   : > { %v3417_v46 = vadd.f32 %v4291_v44, %v3416_v45 }
 0xd1f   : > { %v3526_v49 = vadd.f32 %v3525_v43, %v3417_v46 }
 0xd21   : > { %v3584_v23 = vadd.f32 %v3583_v61, %v3526_v49 }
 0xd23   : > { %v3628_v8 = vadd.f32 %v3627_v3, %v3584_v23 }
 0xd24   : > { %v3424_v0 = vpop.f32.mrf.mxu2  ;;  %v3743_v11 = vpop.f32.mrf.mxu3 }
 0xd25   : > { %v3425_v1 = vadd.f32 %v4291_v44, %v3424_v0 }
 0xd27   : > { %v3530_v2 = vadd.f32 %v3529_v47, %v3425_v1 }
 0xd29   : > { %v3589_v27 = vadd.f32 %v3588_v55, %v3530_v2 }
 0xd2b   : > { %v3634_v34 = vadd.f32 %v3633_v33, %v3589_v27 }
 0xd2c   : > { %v3702_v12 = vpop.f32.mrf.mxu2  ;;  %v3747_v14 = vpop.f32.mrf.mxu3 }
 0xd2d   : > { %v3703_v54 = vadd.f32 %v3702_v12, %v3628_v8 }
 0xd2f   : > { %v3744_v58 = vadd.f32 %v3743_v11, %v3703_v54 }
 0xd31   : > { %v3750_v28 = vadd.f32 %v3744_v58, %v4986_v51 }
 0xd33   : > { %3752 = vst.msk [vmem:[#allocation2] sm:$0xff] %vm783_vm3, %v3750_v28 }
 0xd34   : > { %v3706_v36 = vpop.f32.mrf.mxu2 }
 0xd35   : > { %v3707_v38 = vadd.f32 %v3706_v36, %v3634_v34 }
 0xd37   : > { %v3748_v17 = vadd.f32 %v3747_v14, %v3707_v38  ;;  %3757 = sbr.rel (%p4184_p1) target bundleno = 3806 (0xede), region = 100 }
 0xd39   : > { %v3751_v50 = vadd.f32 %v3748_v17, %v4990_v6 }
 0xd3b   : > { %3753 = vst.msk [vmem:[#allocation2 + $0x8] sm:$0x1] %vm787_vm4, %v3751_v50 }
 0xd3c   : > { %v3760_v16 = vsel %vm787_vm4, %v3750_v28, 0.0  ;;  %v3787_v6 = vld [vmem:[%s5417_s15 + $0x18] sm:$0xff]  ;;  %v3786_v20 = vld [vmem:[%s5417_s15 + $0x10] sm:$0xff]  ;;  %v3785_v24 = vld [vmem:[%s5417_s15 + $0x8] sm:$0xff] }
 0xd3d   : > { %3761 = vadd.xlane.f32.xlu0 %v3760_v16  ;;  %v3804_v15 = vand.u32 4294901760, %v3787_v6  ;;  %v3806_v21 = vand.u32 4294901760, %v3786_v20  ;;  %v3808_v32 = vand.u32 4294901760, %v3785_v24  ;;  %v3784_v35 = vld [vmem:[%s5417_s15] sm:$0xff] }
 0xd3e   : > { %v3810_v29 = vand.u32 4294901760, %v3784_v35  ;;  %v3758_v47 = vld [vmem:[%s5418_s2] sm:$0x1] }
 0xd3f   : > { %v3834_v62 = vsub.f32 %v3787_v6, %v3804_v15  ;;  %3905 = vmatpush.msra.mxu3 %v3804_v15  ;;  %3805 = vmatpush.msra.mxu0 %v3804_v15  ;;  %v3840_v63 = vsub.f32 %v3786_v20, %v3806_v21  ;;  %v3846_v42 = vsub.f32 %v3785_v24, %v3808_v32  ;;  %v3759_v49 = vld [vmem:[%s5419_s29] sm:$0x1] }
 0xd40   : > { %v3852_v7 = vsub.f32 %v3784_v35, %v3810_v29  ;;  %v3788_v12 = vld [vmem:[%s5420_s26] sm:$0x1] }
 0xd41   : > { %v3835_v25 = vand.u32 4294901760, %v3834_v62  ;;  %3876 = vmatpush.msra.mxu2 %v3834_v62  ;;  %3907 = vmatpush.msra.mxu3 %v3806_v21  ;;  %v3841_v40 = vand.u32 4294901760, %v3840_v63  ;;  %v3847_v5 = vand.u32 4294901760, %v3846_v42 }
 0xd42   : > { %3807 = vmatpush.msra.mxu0 %v3806_v21  ;;  %v3853_v13 = vand.u32 4294901760, %v3852_v7 }
 0xd43   : > { %v3836_v37 = vsub.f32 %v3834_v62, %v3835_v25  ;;  %3879 = vmatpush.msra.mxu2 %v3840_v63  ;;  %3909 = vmatpush.msra.mxu3 %v3808_v32  ;;  %v3842_v4 = vsub.f32 %v3840_v63, %v3841_v40  ;;  %v3848_v10 = vsub.f32 %v3846_v42, %v3847_v5 }
 0xd44   : > { %3809 = vmatpush.msra.mxu0 %v3808_v32  ;;  %v3854_v53 = vsub.f32 %v3852_v7, %v3853_v13 }
 0xd45   : > { %v3837_v30 = vand.u32 4294901760, %v3836_v37  ;;  %3882 = vmatpush.msra.mxu2 %v3846_v42  ;;  %3911 = vmatpush.msra.mxu3 %v3810_v29  ;;  %v3843_v9 = vand.u32 4294901760, %v3842_v4  ;;  %v3849_v52 = vand.u32 4294901760, %v3848_v10 }
 0xd46   : > { %3811 = vmatpush.msra.mxu0 %v3810_v29  ;;  %v3855_v19 = vand.u32 4294901760, %v3854_v53 }
 0xd47   : > { %3838 = vmatpush.msra.mxu1 %v3837_v30  ;;  %3885 = vmatpush.msra.mxu2 %v3852_v7 }
 0xd48   : > { %3934 = vmatpush.msrb.mxu0 %v3835_v25 }
 0xd49   : > { %3844 = vmatpush.msra.mxu1 %v3843_v9 }
 0xd4a   : > { %3938 = vmatpush.msrb.mxu0 %v3841_v40 }
 0xd4b   : > { %3850 = vmatpush.msra.mxu1 %v3849_v52 }
 0xd4c   : > { %3942 = vmatpush.msrb.mxu0 %v3847_v5 }
 0xd4d   : > { %3856 = vmatpush.msra.mxu1 %v3855_v19 }
 0xd4e   : > { %3946 = vmatpush.msrb.mxu0 %v3853_v13 }
 0xd4f   : > { %3965 = vmatpush.msrb.mxu1 %v3804_v15 }
 0xd51   : > { %3967 = vmatpush.msrb.mxu1 %v3806_v21 }
 0xd53   : > { %3969 = vmatpush.msrb.mxu1 %v3808_v32 }
 0xd55   : > { %3971 = vmatpush.msrb.mxu1 %v3810_v29 }
 0xdb0   : > { %v3762_v56 = vpop.xlane.xlu0 %3761 }
 0xdb1   : > { %v3763_v51 = vmul.f32 %v3762_v56, %v4689_v18 }
 0xdb3   : > { %v5272_v57 = vsub.f32 %v3750_v28, %v3763_v51 }
 0xdb5   : > { %v3765_v59 = vmul.f32 %v5272_v57, %v5272_v57 }
 0xdb7   : > { %v3766_v60 = vsel %vm787_vm4, %v3765_v59, 0.0 }
 0xdb8   : > { %3767 = vadd.xlane.f32.xlu0 %v3766_v60 }
 0xe2b   : > { %v3768_v22 = vpop.xlane.xlu0 %3767 }
 0xe2c   : > { %v3769_v26 = vmul.f32 %v3768_v22, %v4689_v18 }
 0xe2e   : > { %v3770_v48 = vadd.f32 1e-05, %v3769_v26 }
 0xe30   : > { %4336 = vrsqrt.f32 %v3770_v48  ;;  %vm3777_vm10 = vweird.f32 %v3770_v48 }
 0xe36   : > { %v4337_v31 = vpop.eup %4336 }
 0xe37   : > { %v3772_v39 = vmul.f32 %v4337_v31, %v3770_v48  ;;  %vm3778_vm4 = vweird.f32 %v4337_v31 }
 0xe38   : > { %vm3779_vm11 = vmor %vm3777_vm10, %vm3778_vm4 }
 0xe39   : > { %v3773_v41 = vmul.f32 %v4337_v31, %v3772_v39 }
 0xe3b   : > { %v3774_v43 = vmul.f32 0.5, %v3773_v41 }
 0xe3d   : > { %v3775_v44 = vsub.f32 1.5, %v3774_v43 }
 0xe3f   : > { %v3776_v45 = vmul.f32 %v4337_v31, %v3775_v44 }
 0xe41   : > { %v3780_v46 = vsel %vm3779_vm11, %v4337_v31, %v3776_v45 }
 0xe42   : > { %v3781_v18 = vmul.f32 %v3780_v46, %v5272_v57 }
 0xe44   : > { %v3782_v61 = vmul.f32 %v3781_v18, %v3758_v47 }
 0xe46   : > { %v3783_v0 = vadd.f32 %v3782_v61, %v3759_v49 }
 0xe48   : > { %v3790_v1 = vsel %vm783_vm3, %v3783_v0, 0  ;;  %vm3977_vm3 = vcmask 57344  }
 0xe49   : > { %v3812_v23 = vand.u32 4294901760, %v3790_v1 }
 0xe4b   : > { %3858 = vmatmul.f32.vlgmr.msra.gmra.mxu1 %v3812_v23  ;;  %v3813_v3 = vsub.f32 %v3790_v1, %v3812_v23 }
 0xe4d   : > { %3888 = vmatmul.f32.vlgmr.msra.gmra.mxu2 %v3813_v3  ;;  %v3814_v2 = vand.u32 4294901760, %v3813_v3 }
 0xe4f   : > { %3915 = vmatmul.f32.vlgmr.msra.gmra.mxu3 %v3814_v2  ;;  %v3815_v8 = vsub.f32 %v3813_v3, %v3814_v2 }
 0xe51   : > { %v3816_v11 = vand.u32 4294901760, %v3815_v8 }
 0xe53   : > { %3817 = vmatmul.f32.vlgmr.msra.gmra.mxu0 %v3816_v11  ;;  %3973 = vmatmul.f32.vlgmr.msrb.gmra.mxu1 %v3812_v23 }
 0xe5b   : > { %3948 = vmatmul.f32.vlgmr.msrb.gmra.mxu0 %v3812_v23 }
 0xec8   : > { %v3859_v54 = vpop.f32.mrf.mxu1 }
 0xed0   : > { %v3818_v55 = vpop.f32.mrf.mxu0  ;;  %v3889_v28 = vpop.f32.mrf.mxu2 }
 0xed1   : > { %v3819_v58 = vadd.f32 %v3818_v55, %v3788_v12  ;;  %v3974_v17 = vpop.f32.mrf.mxu1 }
 0xed2   : > { %v3916_v34 = vpop.f32.mrf.mxu3 }
 0xed3   : > { %v3860_v27 = vadd.f32 %v3859_v54, %v3819_v58 }
 0xed5   : > { %v3890_v33 = vadd.f32 %v3889_v28, %v3860_v27 }
 0xed7   : > { %v3917_v36 = vadd.f32 %v3916_v34, %v3890_v33 }
 0xed8   : > { %v3949_v38 = vpop.f32.mrf.mxu0 }
 0xed9   : > { %v3950_v14 = vadd.f32 %v3949_v38, %v3917_v36 }
 0xedb   : > { %v3975_v50 = vadd.f32 %v3974_v17, %v3950_v14 }
 0xedd   : > { %3978 = vst.msk [vmem:[%s4675_s18] sm:$0x1] %vm3977_vm3, %v3975_v50 }
 0xede PF: > { %s5421_s27 = sld [smem:[#allocation9_spill]]  ;;  %s3990_s19 = sshll.u32 %s4675_s18, 4  ;;  %s3991_s19 = int_to_ptr.vmem [resolvable:$true] %s3990_s19 }
 0xedf   : > { %s5422_s0 = sld [smem:[#allocation27_spill]]  ;;  %s5425_s25 = sand.u32 1, %s4408_s28  }
 0xee0   : > { %s3980_s23 = scalar_lea.sflag [#allocation4], %s5425_s25 }
 0xee5   : > { %s5423_s17 = smov %s5422_s0  ;;  %s3988_s30 = scalar_lea.hbm %s5422_s0, %s5421_s27 }
 0xee6   : > { %s3992_s1 = sshll.u32 %s3988_s30, 4  ;;  %s4358_s20 = scalar_lea.hbm %s5423_s17, 2  ;;  %s3993_s1 = int_to_ptr.hbm [resolvable:$true] %s3992_s1 }
 0xee7   : > { %s4352_s2 = sshra.s32 %s3993_s1, 4  ;;  %s4353_s2 = int_to_ptr.hbm [resolvable:$true] %s4352_s2 }
 0xee8   : > { %s4354_s14 = scalar_lea.hbm %s4353_s2, 1  ;;  %p4359_p6 = scmp.lt.s32.totalorder %s4353_s2, %s5423_s17 }
 0xee9   : > { %p4355_p2 = scmp.ne.s32.totalorder %s4353_s2, %s4354_s14  ;;  %p4360_p7 = scmp.lt.s32.totalorder %s4358_s20, %s4354_s14 }
 0xeeb   : > { %p4356_p4 = pnand %p4355_p2, %p4593_p3  ;;  %p4361_p8 = por %p4360_p7, %p4359_p6 }
 0xeed   : > { %p4357_p5 = pneg %p4356_p4 }
 0xeef   : > { %p4362_p10 = pnand %p4361_p8, %p4357_p5 }
 0xef1   : > { %4365 = shalt.err (!%p4362_p10)
}
 0xef2   : > { %4199 = dma.vmem_to_hbm [thread:$0]  (%p4593_p3), %s3991_s19, 16, %s3993_s1, %s3980_s23  }
 0xef3 PF: > { %s5426_s18 = sld [smem:[#allocation12_spill]] }
 0xef4   : > { %s5427_s27 = sld [smem:[#allocation6_spill]] }
 0xef9   : > { %p4205_p11 = scmp.ge.s32.totalorder %s5426_s18, 2 }
 0xefa   : > { %s4004_s21 = sand.u32 1, %s5427_s27  }
 0xefb   : > { %p4202_p12 = pnand %p4205_p11, %p4603_p9  ;;  %s4005_s0 = scalar_lea.sflag [#allocation4], %s4004_s21 }
 0xefd   : > { %p4203_p13 = pneg %p4202_p12 }
 0xeff   : > { %4399 = dma.done.wait (%p4203_p13), %s4005_s0, 16  }
 0xf00   : > { %4401 = vsyncadd (%p4203_p13), %s4005_s0, 4294967280  ;;  %s31_s20 = sadd.s32 1, %s5426_s18   ;;  %s5429_s30 = sld [smem:[#allocation7_spill]] }
 0xf01   : > { %p28_p0 = scmp.ge.s32.totalorder %s31_s20, 6   ;;  %s5430_s29 = sld [smem:[#allocation17_spill]] }
 0xf02   : > { %s5431_s16 = sld [smem:[#allocation10_spill]]  ;;  %s5435_s27 = smov %s4408_s28 }
 0xf03   : > { %s5432_s0 = sld [smem:[#allocation11_spill]] }
 0xf04   : > { %s5433_s19 = sld [smem:[#allocation13_spill]]  ;;  %30 = sbr.rel (!%p28_p0) target bundleno = 16 (0x10), region = 168 }
 0xf05   : > { %s5434_s1 = sld [smem:[#allocation15_spill]] }
 0xf06   : > { %s5436_s28 = smov %s5429_s30 }
 0xf08   : > { %s5437_s30 = smov %s5431_s16 }
 0xf09   :  { %4010 = vsyncpa [#allocation4], 1 }
 0xf0a   :  { %4012 = vsyncpa [#allocation4 + $0x1], 1 }

</bundles_post_ra>
